<compile_context>
chip_gen: v7x
topology: tpu7x:2x2x1
jax: 0.10.0
libtpu: 0.0.40
codegen_flags: <defaults>
</compile_context>

<pallas_src>
import functools

import jax
import jax.numpy as jnp
from jax.experimental import pallas as pl
from jax.experimental.pallas import tpu as pltpu


def _round_up(a, b):
    return ((a + b - 1) // b) * b


# --------------------------------------------------------------------------
# Fused kernel: encoder -> gumbel-softmax -> decoder
# --------------------------------------------------------------------------
def _fused_dvae_kernel(x_ref, g_ref, ones_ref,
                       w1_ref, b1_ref, w2_ref, b2_ref, w3_ref, b3_ref,
                       w4_ref, b4_ref, w5_ref, b5_ref, w6_ref, b6_ref,
                       recon_ref, qy_ref,
                       *, n_latent, n_cat, inv_temp, hard):
    f32 = jnp.float32
    bf16 = jnp.bfloat16
    NK = n_latent * n_cat
    tm = x_ref.shape[0]

    def dense_relu(h_bf16, w_ref, b_ref):
        # bf16 operands -> MXU, f32 accumulate; relu in f32, return bf16 so the
        # inter-layer temporaries/spills are half width.
        o = jnp.dot(h_bf16, w_ref[...], preferred_element_type=f32) + b_ref[...]
        return jnp.maximum(o, 0.0).astype(bf16)

    # ---------------- encoder: relu(fc1) -> relu(fc2) -> relu(fc3) ----------
    h = x_ref[...].astype(bf16)
    h = dense_relu(h, w1_ref, b1_ref)
    h = dense_relu(h, w2_ref, b2_ref)
    q = jnp.maximum(
        jnp.dot(h, w3_ref[...], preferred_element_type=f32) + b3_ref[...], 0.0)
    # q: (tm, NK) f32 -- kept f32 for the gumbel-softmax math.

    # ---------------- segmented helpers --------------------------------------
    # Lane position within each contiguous K-group (groups are lane-aligned).
    pos = jax.lax.broadcasted_iota(jnp.int32, (tm, NK), 1) % n_cat

    # Within-group cyclic doubling shift plan (trace-time Python ints).
    shifts = []
    cover = 1
    while cover < n_cat:
        s = min(cover, n_cat - cover)
        shifts.append(s)
        cover += s

    def seg_max(v):
        # log2(K)-step shift-max tree: each step takes the max with the value
        # shifted by +s cyclically *within* its K-group (two global lane rolls
        # + one select per step), leaving the group max broadcast to all lanes.
        out = v
        for s in shifts:
            fwd = pltpu.roll(out, NK - s, axis=1)      # value from lane i + s
            wrap = pltpu.roll(out, n_cat - s, axis=1)  # value from lane i + s - K
            out = jnp.maximum(out, jnp.where(pos < n_cat - s, fwd, wrap))
        return out

    ones_bd = ones_ref[...]                            # (NK, NK) bf16 block-diag

    def seg_sum_bf16(v):
        # Group sums on the MXU, already broadcast within each group.
        return jnp.dot(v.astype(bf16), ones_bd, preferred_element_type=f32)

    def seg_sum_hi_lo(v):
        # ~f32-accurate group sums via bf16 hi/lo split (two tiny MXU matmuls).
        hi = v.astype(bf16)
        lo = (v - hi.astype(f32)).astype(bf16)
        return (jnp.dot(hi, ones_bd, preferred_element_type=f32)
                + jnp.dot(lo, ones_bd, preferred_element_type=f32))

    # ---------------- F.softmax(q_y, dim=-1)  (returned => accurate) ---------
    q_max = seg_max(q)
    eq = jnp.exp(q - q_max)
    qy_ref[...] = (eq / seg_sum_hi_lo(eq)).astype(qy_ref.dtype)

    # ---------------- gumbel-softmax sample z --------------------------------
    y = (q + g_ref[...].astype(f32)) * inv_temp
    y_max = seg_max(y)
    if hard:
        # Straight-through forward value: one-hot at the per-group max.  Exact
        # float ties are vanishingly rare with continuous gumbel noise.
        z = jnp.where(y == y_max, 1.0, 0.0).astype(bf16)
    else:
        ey = jnp.exp(y - y_max)
        z = (ey * pl.reciprocal(seg_sum_bf16(ey), approx=True)).astype(bf16)

    # ---------------- decoder: relu(fc4) -> relu(fc5) -> sigmoid(fc6) --------
    h = dense_relu(z, w4_ref, b4_ref)
    h = dense_relu(h, w5_ref, b5_ref)
    o = jnp.dot(h, w6_ref[...], preferred_element_type=f32) + b6_ref[...]
    recon_ref[...] = (1.0 / (1.0 + jnp.exp(-o))).astype(recon_ref.dtype)


# --------------------------------------------------------------------------
# Parameters (weights bf16 for HBM streaming / MXU, biases f32)
# --------------------------------------------------------------------------
def init_params(key, latent_dim, categorical_dim, input_dim, output_dim):
    nk = latent_dim * categorical_dim
    dims = [(input_dim, 512), (512, 256), (256, nk),
            (nk, 256), (256, 512), (512, output_dim)]
    params = {}
    for i, (din, dout) in enumerate(dims, start=1):
        key, kw, kb = jax.random.split(key, 3)
        bound = 1.0 / float(din) ** 0.5
        params[f"w{i}"] = jax.random.uniform(
            kw, (din, dout), jnp.float32, -bound, bound).astype(jnp.bfloat16)
        params[f"b{i}"] = jax.random.uniform(
            kb, (1, dout), jnp.float32, -bound, bound)
    return params


# --------------------------------------------------------------------------
# Forward wrapper: one pallas_call, 1-D batch grid, VMEM-resident weights
# --------------------------------------------------------------------------
def discrete_vae_forward(params, x, temp, hard, gumbel_noise, *,
                         latent_dim, categorical_dim, input_dim):
    N, K = latent_dim, categorical_dim
    NK = N * K
    x_flat = x.reshape(-1, input_dim).astype(jnp.bfloat16)   # x.view(-1, input_dim)
    B = x_flat.shape[0]
    g_flat = gumbel_noise.reshape(B, NK).astype(jnp.bfloat16)
    out_dim = params["w6"].shape[1]

    # Batch tile: full batch in one block when tiny; otherwise tiles are a
    # multiple of 8 rows, capped at 512 (v7x VMEM budget), with >= 2 grid steps
    # so the parallel axis can shard across v7x's two TensorCores.
    if B <= 16:
        tm = B
    else:
        tm = min(512, _round_up(pl.cdiv(B, 2), 8))
    Bp = _round_up(B, tm)
    if Bp != B:
        x_flat = jnp.pad(x_flat, ((0, Bp - B), (0, 0)))
        g_flat = jnp.pad(g_flat, ((0, Bp - B), (0, 0)))
    grid = (Bp // tm,)

    # Block-diagonal ones matrix: group-sum-on-MXU operand (VMEM-resident).
    gidx = jnp.arange(NK) // K
    ones_bd = (gidx[:, None] == gidx[None, :]).astype(jnp.bfloat16)

    def row_spec(d):
        return pl.BlockSpec((tm, d), lambda i: (i, 0))

    def resident_spec(shape):
        return pl.BlockSpec(shape, lambda i: (0, 0))   # same block every step

    wb_keys = ["w1", "b1", "w2", "b2", "w3", "b3",
               "w4", "b4", "w5", "b5", "w6", "b6"]
    wb = [params[k] for k in wb_keys]

    kernel = functools.partial(
        _fused_dvae_kernel, n_latent=N, n_cat=K,
        inv_temp=float(1.0 / float(temp)), hard=bool(hard))

    flops = 2 * Bp * (input_dim * 512 + 512 * 256 + 256 * NK
                      + NK * 256 + 256 * 512 + 512 * out_dim
                      + 3 * NK * NK)                     # + group-sum matmuls
    transcendentals = Bp * (NK * (1 if hard else 2) + out_dim)
    weight_bytes = sum(int(p.size) * p.dtype.itemsize for p in wb)
    bytes_accessed = (weight_bytes + NK * NK * 2
                      + x_flat.size * 2 + g_flat.size * 2
                      + Bp * out_dim * 2 + Bp * NK * 4)

    recon, qy = pl.pallas_call(
        kernel,
        out_shape=(jax.ShapeDtypeStruct((Bp, out_dim), jnp.bfloat16),
                   jax.ShapeDtypeStruct((Bp, NK), jnp.float32)),
        grid=grid,
        in_specs=[row_spec(input_dim), row_spec(NK), resident_spec((NK, NK))]
                 + [resident_spec(p.shape) for p in wb],
        out_specs=(row_spec(out_dim), row_spec(NK)),
        compiler_params=pltpu.CompilerParams(
            dimension_semantics=("parallel",),
            vmem_limit_bytes=48 * 1024 * 1024),
        cost_estimate=pl.CostEstimate(flops=int(flops),
                                      transcendentals=int(transcendentals),
                                      bytes_accessed=int(bytes_accessed)),
    )(x_flat, g_flat, ones_bd, *wb)

    if Bp != B:
        recon = recon[:B]
        qy = qy[:B]
    # recon returned in bf16 (bandwidth); q_y softmax returned in f32.
    return recon, qy.reshape(B * N, K)


# --------------------------------------------------------------------------
# Pure-JAX reference (emulates the kernel's bf16 dot operands / bf16 noise IO)
# --------------------------------------------------------------------------
def _reference_forward(params, x, temp, hard, gumbel_noise, *,
                       latent_dim, categorical_dim, input_dim):
    N, K = latent_dim, categorical_dim
    x_flat = x.reshape(-1, input_dim).astype(jnp.float32)
    B = x_flat.shape[0]

    def dense(h, w, b, act):
        o = jnp.dot(h.astype(jnp.bfloat16), w.astype(jnp.bfloat16),
                    preferred_element_type=jnp.float32) + b.astype(jnp.float32)
        return jnp.maximum(o, 0.0) if act == "relu" else jax.nn.sigmoid(o)

    q = dense(dense(dense(x_flat, params["w1"], params["b1"], "relu"),
                    params["w2"], params["b2"], "relu"),
              params["w3"], params["b3"], "relu")
    q_y = q.reshape(B, N, K)
    g = gumbel_noise.reshape(B, N, K).astype(jnp.bfloat16).astype(jnp.float32)
    y = (q_y + g) / float(temp)
    if hard:
        z = jax.nn.one_hot(jnp.argmax(y, axis=-1), K, dtype=jnp.float32)
    else:
        z = jax.nn.softmax(y, axis=-1)
    z = z.reshape(B, N * K)
    recon = dense(dense(dense(z, params["w4"], params["b4"], "relu"),
                        params["w5"], params["b5"], "relu"),
                  params["w6"], params["b6"], "sigmoid")
    soft_qy = jax.nn.softmax(q_y, axis=-1).reshape(B * N, K)
    return recon, soft_qy


# --------------------------------------------------------------------------
# Main
# --------------------------------------------------------------------------
if __name__ == "__main__":
    latent_dim = 8
    categorical_dim = 16
    B, C, H, W = 2, 3, 16, 16
    input_dim = output_dim = C * H * W                      # 768

    key = jax.random.PRNGKey(0)
    kp, kx, kg = jax.random.split(key, 3)

    params = init_params(kp, latent_dim, categorical_dim, input_dim, output_dim)
    x = jax.random.normal(kx, (B, C, H, W), jnp.float32)    # NCHW image input

    # Gumbel noise g = -log(-log(U + eps) + eps) (deterministic key).
    eps = 1e-20
    U = jax.random.uniform(kg, (B, latent_dim, categorical_dim), jnp.float32)
    gumbel_noise = -jnp.log(-jnp.log(U + eps) + eps)

    fwd = functools.partial(discrete_vae_forward,
                            latent_dim=latent_dim,
                            categorical_dim=categorical_dim,
                            input_dim=input_dim)

    # ---- hard=True (straight-through one-hot forward) ----
    recon_h, qy_h = jax.block_until_ready(
        fwd(params, x, temp=0.5, hard=True, gumbel_noise=gumbel_noise))
    ref_recon_h, ref_qy_h = _reference_forward(
        params, x, 0.5, True, gumbel_noise,
        latent_dim=latent_dim, categorical_dim=categorical_dim,
        input_dim=input_dim)

    assert recon_h.shape == (B, output_dim)
    assert qy_h.shape == (B * latent_dim, categorical_dim)
    assert bool(jnp.all(jnp.isfinite(recon_h)))
    assert bool(jnp.allclose(jnp.sum(qy_h, axis=-1), 1.0, atol=1e-4))
    assert bool(jnp.allclose(qy_h, ref_qy_h, atol=1e-2))
    assert bool(jnp.allclose(recon_h, ref_recon_h, atol=3e-2))

    # ---- hard=False (soft gumbel-softmax sample) ----
    recon_s, qy_s = jax.block_until_ready(
        fwd(params, x, temp=0.5, hard=False, gumbel_noise=gumbel_noise))
    assert recon_s.shape == (B, output_dim)
    assert bool(jnp.all(jnp.isfinite(recon_s)))
    assert bool(jnp.all((recon_s > -1e-2) & (recon_s < 1.0 + 1e-2)))
    assert bool(jnp.allclose(jnp.sum(qy_s, axis=-1), 1.0, atol=1e-4))

    print("KERNEL_OK")
</pallas_src>

<mosaic_0001>
module attributes {stable_mosaic.version = 11 : i64} {
  func.func @_fused_dvae_kernel(%arg0: i32, %arg1: memref<2x768xbf16, #tpu.memory_space<vmem>>, %arg2: memref<2x128xbf16, #tpu.memory_space<vmem>>, %arg3: memref<128x128xbf16, #tpu.memory_space<vmem>>, %arg4: memref<768x512xbf16, #tpu.memory_space<vmem>>, %arg5: memref<1x512xf32, #tpu.memory_space<vmem>>, %arg6: memref<512x256xbf16, #tpu.memory_space<vmem>>, %arg7: memref<1x256xf32, #tpu.memory_space<vmem>>, %arg8: memref<256x128xbf16, #tpu.memory_space<vmem>>, %arg9: memref<1x128xf32, #tpu.memory_space<vmem>>, %arg10: memref<128x256xbf16, #tpu.memory_space<vmem>>, %arg11: memref<1x256xf32, #tpu.memory_space<vmem>>, %arg12: memref<256x512xbf16, #tpu.memory_space<vmem>>, %arg13: memref<1x512xf32, #tpu.memory_space<vmem>>, %arg14: memref<512x768xbf16, #tpu.memory_space<vmem>>, %arg15: memref<1x768xf32, #tpu.memory_space<vmem>>, %arg16: memref<2x768xbf16, #tpu.memory_space<vmem>>, %arg17: memref<2x128xf32, #tpu.memory_space<vmem>>) attributes {dimension_semantics = [#tpu.dimension_semantics<parallel>], iteration_bounds = array<i64: 1>, scalar_prefetch = 0 : i64, scratch_operands = 0 : i64, tpu.core_type = #tpu.core_type<tc>, window_params = [{transform_indices = @transform_0, window_bounds = array<i64: 2, 768>}, {transform_indices = @transform_1, window_bounds = array<i64: 2, 128>}, {pipeline_mode = #tpu.pipeline_mode<synchronous>, transform_indices = @transform_2, window_bounds = array<i64: 128, 128>}, {pipeline_mode = #tpu.pipeline_mode<synchronous>, transform_indices = @transform_3, window_bounds = array<i64: 768, 512>}, {pipeline_mode = #tpu.pipeline_mode<synchronous>, transform_indices = @transform_4, window_bounds = array<i64: 1, 512>}, {pipeline_mode = #tpu.pipeline_mode<synchronous>, transform_indices = @transform_5, window_bounds = array<i64: 512, 256>}, {pipeline_mode = #tpu.pipeline_mode<synchronous>, transform_indices = @transform_6, window_bounds = array<i64: 1, 256>}, {pipeline_mode = #tpu.pipeline_mode<synchronous>, transform_indices = @transform_7, window_bounds = array<i64: 256, 128>}, {pipeline_mode = #tpu.pipeline_mode<synchronous>, transform_indices = @transform_8, window_bounds = array<i64: 1, 128>}, {pipeline_mode = #tpu.pipeline_mode<synchronous>, transform_indices = @transform_9, window_bounds = array<i64: 128, 256>}, {pipeline_mode = #tpu.pipeline_mode<synchronous>, transform_indices = @transform_10, window_bounds = array<i64: 1, 256>}, {pipeline_mode = #tpu.pipeline_mode<synchronous>, transform_indices = @transform_11, window_bounds = array<i64: 256, 512>}, {pipeline_mode = #tpu.pipeline_mode<synchronous>, transform_indices = @transform_12, window_bounds = array<i64: 1, 512>}, {pipeline_mode = #tpu.pipeline_mode<synchronous>, transform_indices = @transform_13, window_bounds = array<i64: 512, 768>}, {pipeline_mode = #tpu.pipeline_mode<synchronous>, transform_indices = @transform_14, window_bounds = array<i64: 1, 768>}, {transform_indices = @transform_15, window_bounds = array<i64: 2, 768>}, {transform_indices = @transform_16, window_bounds = array<i64: 2, 128>}]} {
    %c0 = arith.constant 0 : index
    %c0_0 = arith.constant 0 : index
    %0 = vector.load %arg1[%c0, %c0_0] : memref<2x768xbf16, #tpu.memory_space<vmem>>, vector<2x768xbf16>
    %c0_1 = arith.constant 0 : index
    %c0_2 = arith.constant 0 : index
    %1 = vector.load %arg4[%c0_1, %c0_2] : memref<768x512xbf16, #tpu.memory_space<vmem>>, vector<768x512xbf16>
    %cst = arith.constant dense<0.000000e+00> : vector<2x512xf32>
    %2 = tpu.matmul %0, %1, %cst {dimension_numbers = #tpu.dot_dimension_numbers<[1], [0], [0], [1], [0, 0, 1, 1], [], []>} : vector<2x768xbf16>, vector<768x512xbf16>, vector<2x512xf32> -> vector<2x512xf32>
    %c0_3 = arith.constant 0 : index
    %c0_4 = arith.constant 0 : index
    %3 = vector.load %arg5[%c0_3, %c0_4] : memref<1x512xf32, #tpu.memory_space<vmem>>, vector<1x512xf32>
    %4 = vector.broadcast %3 : vector<1x512xf32> to vector<2x512xf32>
    %5 = arith.addf %2, %4 : vector<2x512xf32>
    %cst_5 = arith.constant 0.000000e+00 : f32
    %6 = vector.broadcast %cst_5 : f32 to vector<2x512xf32>
    %7 = arith.maximumf %5, %6 : vector<2x512xf32>
    %8 = arith.truncf %7 : vector<2x512xf32> to vector<2x512xbf16>
    %c0_6 = arith.constant 0 : index
    %c0_7 = arith.constant 0 : index
    %9 = vector.load %arg6[%c0_6, %c0_7] : memref<512x256xbf16, #tpu.memory_space<vmem>>, vector<512x256xbf16>
    %cst_8 = arith.constant dense<0.000000e+00> : vector<2x256xf32>
    %10 = tpu.matmul %8, %9, %cst_8 {dimension_numbers = #tpu.dot_dimension_numbers<[1], [0], [0], [1], [0, 0, 1, 1], [], []>} : vector<2x512xbf16>, vector<512x256xbf16>, vector<2x256xf32> -> vector<2x256xf32>
    %c0_9 = arith.constant 0 : index
    %c0_10 = arith.constant 0 : index
    %11 = vector.load %arg7[%c0_9, %c0_10] : memref<1x256xf32, #tpu.memory_space<vmem>>, vector<1x256xf32>
    %12 = vector.broadcast %11 : vector<1x256xf32> to vector<2x256xf32>
    %13 = arith.addf %10, %12 : vector<2x256xf32>
    %cst_11 = arith.constant 0.000000e+00 : f32
    %14 = vector.broadcast %cst_11 : f32 to vector<2x256xf32>
    %15 = arith.maximumf %13, %14 : vector<2x256xf32>
    %16 = arith.truncf %15 : vector<2x256xf32> to vector<2x256xbf16>
    %c0_12 = arith.constant 0 : index
    %c0_13 = arith.constant 0 : index
    %17 = vector.load %arg8[%c0_12, %c0_13] : memref<256x128xbf16, #tpu.memory_space<vmem>>, vector<256x128xbf16>
    %cst_14 = arith.constant dense<0.000000e+00> : vector<2x128xf32>
    %18 = tpu.matmul %16, %17, %cst_14 {dimension_numbers = #tpu.dot_dimension_numbers<[1], [0], [0], [1], [0, 0, 1, 1], [], []>} : vector<2x256xbf16>, vector<256x128xbf16>, vector<2x128xf32> -> vector<2x128xf32>
    %c0_15 = arith.constant 0 : index
    %c0_16 = arith.constant 0 : index
    %19 = vector.load %arg9[%c0_15, %c0_16] : memref<1x128xf32, #tpu.memory_space<vmem>>, vector<1x128xf32>
    %20 = vector.broadcast %19 : vector<1x128xf32> to vector<2x128xf32>
    %21 = arith.addf %18, %20 : vector<2x128xf32>
    %cst_17 = arith.constant 0.000000e+00 : f32
    %22 = vector.broadcast %cst_17 : f32 to vector<2x128xf32>
    %23 = arith.maximumf %21, %22 : vector<2x128xf32>
    %24 = tpu.iota {dimensions = array<i32: 1>} : vector<2x128xi32>
    %c16_i32 = arith.constant 16 : i32
    %c0_i32 = arith.constant 0 : i32
    %25 = arith.cmpi eq, %c16_i32, %c0_i32 : i32
    %c1_i32 = arith.constant 1 : i32
    %26 = arith.select %25, %c1_i32, %c16_i32 : i32
    %27 = vector.broadcast %26 : i32 to vector<2x128xi32>
    %28 = arith.remsi %24, %27 : vector<2x128xi32>
    %c0_i32_18 = arith.constant 0 : i32
    %29 = vector.broadcast %c0_i32_18 : i32 to vector<2x128xi32>
    %30 = arith.cmpi ne, %28, %29 : vector<2x128xi32>
    %c0_i32_19 = arith.constant 0 : i32
    %31 = vector.broadcast %c0_i32_19 : i32 to vector<2x128xi32>
    %32 = arith.cmpi slt, %28, %31 : vector<2x128xi32>
    %c0_i32_20 = arith.constant 0 : i32
    %33 = arith.cmpi slt, %26, %c0_i32_20 : i32
    %34 = vector.broadcast %33 : i1 to vector<2x128xi1>
    %35 = vector.broadcast %34 : vector<2x128xi1> to vector<2x128xi1>
    %36 = arith.xori %32, %35 : vector<2x128xi1>
    %37 = arith.andi %36, %30 : vector<2x128xi1>
    %38 = vector.broadcast %26 : i32 to vector<2x128xi32>
    %39 = arith.addi %28, %38 : vector<2x128xi32>
    %40 = arith.select %37, %39, %28 : vector<2x128xi1>, vector<2x128xi32>
    %c0_21 = arith.constant 0 : index
    %c0_22 = arith.constant 0 : index
    %41 = vector.load %arg3[%c0_21, %c0_22] : memref<128x128xbf16, #tpu.memory_space<vmem>>, vector<128x128xbf16>
    %c127_i32 = arith.constant 127 : i32
    %42 = tpu.dynamic_rotate %23 by %c127_i32 dim 1 : vector<2x128xf32>, i32 -> vector<2x128xf32>
    %c15_i32 = arith.constant 15 : i32
    %43 = tpu.dynamic_rotate %23 by %c15_i32 dim 1 : vector<2x128xf32>, i32 -> vector<2x128xf32>
    %c15_i32_23 = arith.constant 15 : i32
    %44 = vector.broadcast %c15_i32_23 : i32 to vector<2x128xi32>
    %45 = arith.cmpi slt, %40, %44 : vector<2x128xi32>
    %46 = arith.select %45, %42, %43 : vector<2x128xi1>, vector<2x128xf32>
    %47 = arith.maximumf %23, %46 : vector<2x128xf32>
    %c126_i32 = arith.constant 126 : i32
    %48 = tpu.dynamic_rotate %47 by %c126_i32 dim 1 : vector<2x128xf32>, i32 -> vector<2x128xf32>
    %c14_i32 = arith.constant 14 : i32
    %49 = tpu.dynamic_rotate %47 by %c14_i32 dim 1 : vector<2x128xf32>, i32 -> vector<2x128xf32>
    %c14_i32_24 = arith.constant 14 : i32
    %50 = vector.broadcast %c14_i32_24 : i32 to vector<2x128xi32>
    %51 = arith.cmpi slt, %40, %50 : vector<2x128xi32>
    %52 = arith.select %51, %48, %49 : vector<2x128xi1>, vector<2x128xf32>
    %53 = arith.maximumf %47, %52 : vector<2x128xf32>
    %c124_i32 = arith.constant 124 : i32
    %54 = tpu.dynamic_rotate %53 by %c124_i32 dim 1 : vector<2x128xf32>, i32 -> vector<2x128xf32>
    %c12_i32 = arith.constant 12 : i32
    %55 = tpu.dynamic_rotate %53 by %c12_i32 dim 1 : vector<2x128xf32>, i32 -> vector<2x128xf32>
    %c12_i32_25 = arith.constant 12 : i32
    %56 = vector.broadcast %c12_i32_25 : i32 to vector<2x128xi32>
    %57 = arith.cmpi slt, %40, %56 : vector<2x128xi32>
    %58 = arith.select %57, %54, %55 : vector<2x128xi1>, vector<2x128xf32>
    %59 = arith.maximumf %53, %58 : vector<2x128xf32>
    %c120_i32 = arith.constant 120 : i32
    %60 = tpu.dynamic_rotate %59 by %c120_i32 dim 1 : vector<2x128xf32>, i32 -> vector<2x128xf32>
    %c8_i32 = arith.constant 8 : i32
    %61 = tpu.dynamic_rotate %59 by %c8_i32 dim 1 : vector<2x128xf32>, i32 -> vector<2x128xf32>
    %c8_i32_26 = arith.constant 8 : i32
    %62 = vector.broadcast %c8_i32_26 : i32 to vector<2x128xi32>
    %63 = arith.cmpi slt, %40, %62 : vector<2x128xi32>
    %64 = arith.select %63, %60, %61 : vector<2x128xi1>, vector<2x128xf32>
    %65 = arith.maximumf %59, %64 : vector<2x128xf32>
    %66 = arith.subf %23, %65 : vector<2x128xf32>
    %67 = math.exp %66 : vector<2x128xf32>
    %68 = arith.truncf %67 : vector<2x128xf32> to vector<2x128xbf16>
    %69 = arith.extf %68 : vector<2x128xbf16> to vector<2x128xf32>
    %70 = arith.subf %67, %69 : vector<2x128xf32>
    %71 = arith.truncf %70 : vector<2x128xf32> to vector<2x128xbf16>
    %cst_27 = arith.constant dense<0.000000e+00> : vector<2x128xf32>
    %72 = tpu.matmul %68, %41, %cst_27 {dimension_numbers = #tpu.dot_dimension_numbers<[1], [0], [0], [1], [0, 0, 1, 1], [], []>} : vector<2x128xbf16>, vector<128x128xbf16>, vector<2x128xf32> -> vector<2x128xf32>
    %cst_28 = arith.constant dense<0.000000e+00> : vector<2x128xf32>
    %73 = tpu.matmul %71, %41, %cst_28 {dimension_numbers = #tpu.dot_dimension_numbers<[1], [0], [0], [1], [0, 0, 1, 1], [], []>} : vector<2x128xbf16>, vector<128x128xbf16>, vector<2x128xf32> -> vector<2x128xf32>
    %74 = arith.addf %72, %73 : vector<2x128xf32>
    %75 = arith.divf %67, %74 : vector<2x128xf32>
    %c0_29 = arith.constant 0 : index
    %c0_30 = arith.constant 0 : index
    %76 = vector.load %arg17[%c0_29, %c0_30] : memref<2x128xf32, #tpu.memory_space<vmem>>, vector<2x128xf32>
    tpu.vector_store %arg17[%c0_29, %c0_30], %75 {strides = array<i32>} : memref<2x128xf32, #tpu.memory_space<vmem>>, vector<2x128xf32>,
    %c0_31 = arith.constant 0 : index
    %c0_32 = arith.constant 0 : index
    %77 = vector.load %arg2[%c0_31, %c0_32] : memref<2x128xbf16, #tpu.memory_space<vmem>>, vector<2x128xbf16>
    %78 = arith.extf %77 : vector<2x128xbf16> to vector<2x128xf32>
    %79 = arith.addf %23, %78 : vector<2x128xf32>
    %cst_33 = arith.constant 2.000000e+00 : f32
    %80 = vector.broadcast %cst_33 : f32 to vector<2x128xf32>
    %81 = arith.mulf %79, %80 : vector<2x128xf32>
    %c127_i32_34 = arith.constant 127 : i32
    %82 = tpu.dynamic_rotate %81 by %c127_i32_34 dim 1 : vector<2x128xf32>, i32 -> vector<2x128xf32>
    %c15_i32_35 = arith.constant 15 : i32
    %83 = tpu.dynamic_rotate %81 by %c15_i32_35 dim 1 : vector<2x128xf32>, i32 -> vector<2x128xf32>
    %c15_i32_36 = arith.constant 15 : i32
    %84 = vector.broadcast %c15_i32_36 : i32 to vector<2x128xi32>
    %85 = arith.cmpi slt, %40, %84 : vector<2x128xi32>
    %86 = arith.select %85, %82, %83 : vector<2x128xi1>, vector<2x128xf32>
    %87 = arith.maximumf %81, %86 : vector<2x128xf32>
    %c126_i32_37 = arith.constant 126 : i32
    %88 = tpu.dynamic_rotate %87 by %c126_i32_37 dim 1 : vector<2x128xf32>, i32 -> vector<2x128xf32>
    %c14_i32_38 = arith.constant 14 : i32
    %89 = tpu.dynamic_rotate %87 by %c14_i32_38 dim 1 : vector<2x128xf32>, i32 -> vector<2x128xf32>
    %c14_i32_39 = arith.constant 14 : i32
    %90 = vector.broadcast %c14_i32_39 : i32 to vector<2x128xi32>
    %91 = arith.cmpi slt, %40, %90 : vector<2x128xi32>
    %92 = arith.select %91, %88, %89 : vector<2x128xi1>, vector<2x128xf32>
    %93 = arith.maximumf %87, %92 : vector<2x128xf32>
    %c124_i32_40 = arith.constant 124 : i32
    %94 = tpu.dynamic_rotate %93 by %c124_i32_40 dim 1 : vector<2x128xf32>, i32 -> vector<2x128xf32>
    %c12_i32_41 = arith.constant 12 : i32
    %95 = tpu.dynamic_rotate %93 by %c12_i32_41 dim 1 : vector<2x128xf32>, i32 -> vector<2x128xf32>
    %c12_i32_42 = arith.constant 12 : i32
    %96 = vector.broadcast %c12_i32_42 : i32 to vector<2x128xi32>
    %97 = arith.cmpi slt, %40, %96 : vector<2x128xi32>
    %98 = arith.select %97, %94, %95 : vector<2x128xi1>, vector<2x128xf32>
    %99 = arith.maximumf %93, %98 : vector<2x128xf32>
    %c120_i32_43 = arith.constant 120 : i32
    %100 = tpu.dynamic_rotate %99 by %c120_i32_43 dim 1 : vector<2x128xf32>, i32 -> vector<2x128xf32>
    %c8_i32_44 = arith.constant 8 : i32
    %101 = tpu.dynamic_rotate %99 by %c8_i32_44 dim 1 : vector<2x128xf32>, i32 -> vector<2x128xf32>
    %c8_i32_45 = arith.constant 8 : i32
    %102 = vector.broadcast %c8_i32_45 : i32 to vector<2x128xi32>
    %103 = arith.cmpi slt, %40, %102 : vector<2x128xi32>
    %104 = arith.select %103, %100, %101 : vector<2x128xi1>, vector<2x128xf32>
    %105 = arith.maximumf %99, %104 : vector<2x128xf32>
    %106 = arith.cmpf oeq, %81, %105 : vector<2x128xf32>
    %cst_46 = arith.constant 1.000000e+00 : f32
    %cst_47 = arith.constant 0.000000e+00 : f32
    %107 = vector.broadcast %cst_46 : f32 to vector<2x128xf32>
    %108 = vector.broadcast %cst_47 : f32 to vector<2x128xf32>
    %109 = arith.select %106, %107, %108 : vector<2x128xi1>, vector<2x128xf32>
    %110 = arith.truncf %109 : vector<2x128xf32> to vector<2x128xbf16>
    %c0_48 = arith.constant 0 : index
    %c0_49 = arith.constant 0 : index
    %111 = vector.load %arg10[%c0_48, %c0_49] : memref<128x256xbf16, #tpu.memory_space<vmem>>, vector<128x256xbf16>
    %cst_50 = arith.constant dense<0.000000e+00> : vector<2x256xf32>
    %112 = tpu.matmul %110, %111, %cst_50 {dimension_numbers = #tpu.dot_dimension_numbers<[1], [0], [0], [1], [0, 0, 1, 1], [], []>} : vector<2x128xbf16>, vector<128x256xbf16>, vector<2x256xf32> -> vector<2x256xf32>
    %c0_51 = arith.constant 0 : index
    %c0_52 = arith.constant 0 : index
    %113 = vector.load %arg11[%c0_51, %c0_52] : memref<1x256xf32, #tpu.memory_space<vmem>>, vector<1x256xf32>
    %114 = vector.broadcast %113 : vector<1x256xf32> to vector<2x256xf32>
    %115 = arith.addf %112, %114 : vector<2x256xf32>
    %cst_53 = arith.constant 0.000000e+00 : f32
    %116 = vector.broadcast %cst_53 : f32 to vector<2x256xf32>
    %117 = arith.maximumf %115, %116 : vector<2x256xf32>
    %118 = arith.truncf %117 : vector<2x256xf32> to vector<2x256xbf16>
    %c0_54 = arith.constant 0 : index
    %c0_55 = arith.constant 0 : index
    %119 = vector.load %arg12[%c0_54, %c0_55] : memref<256x512xbf16, #tpu.memory_space<vmem>>, vector<256x512xbf16>
    %cst_56 = arith.constant dense<0.000000e+00> : vector<2x512xf32>
    %120 = tpu.matmul %118, %119, %cst_56 {dimension_numbers = #tpu.dot_dimension_numbers<[1], [0], [0], [1], [0, 0, 1, 1], [], []>} : vector<2x256xbf16>, vector<256x512xbf16>, vector<2x512xf32> -> vector<2x512xf32>
    %c0_57 = arith.constant 0 : index
    %c0_58 = arith.constant 0 : index
    %121 = vector.load %arg13[%c0_57, %c0_58] : memref<1x512xf32, #tpu.memory_space<vmem>>, vector<1x512xf32>
    %122 = vector.broadcast %121 : vector<1x512xf32> to vector<2x512xf32>
    %123 = arith.addf %120, %122 : vector<2x512xf32>
    %cst_59 = arith.constant 0.000000e+00 : f32
    %124 = vector.broadcast %cst_59 : f32 to vector<2x512xf32>
    %125 = arith.maximumf %123, %124 : vector<2x512xf32>
    %126 = arith.truncf %125 : vector<2x512xf32> to vector<2x512xbf16>
    %c0_60 = arith.constant 0 : index
    %c0_61 = arith.constant 0 : index
    %127 = vector.load %arg14[%c0_60, %c0_61] : memref<512x768xbf16, #tpu.memory_space<vmem>>, vector<512x768xbf16>
    %cst_62 = arith.constant dense<0.000000e+00> : vector<2x768xf32>
    %128 = tpu.matmul %126, %127, %cst_62 {dimension_numbers = #tpu.dot_dimension_numbers<[1], [0], [0], [1], [0, 0, 1, 1], [], []>} : vector<2x512xbf16>, vector<512x768xbf16>, vector<2x768xf32> -> vector<2x768xf32>
    %c0_63 = arith.constant 0 : index
    %c0_64 = arith.constant 0 : index
    %129 = vector.load %arg15[%c0_63, %c0_64] : memref<1x768xf32, #tpu.memory_space<vmem>>, vector<1x768xf32>
    %130 = vector.broadcast %129 : vector<1x768xf32> to vector<2x768xf32>
    %131 = arith.addf %128, %130 : vector<2x768xf32>
    %cst_65 = arith.constant 0.000000e+00 : f32
    %132 = vector.broadcast %cst_65 : f32 to vector<2x768xf32>
    %133 = arith.subf %132, %131 : vector<2x768xf32>
    %134 = math.exp %133 : vector<2x768xf32>
    %cst_66 = arith.constant 1.000000e+00 : f32
    %135 = vector.broadcast %cst_66 : f32 to vector<2x768xf32>
    %136 = arith.addf %135, %134 : vector<2x768xf32>
    %cst_67 = arith.constant 1.000000e+00 : f32
    %137 = vector.broadcast %cst_67 : f32 to vector<2x768xf32>
    %138 = arith.divf %137, %136 : vector<2x768xf32>
    %139 = arith.truncf %138 : vector<2x768xf32> to vector<2x768xbf16>
    %c0_68 = arith.constant 0 : index
    %c0_69 = arith.constant 0 : index
    %140 = vector.load %arg16[%c0_68, %c0_69] : memref<2x768xbf16, #tpu.memory_space<vmem>>, vector<2x768xbf16>
    tpu.vector_store %arg16[%c0_68, %c0_69], %139 {strides = array<i32>} : memref<2x768xbf16, #tpu.memory_space<vmem>>, vector<2x768xbf16>,
    return
  }
  func.func @transform_0(%arg0: i32) -> (i32, i32) {
    %c0_i32 = arith.constant 0 : i32
    %c0_i32_0 = arith.constant 0 : i32
    return %arg0, %c0_i32 : i32, i32
  }
  func.func @transform_1(%arg0: i32) -> (i32, i32) {
    %c0_i32 = arith.constant 0 : i32
    %c0_i32_0 = arith.constant 0 : i32
    return %arg0, %c0_i32 : i32, i32
  }
  func.func @transform_2(%arg0: i32) -> (i32, i32) {
    %c0_i32 = arith.constant 0 : i32
    %c0_i32_0 = arith.constant 0 : i32
    %c0_i32_1 = arith.constant 0 : i32
    return %c0_i32, %c0_i32_0 : i32, i32
  }
  func.func @transform_3(%arg0: i32) -> (i32, i32) {
    %c0_i32 = arith.constant 0 : i32
    %c0_i32_0 = arith.constant 0 : i32
    %c0_i32_1 = arith.constant 0 : i32
    return %c0_i32, %c0_i32_0 : i32, i32
  }
  func.func @transform_4(%arg0: i32) -> (i32, i32) {
    %c0_i32 = arith.constant 0 : i32
    %c0_i32_0 = arith.constant 0 : i32
    %c0_i32_1 = arith.constant 0 : i32
    return %c0_i32, %c0_i32_0 : i32, i32
  }
  func.func @transform_5(%arg0: i32) -> (i32, i32) {
    %c0_i32 = arith.constant 0 : i32
    %c0_i32_0 = arith.constant 0 : i32
    %c0_i32_1 = arith.constant 0 : i32
    return %c0_i32, %c0_i32_0 : i32, i32
  }
  func.func @transform_6(%arg0: i32) -> (i32, i32) {
    %c0_i32 = arith.constant 0 : i32
    %c0_i32_0 = arith.constant 0 : i32
    %c0_i32_1 = arith.constant 0 : i32
    return %c0_i32, %c0_i32_0 : i32, i32
  }
  func.func @transform_7(%arg0: i32) -> (i32, i32) {
    %c0_i32 = arith.constant 0 : i32
    %c0_i32_0 = arith.constant 0 : i32
    %c0_i32_1 = arith.constant 0 : i32
    return %c0_i32, %c0_i32_0 : i32, i32
  }
  func.func @transform_8(%arg0: i32) -> (i32, i32) {
    %c0_i32 = arith.constant 0 : i32
    %c0_i32_0 = arith.constant 0 : i32
    %c0_i32_1 = arith.constant 0 : i32
    return %c0_i32, %c0_i32_0 : i32, i32
  }
  func.func @transform_9(%arg0: i32) -> (i32, i32) {
    %c0_i32 = arith.constant 0 : i32
    %c0_i32_0 = arith.constant 0 : i32
    %c0_i32_1 = arith.constant 0 : i32
    return %c0_i32, %c0_i32_0 : i32, i32
  }
  func.func @transform_10(%arg0: i32) -> (i32, i32) {
    %c0_i32 = arith.constant 0 : i32
    %c0_i32_0 = arith.constant 0 : i32
    %c0_i32_1 = arith.constant 0 : i32
    return %c0_i32, %c0_i32_0 : i32, i32
  }
  func.func @transform_11(%arg0: i32) -> (i32, i32) {
    %c0_i32 = arith.constant 0 : i32
    %c0_i32_0 = arith.constant 0 : i32
    %c0_i32_1 = arith.constant 0 : i32
    return %c0_i32, %c0_i32_0 : i32, i32
  }
  func.func @transform_12(%arg0: i32) -> (i32, i32) {
    %c0_i32 = arith.constant 0 : i32
    %c0_i32_0 = arith.constant 0 : i32
    %c0_i32_1 = arith.constant 0 : i32
    return %c0_i32, %c0_i32_0 : i32, i32
  }
  func.func @transform_13(%arg0: i32) -> (i32, i32) {
    %c0_i32 = arith.constant 0 : i32
    %c0_i32_0 = arith.constant 0 : i32
    %c0_i32_1 = arith.constant 0 : i32
    return %c0_i32, %c0_i32_0 : i32, i32
  }
  func.func @transform_14(%arg0: i32) -> (i32, i32) {
    %c0_i32 = arith.constant 0 : i32
    %c0_i32_0 = arith.constant 0 : i32
    %c0_i32_1 = arith.constant 0 : i32
    return %c0_i32, %c0_i32_0 : i32, i32
  }
  func.func @transform_15(%arg0: i32) -> (i32, i32) {
    %c0_i32 = arith.constant 0 : i32
    %c0_i32_0 = arith.constant 0 : i32
    return %arg0, %c0_i32 : i32, i32
  }
  func.func @transform_16(%arg0: i32) -> (i32, i32) {
    %c0_i32 = arith.constant 0 : i32
    %c0_i32_0 = arith.constant 0 : i32
    return %arg0, %c0_i32 : i32, i32
  }
}

</mosaic_0001>

<bundles_post_ra>
// kernel: tpu_custom_call.1
= control target key start
LH: loop header
LB: loop body
LE: loop exit
PB: predicated region body
PF: predicated region fallthrough
CT: control target
= control target key end

     0   :  { %s7058_s0 = inlined_call_operand.hbm [shape: bf16[2,768], index: 0, kind: input, shape index: {}]   ;;  %s7059_s1 = inlined_call_operand.hbm [shape: bf16[2,128], index: 1, kind: input, shape index: {}]   ;;  %s7060_s2 = inlined_call_operand.hbm [shape: bf16[128,128], index: 2, kind: input, shape index: {}]   ;;  %s7061_s3 = inlined_call_operand.hbm [shape: bf16[768,512], index: 3, kind: input, shape index: {}]   ;;  %s7062_s4 = inlined_call_operand.vmem [shape: f32[1,512], index: 4, kind: input, shape index: {}]   ;;  %s7063_s5 = inlined_call_operand.hbm [shape: bf16[512,256], index: 5, kind: input, shape index: {}]   ;;  %s7064_s6 = inlined_call_operand.vmem [shape: f32[1,256], index: 6, kind: input, shape index: {}]   ;;  %s7065_s7 = inlined_call_operand.hbm [shape: bf16[256,128], index: 7, kind: input, shape index: {}]   ;;  %s7066_s8 = inlined_call_operand.vmem [shape: f32[1,128], index: 8, kind: input, shape index: {}]   ;;  %s7067_s9 = inlined_call_operand.hbm [shape: bf16[128,256], index: 9, kind: input, shape index: {}]   ;;  %s7068_s10 = inlined_call_operand.vmem [shape: f32[1,256], index: 10, kind: input, shape index: {}]   ;;  %s7069_s11 = inlined_call_operand.hbm [shape: bf16[256,512], index: 11, kind: input, shape index: {}]   ;;  %s7070_s12 = inlined_call_operand.vmem [shape: f32[1,512], index: 12, kind: input, shape index: {}]   ;;  %s7071_s13 = inlined_call_operand.hbm [shape: bf16[512,768], index: 13, kind: input, shape index: {}]   ;;  %s7072_s14 = inlined_call_operand.vmem [shape: f32[1,768], index: 14, kind: input, shape index: {}]   ;;  %s7073_s15 = inlined_call_operand.hbm [shape: bf16[2,768], index: 15, kind: output, shape index: {0}]   ;;  %s7074_s16 = inlined_call_operand.hbm [shape: f32[2,128], index: 16, kind: output, shape index: {1}]  }
   0x1   :  { %7077 = sst [smem:[#allocation27_spill]] %s7058_s0 }
   0x2   :  { %22 = vsyncpa [#allocation3], 0 }
   0x3   :  { %23 = vsyncpa [#allocation6], 0 }
   0x4   :  { %24 = vsyncpa [#allocation9], 0 }
   0x5   :  { %25 = vsyncpa [#allocation12], 0 }
   0x6   :  { %26 = vsyncpa [#allocation15], 0 }
   0x7   :  { %27 = vsyncpa [#allocation4], 0 }
   0x8   :  { %28 = vsyncpa [#allocation19], 0  ;;  %s6559_s21 = smov [#allocation5]   ;;  %s6560_s23 = smov [#allocation8]  }
   0x9   :  { %s45_s22 = sshll.u32 %s6559_s21, 4  ;;  %s66_s24 = sshll.u32 %s6560_s23, 4  ;;  %s46_s22 = int_to_ptr.vmem [resolvable:$true] %s45_s22  ;;  %s6675_s24 = int_to_ptr.vmem [resolvable:$true] %s66_s24 }
   0xa   :  { %s6303_s27 = scalar_lea.hbm %s7059_s1, 16 }
   0xb   :  { %p6304_p0 = scmp.ne.s32.totalorder %s7059_s1, %s6303_s27  ;;  %p6307_p1 = scmp.lt.u32.totalorder %s6303_s27, %s7059_s1 }
   0xd   :  { %p6309_p2 = pnand %p6307_p1, %p6304_p0 }
   0xf   :  { %6312 = shalt.err (!%p6309_p2)
}
  0x10   :  { %s6313_s17 = scalar_lea.vmem %s46_s22, 16  ;;  %s6317_s18 = scalar_lea.vmem %s46_s22, 32 }
  0x11   :  { %p6314_p3 = scmp.ne.s32.totalorder %s46_s22, %s6313_s17  ;;  %p6318_p4 = scmp.lt.s32.totalorder %s46_s22, %s46_s22 }
  0x12   :  { %p6319_p5 = scmp.lt.s32.totalorder %s6317_s18, %s6313_s17 }
  0x14   :  { %p6320_p6 = por %p6319_p5, %p6318_p4 }
  0x16   :  { %p6321_p7 = pnand %p6320_p6, %p6314_p3 }
  0x18   :  { %6324 = shalt.err (!%p6321_p7)
}
  0x19   :  { %48 = dma.hbm_to_vmem [thread:$0]  %s7059_s1, 16, %s46_s22, [#allocation6]  }
  0x1a   :  { %s6325_s25 = scalar_lea.hbm %s7061_s3, 24576 }
  0x1b   :  { %p6326_p8 = scmp.ne.s32.totalorder %s7061_s3, %s6325_s25  ;;  %p6329_p9 = scmp.lt.u32.totalorder %s6325_s25, %s7061_s3 }
  0x1d   :  { %p6331_p10 = pnand %p6329_p9, %p6326_p8 }
  0x1f   :  { %6334 = shalt.err (!%p6331_p10)
}
  0x20   :  { %s6335_s30 = scalar_lea.vmem %s6675_s24, 24576  ;;  %p6340_p12 = scmp.lt.s32.totalorder %s6675_s24, %s6675_s24 }
  0x21   :  { %p6336_p11 = scmp.ne.s32.totalorder %s6675_s24, %s6335_s30  ;;  %p6341_p13 = scmp.lt.s32.totalorder %s6335_s30, %s6335_s30 }
  0x23   :  { %p6342_p0 = por %p6341_p13, %p6340_p12 }
  0x25   :  { %p6343_p1 = pnand %p6342_p0, %p6336_p11 }
  0x27   :  { %6346 = shalt.err (!%p6343_p1)
}
  0x28   :  { %s6561_s1 = smov 256   ;;  %s6562_s22 = smov 16  }
  0x29   :  { %72 = dma.hbm_to_vmem [thread:$0]  %s7061_s3, 24576, %s6675_s24, [#allocation9], %s6561_s1, %s6561_s1, %s6562_s22  }
  0x2a   :  { %s6563_s18 = smov [#allocation11]   ;;  %s6564_s20 = smov [#allocation14]  }
  0x2b   :  { %s94_s19 = sshll.u32 %s6563_s18, 4  ;;  %s122_s21 = sshll.u32 %s6564_s20, 4  ;;  %s95_s19 = int_to_ptr.vmem [resolvable:$true] %s94_s19  ;;  %s6709_s21 = int_to_ptr.vmem [resolvable:$true] %s122_s21 }
  0x2c   :  { %s6347_s26 = scalar_lea.hbm %s7065_s7, 2048 }
  0x2d   :  { %p6348_p2 = scmp.ne.s32.totalorder %s7065_s7, %s6347_s26  ;;  %p6351_p3 = scmp.lt.u32.totalorder %s6347_s26, %s7065_s7 }
  0x2f   :  { %p6353_p4 = pnand %p6351_p3, %p6348_p2 }
  0x31   :  { %6356 = shalt.err (!%p6353_p4)
}
  0x32   :  { %s6357_s3 = scalar_lea.vmem %s95_s19, 2048  ;;  %p6362_p6 = scmp.lt.s32.totalorder %s95_s19, %s95_s19 }
  0x33   :  { %p6358_p5 = scmp.ne.s32.totalorder %s95_s19, %s6357_s3  ;;  %p6363_p7 = scmp.lt.s32.totalorder %s6357_s3, %s6357_s3 }
  0x35   :  { %p6364_p8 = por %p6363_p7, %p6362_p6 }
  0x37   :  { %p6365_p9 = pnand %p6364_p8, %p6358_p5 }
  0x39   :  { %6368 = shalt.err (!%p6365_p9)
}
  0x3a   :  { %s7076_s24 = smov 64   ;;  %s6566_s0 = smov 4  }
  0x3b   :  { %100 = dma.hbm_to_vmem [thread:$0]  %s7065_s7, 2048, %s95_s19, [#allocation12], %s7076_s24, %s7076_s24, %s6566_s0  }
  0x3c   :  { %s6369_s25 = scalar_lea.hbm %s7069_s11, 8192 }
  0x3d   :  { %p6370_p10 = scmp.ne.s32.totalorder %s7069_s11, %s6369_s25  ;;  %p6373_p11 = scmp.lt.u32.totalorder %s6369_s25, %s7069_s11 }
  0x3f   :  { %p6375_p12 = pnand %p6373_p11, %p6370_p10 }
  0x41   :  { %6378 = shalt.err (!%p6375_p12)
}
  0x42   :  { %s6379_s30 = scalar_lea.vmem %s6709_s21, 8192  ;;  %p6384_p0 = scmp.lt.s32.totalorder %s6709_s21, %s6709_s21 }
  0x43   :  { %p6380_p13 = scmp.ne.s32.totalorder %s6709_s21, %s6379_s30  ;;  %p6385_p1 = scmp.lt.s32.totalorder %s6379_s30, %s6379_s30 }
  0x45   :  { %p6386_p2 = por %p6385_p1, %p6384_p0 }
  0x47   :  { %p6387_p3 = pnand %p6386_p2, %p6380_p13 }
  0x49   :  { %6390 = shalt.err (!%p6387_p3)
}
  0x4a   :  { %128 = dma.hbm_to_vmem [thread:$0]  %s7069_s11, 8192, %s6709_s21, [#allocation15], %s6561_s1, %s6561_s1, %s6562_s22  }
  0x4b   :  { %s6567_s3 = smov [#allocation2]   ;;  %s6568_s18 = smov [#allocation7]  }
  0x4c   :  { %s35_s17 = sshll.u32 %s6567_s3, 4  ;;  %s54_s20 = sshll.u32 %s6568_s18, 4  ;;  %s36_s17 = int_to_ptr.vmem [resolvable:$true] %s35_s17  ;;  %s6746_s20 = int_to_ptr.vmem [resolvable:$true] %s54_s20 }
  0x4d   :  { %s7078_s26 = sld [smem:[#allocation27_spill]] }
  0x53   :  { %s6391_s27 = scalar_lea.hbm %s7078_s26, 96 }
  0x54   :  { %p6392_p4 = scmp.ne.s32.totalorder %s7078_s26, %s6391_s27  ;;  %p6395_p5 = scmp.lt.u32.totalorder %s6391_s27, %s7078_s26 }
  0x56   :  { %p6397_p6 = pnand %p6395_p5, %p6392_p4 }
  0x58   :  { %6400 = shalt.err (!%p6397_p6)
}
  0x59   :  { %s6401_s11 = scalar_lea.vmem %s36_s17, 96  ;;  %p6406_p8 = scmp.lt.s32.totalorder %s36_s17, %s36_s17 }
  0x5a   :  { %p6402_p7 = scmp.ne.s32.totalorder %s36_s17, %s6401_s11  ;;  %p6407_p9 = scmp.lt.s32.totalorder %s6401_s11, %s6401_s11 }
  0x5c   :  { %p6408_p10 = por %p6407_p9, %p6406_p8 }
  0x5e   :  { %p6409_p11 = pnand %p6408_p10, %p6402_p7 }
  0x60   :  { %6412 = shalt.err (!%p6409_p11)
}
  0x61   :  { %38 = dma.hbm_to_vmem [thread:$0]  %s7078_s26, 96, %s36_s17, [#allocation3]  }
  0x62   :  { %s6413_s19 = scalar_lea.hbm %s7060_s2, 1024 }
  0x63   :  { %p6414_p12 = scmp.ne.s32.totalorder %s7060_s2, %s6413_s19  ;;  %p6417_p13 = scmp.lt.u32.totalorder %s6413_s19, %s7060_s2 }
  0x65   :  { %p6419_p0 = pnand %p6417_p13, %p6414_p12 }
  0x67   :  { %6422 = shalt.err (!%p6419_p0)
}
  0x68   :  { %s6423_s25 = scalar_lea.vmem %s6746_s20, 1024  ;;  %p6428_p2 = scmp.lt.s32.totalorder %s6746_s20, %s6746_s20 }
  0x69   :  { %p6424_p1 = scmp.ne.s32.totalorder %s6746_s20, %s6423_s25  ;;  %p6429_p3 = scmp.lt.s32.totalorder %s6423_s25, %s6423_s25 }
  0x6b   :  { %p6430_p4 = por %p6429_p3, %p6428_p2 }
  0x6d   :  { %p6431_p5 = pnand %p6430_p4, %p6424_p1 }
  0x6f   :  { %6434 = shalt.err (!%p6431_p5)
}
  0x70   :  { %s7079_s17 = smov 64   ;;  %s6569_s28 = smov [#allocation10]  }
  0x71   :  { %60 = dma.hbm_to_vmem [thread:$0]  %s7060_s2, 1024, %s6746_s20, [#allocation6], %s7079_s17, %s7079_s17, %s6566_s0  }
  0x72   :  { %s80_s29 = sshll.u32 %s6569_s28, 4  ;;  %s6435_s1 = scalar_lea.hbm %s7063_s5, 8192  ;;  %s81_s29 = int_to_ptr.vmem [resolvable:$true] %s80_s29 }
  0x73   :  { %p6436_p6 = scmp.ne.s32.totalorder %s7063_s5, %s6435_s1  ;;  %p6439_p7 = scmp.lt.u32.totalorder %s6435_s1, %s7063_s5 }
  0x75   :  { %p6441_p8 = pnand %p6439_p7, %p6436_p6 }
  0x77   :  { %6444 = shalt.err (!%p6441_p8)
}
  0x78   :  { %s6445_s3 = scalar_lea.vmem %s81_s29, 8192  ;;  %p6450_p10 = scmp.lt.s32.totalorder %s81_s29, %s81_s29 }
  0x79   :  { %p6446_p9 = scmp.ne.s32.totalorder %s81_s29, %s6445_s3  ;;  %p6451_p11 = scmp.lt.s32.totalorder %s6445_s3, %s6445_s3 }
  0x7b   :  { %p6452_p12 = por %p6451_p11, %p6450_p10 }
  0x7d   :  { %p6453_p13 = pnand %p6452_p12, %p6446_p9 }
  0x7f   :  { %6456 = shalt.err (!%p6453_p13)
}
  0x80   :  { %s6570_s2 = smov 128   ;;  %s6571_s0 = smov 8  }
  0x81   :  { %86 = dma.hbm_to_vmem [thread:$0]  %s7063_s5, 8192, %s81_s29, [#allocation9], %s6570_s2, %s6570_s2, %s6571_s0  }
  0x82   :  { %s6572_s18 = smov [#allocation13]   ;;  %s6573_s25 = smov [#allocation16]  }
  0x83   :  { %s108_s23 = sshll.u32 %s6572_s18, 4  ;;  %s136_s17 = sshll.u32 %s6573_s25, 4  ;;  %s109_s23 = int_to_ptr.vmem [resolvable:$true] %s108_s23  ;;  %s137_s17 = int_to_ptr.vmem [resolvable:$true] %s136_s17 }
  0x84   :  { %s6457_s28 = scalar_lea.hbm %s7067_s9, 2048 }
  0x85   :  { %p6458_p0 = scmp.ne.s32.totalorder %s7067_s9, %s6457_s28  ;;  %p6461_p1 = scmp.lt.u32.totalorder %s6457_s28, %s7067_s9 }
  0x87   :  { %p6463_p2 = pnand %p6461_p1, %p6458_p0 }
  0x89   :  { %6466 = shalt.err (!%p6463_p2)
}
  0x8a   :  { %s6467_s5 = scalar_lea.vmem %s109_s23, 2048  ;;  %p6472_p4 = scmp.lt.s32.totalorder %s109_s23, %s109_s23 }
  0x8b   :  { %p6468_p3 = scmp.ne.s32.totalorder %s109_s23, %s6467_s5  ;;  %p6473_p5 = scmp.lt.s32.totalorder %s6467_s5, %s6467_s5 }
  0x8d   :  { %p6474_p6 = por %p6473_p5, %p6472_p4 }
  0x8f   :  { %p6475_p7 = pnand %p6474_p6, %p6468_p3 }
  0x91   :  { %6478 = shalt.err (!%p6475_p7)
}
  0x92   :  { %114 = dma.hbm_to_vmem [thread:$0]  %s7067_s9, 2048, %s109_s23, [#allocation12], %s6570_s2, %s6570_s2, %s6571_s0  }
  0x93   :  { %s6479_s3 = scalar_lea.hbm %s7071_s13, 24576 }
  0x94   :  { %p6480_p8 = scmp.ne.s32.totalorder %s7071_s13, %s6479_s3  ;;  %p6483_p9 = scmp.lt.u32.totalorder %s6479_s3, %s7071_s13 }
  0x96   :  { %p6485_p10 = pnand %p6483_p9, %p6480_p8 }
  0x98   :  { %6488 = shalt.err (!%p6485_p10)
}
  0x99   :  { %s6489_s26 = scalar_lea.vmem %s137_s17, 24576  ;;  %p6494_p12 = scmp.lt.s32.totalorder %s137_s17, %s137_s17 }
  0x9a   :  { %p6490_p11 = scmp.ne.s32.totalorder %s137_s17, %s6489_s26  ;;  %p6495_p13 = scmp.lt.s32.totalorder %s6489_s26, %s6489_s26 }
  0x9c   :  { %p6496_p0 = por %p6495_p13, %p6494_p12 }
  0x9e   :  { %p6497_p1 = pnand %p6496_p0, %p6490_p11 }
  0xa0   :  { %6500 = shalt.err (!%p6497_p1)
}
  0xa1   :  { %s6574_s9 = smov 384   ;;  %s6575_s2 = smov 24  }
  0xa2   :  { %142 = dma.hbm_to_vmem [thread:$0]  %s7071_s13, 24576, %s137_s17, [#allocation15], %s6574_s9, %s6574_s9, %s6575_s2  }
  0xa3   :  { %6545 = dma.done.wait [#allocation3], 96  }
  0xa4   :  { %6546 = vsyncadd [#allocation3], 4294967200 }
  0xa5   :  { %6547 = dma.done.wait [#allocation6], 1040  }
  0xa6   :  { %6548 = vsyncadd [#allocation6], 4294966256 }
  0xa7   :  { %6549 = dma.done.wait [#allocation9], 32768  }
  0xa8   :  { %6550 = vsyncadd [#allocation9], 4294934528 }
  0xa9   :  { %6551 = dma.done.wait [#allocation12], 4096  }
  0xaa   :  { %6552 = vsyncadd [#allocation12], 4294963200 }
  0xab   :  { %6553 = dma.done.wait [#allocation15], 32768  }
  0xac   :  { %6554 = vsyncadd [#allocation15], 4294934528  ;;  %v5458_v0 = vld [vmem:[#allocation8 + $0x4] ss:$16 sps:$4 sm:$0xff]   ;;  %v5462_v2 = vld [vmem:[#allocation8] ss:$16 sps:$4 sm:$0xff]   ;;  %v368_v36 = vlaneseq }
  0xad   :  { %v5460_v1 = vld [vmem:[#allocation8 + $0x204] ss:$16 sps:$4 sm:$0xff]   ;;  %1402 = vmatprep.subr.bf16.mxu1 %v5458_v0  ;;  %v5463_v3 = vld [vmem:[#allocation8 + $0x200] ss:$16 sps:$4 sm:$0xff]   ;;  %v6576_v37 = vmov 1966171168  }
  0xae   :  { %1443 = vmatprep.subr.bf16.mxu0 %v5460_v1  ;;  %v5464_v4 = vld [vmem:[#allocation8 + $0x24] ss:$16 sps:$4 sm:$0xff]   ;;  %1403 = vmatpush1.bf16.msra.mxu1 %v5462_v2  ;;  %v5468_v6 = vld [vmem:[#allocation8 + $0x20] ss:$16 sps:$4 sm:$0xff]   ;;  %v391_v38 = vunpack.c.l.s4 %v6576_v37  ;;  %v6819_v42 = vshrl.u32 %v368_v36, 7  ;;  %s6578_s1 = smov 15  }
  0xaf   :  { %1444 = vmatpush1.bf16.msra.mxu0 %v5463_v3  ;;  %v5466_v5 = vld [vmem:[#allocation8 + $0x224] ss:$16 sps:$4 sm:$0xff]   ;;  %1404 = vmatprep.subr.bf16.mxu1 %v5464_v4  ;;  %v5469_v7 = vld [vmem:[#allocation8 + $0x220] ss:$16 sps:$4 sm:$0xff]   ;;  %v173_v52 = vld [vmem:[#allocation2] sm:$0x3f] }
  0xb0   :  { %1445 = vmatprep.subr.bf16.mxu0 %v5466_v5  ;;  %v5470_v8 = vld [vmem:[#allocation8 + $0x44] ss:$16 sps:$4 sm:$0xff]   ;;  %v5474_v10 = vld [vmem:[#allocation8 + $0x40] ss:$16 sps:$4 sm:$0xff]   ;;  %v392_v43 = vunpack.c.0.s8 %v391_v38  ;;  %v389_v5 = vcombine.high %v173_v52, %v173_v52  ;;  %v5581_v37 = vld [vmem:[#allocation8 + $0x88] ss:$16 sps:$4 sm:$0xff]  }
  0xb1   :  { %v5472_v9 = vld [vmem:[#allocation8 + $0x244] ss:$16 sps:$4 sm:$0xff]   ;;  %v5475_v11 = vld [vmem:[#allocation8 + $0x240] ss:$16 sps:$4 sm:$0xff]   ;;  %s6580_s22 = smov 14   ;;  %s6582_s5 = smov 12  }
  0xb2   :  { %1405 = vmatpush1.bf16.msra.mxu1 %v5468_v6  ;;  %v5476_v12 = vld [vmem:[#allocation8 + $0x64] ss:$16 sps:$4 sm:$0xff]   ;;  %v5480_v14 = vld [vmem:[#allocation8 + $0x60] ss:$16 sps:$4 sm:$0xff]   ;;  %v6822_v49 = vsub.s32 %v392_v43, %v6819_v42  ;;  %s6583_s29 = smov 124   ;;  %vm6584_vm3 = vmmov 0  }
  0xb3   :  { %1446 = vmatpush1.bf16.msra.mxu0 %v5469_v7  ;;  %1406 = vmatprep.subr.bf16.mxu1 %v5470_v8  ;;  %v5478_v13 = vld [vmem:[#allocation8 + $0x264] ss:$16 sps:$4 sm:$0xff]   ;;  %v5481_v15 = vld [vmem:[#allocation8 + $0x260] ss:$16 sps:$4 sm:$0xff]   ;;  %s6585_s21 = smov 120  }
  0xb4   :  { %1447 = vmatprep.subr.bf16.mxu0 %v5472_v9  ;;  %v5482_v16 = vld [vmem:[#allocation8 + $0x84] ss:$16 sps:$4 sm:$0xff]   ;;  %v5486_v18 = vld [vmem:[#allocation8 + $0x80] ss:$16 sps:$4 sm:$0xff]   ;;  %v396_v54 = vrot.slane %v173_v52, %v6822_v49 }
  0xb5   :  { %v5484_v17 = vld [vmem:[#allocation8 + $0x284] ss:$16 sps:$4 sm:$0xff]   ;;  %v5487_v19 = vld [vmem:[#allocation8 + $0x280] ss:$16 sps:$4 sm:$0xff]  }
  0xb6   :  { %1407 = vmatpush1.bf16.msra.mxu1 %v5474_v10  ;;  %v5488_v20 = vld [vmem:[#allocation8 + $0xa4] ss:$16 sps:$4 sm:$0xff]   ;;  %v5492_v22 = vld [vmem:[#allocation8 + $0xa0] ss:$16 sps:$4 sm:$0xff]   ;;  %v404_v58 = vcombine.high %v396_v54, %v396_v54  ;;  %v6830_v10 = vrot.slane %v389_v5, %v6822_v49 }
  0xb7   :  { %1448 = vmatpush1.bf16.msra.mxu0 %v5475_v11  ;;  %1408 = vmatprep.subr.bf16.mxu1 %v5476_v12  ;;  %v5490_v21 = vld [vmem:[#allocation8 + $0x2a4] ss:$16 sps:$4 sm:$0xff]   ;;  %v5493_v23 = vld [vmem:[#allocation8 + $0x2a0] ss:$16 sps:$4 sm:$0xff]   ;;  %v6833_v12 = vrot.slane %v396_v54, %v6822_v49 }
  0xb8   :  { %1449 = vmatprep.subr.bf16.mxu0 %v5478_v13  ;;  %v5494_v24 = vld [vmem:[#allocation8 + $0xc4] ss:$16 sps:$4 sm:$0xff]   ;;  %v5498_v26 = vld [vmem:[#allocation8 + $0xc0] ss:$16 sps:$4 sm:$0xff]   ;;  %v426_v60 = vrot.slane %v404_v58, %v6822_v49 }
  0xb9   :  { %v5496_v25 = vld [vmem:[#allocation8 + $0x2c4] ss:$16 sps:$4 sm:$0xff]   ;;  %v5499_v27 = vld [vmem:[#allocation8 + $0x2c0] ss:$16 sps:$4 sm:$0xff]  }
  0xba   :  { %1409 = vmatpush1.bf16.msra.mxu1 %v5480_v14  ;;  %v5500_v28 = vld [vmem:[#allocation8 + $0xe4] ss:$16 sps:$4 sm:$0xff]   ;;  %v5504_v30 = vld [vmem:[#allocation8 + $0xe0] ss:$16 sps:$4 sm:$0xff]   ;;  %v6826_v0 = vcombine.high %v426_v60, %v426_v60  ;;  %1434 = vmatprep.mubr.bf16.mxu1 %v426_v60 }
  0xbb   :  { %1450 = vmatpush1.bf16.msra.mxu0 %v5481_v15  ;;  %1410 = vmatprep.subr.bf16.mxu1 %v5482_v16  ;;  %v5502_v29 = vld [vmem:[#allocation8 + $0x2e4] ss:$16 sps:$4 sm:$0xff]   ;;  %v5505_v31 = vld [vmem:[#allocation8 + $0x2e0] ss:$16 sps:$4 sm:$0xff]   ;;  %v5559_v15 = vld [vmem:[#allocation8 + $0xc] ss:$16 sps:$4 sm:$0xff]   ;;  %v405_v16 = vcombine.high %v6830_v10, %v6830_v10 }
  0xbc   :  { %1451 = vmatprep.subr.bf16.mxu0 %v5484_v17  ;;  %v5506_v32 = vld [vmem:[#allocation8 + $0x104] ss:$16 sps:$4 sm:$0xff]   ;;  %v5510_v34 = vld [vmem:[#allocation8 + $0x100] ss:$16 sps:$4 sm:$0xff]   ;;  %1475 = vmatprep.mubr.bf16.mxu0 %v6826_v0 }
  0xbd   :  { %v5508_v33 = vld [vmem:[#allocation8 + $0x304] ss:$16 sps:$4 sm:$0xff]   ;;  %v5511_v35 = vld [vmem:[#allocation8 + $0x300] ss:$16 sps:$4 sm:$0xff]  }
  0xbe   :  { %1411 = vmatpush1.bf16.msra.mxu1 %v5486_v18  ;;  %v5512_v39 = vld [vmem:[#allocation8 + $0x124] ss:$16 sps:$4 sm:$0xff]   ;;  %v5516_v41 = vld [vmem:[#allocation8 + $0x120] ss:$16 sps:$4 sm:$0xff]   ;;  %v6839_v18 = vcombine.high %v6833_v12, %v6833_v12 }
  0xbf   :  { %1452 = vmatpush1.bf16.msra.mxu0 %v5487_v19  ;;  %1412 = vmatprep.subr.bf16.mxu1 %v5488_v20  ;;  %v5514_v40 = vld [vmem:[#allocation8 + $0x324] ss:$16 sps:$4 sm:$0xff]   ;;  %v5517_v44 = vld [vmem:[#allocation8 + $0x320] ss:$16 sps:$4 sm:$0xff]   ;;  %v5557_v19 = vld [vmem:[#allocation8 + $0x8] ss:$16 sps:$4 sm:$0xff]  }
  0xc0   :  { %1453 = vmatprep.subr.bf16.mxu0 %v5490_v21  ;;  %v5518_v45 = vld [vmem:[#allocation8 + $0x144] ss:$16 sps:$4 sm:$0xff]   ;;  %v5522_v47 = vld [vmem:[#allocation8 + $0x140] ss:$16 sps:$4 sm:$0xff]   ;;  %v5565_v21 = vld [vmem:[#allocation8 + $0x2c] ss:$16 sps:$4 sm:$0xff]  }
  0xc1   :  { %v5520_v46 = vld [vmem:[#allocation8 + $0x344] ss:$16 sps:$4 sm:$0xff]   ;;  %v5523_v48 = vld [vmem:[#allocation8 + $0x340] ss:$16 sps:$4 sm:$0xff]  }
  0xc2   :  { %1413 = vmatpush1.bf16.msra.mxu1 %v5492_v22  ;;  %v5524_v50 = vld [vmem:[#allocation8 + $0x164] ss:$16 sps:$4 sm:$0xff]   ;;  %v5528_v53 = vld [vmem:[#allocation8 + $0x160] ss:$16 sps:$4 sm:$0xff]   ;;  %v6842_v22 = vrot.slane %v405_v16, %v6822_v49  ;;  %v5643_v16 = vld [vmem:[#allocation8 + $0x1cc] ss:$16 sps:$4 sm:$0xff]  }
  0xc3   :  { %1454 = vmatpush1.bf16.msra.mxu0 %v5493_v23  ;;  %1414 = vmatprep.subr.bf16.mxu1 %v5494_v24  ;;  %v5526_v51 = vld [vmem:[#allocation8 + $0x364] ss:$16 sps:$4 sm:$0xff]   ;;  %v5529_v55 = vld [vmem:[#allocation8 + $0x360] ss:$16 sps:$4 sm:$0xff]   ;;  %v5563_v24 = vld [vmem:[#allocation8 + $0x28] ss:$16 sps:$4 sm:$0xff]  }
  0xc4   :  { %1455 = vmatprep.subr.bf16.mxu0 %v5496_v25  ;;  %v5530_v56 = vld [vmem:[#allocation8 + $0x184] ss:$16 sps:$4 sm:$0xff]   ;;  %v5534_v59 = vld [vmem:[#allocation8 + $0x180] ss:$16 sps:$4 sm:$0xff]  }
  0xc5   :  { %v5532_v57 = vld [vmem:[#allocation8 + $0x384] ss:$16 sps:$4 sm:$0xff]   ;;  %v5535_v61 = vld [vmem:[#allocation8 + $0x380] ss:$16 sps:$4 sm:$0xff]  }
  0xc6   :  { %1415 = vmatpush1.bf16.msra.mxu1 %v5498_v26  ;;  %v5536_v62 = vld [vmem:[#allocation8 + $0x1a4] ss:$16 sps:$4 sm:$0xff]   ;;  %v5540_v1 = vld [vmem:[#allocation8 + $0x1a0] ss:$16 sps:$4 sm:$0xff]   ;;  %v5571_v26 = vld [vmem:[#allocation8 + $0x4c] ss:$16 sps:$4 sm:$0xff]  }
  0xc7   :  { %1456 = vmatpush1.bf16.msra.mxu0 %v5499_v27  ;;  %1416 = vmatprep.subr.bf16.mxu1 %v5500_v28  ;;  %v5538_v63 = vld [vmem:[#allocation8 + $0x3a4] ss:$16 sps:$4 sm:$0xff]   ;;  %v5541_v2 = vld [vmem:[#allocation8 + $0x3a0] ss:$16 sps:$4 sm:$0xff]   ;;  %v5569_v28 = vld [vmem:[#allocation8 + $0x48] ss:$16 sps:$4 sm:$0xff]  }
  0xc8   :  { %1457 = vmatprep.subr.bf16.mxu0 %v5502_v29  ;;  %v5542_v3 = vld [vmem:[#allocation8 + $0x1c4] ss:$16 sps:$4 sm:$0xff]   ;;  %v5546_v6 = vld [vmem:[#allocation8 + $0x1c0] ss:$16 sps:$4 sm:$0xff]  }
  0xc9   :  { %v5544_v4 = vld [vmem:[#allocation8 + $0x3c4] ss:$16 sps:$4 sm:$0xff]   ;;  %v5547_v7 = vld [vmem:[#allocation8 + $0x3c0] ss:$16 sps:$4 sm:$0xff]  }
  0xca   :  { %1417 = vmatpush1.bf16.msra.mxu1 %v5504_v30  ;;  %v5548_v8 = vld [vmem:[#allocation8 + $0x1e4] ss:$16 sps:$4 sm:$0xff]   ;;  %v5552_v11 = vld [vmem:[#allocation8 + $0x1e0] ss:$16 sps:$4 sm:$0xff]   ;;  %v5577_v30 = vld [vmem:[#allocation8 + $0x6c] ss:$16 sps:$4 sm:$0xff]  }
  0xcb   :  { %1458 = vmatpush1.bf16.msra.mxu0 %v5505_v31  ;;  %1418 = vmatprep.subr.bf16.mxu1 %v5506_v32  ;;  %v5550_v9 = vld [vmem:[#allocation8 + $0x3e4] ss:$16 sps:$4 sm:$0xff]   ;;  %v5553_v13 = vld [vmem:[#allocation8 + $0x3e0] ss:$16 sps:$4 sm:$0xff]   ;;  %v5575_v32 = vld [vmem:[#allocation8 + $0x68] ss:$16 sps:$4 sm:$0xff]  }
  0xcc   :  { %1459 = vmatprep.subr.bf16.mxu0 %v5508_v33  ;;  %v5556_v14 = vld [vmem:[#allocation8 + $0x404] ss:$16 sps:$4 sm:$0xff]   ;;  %v5554_v17 = vld [vmem:[#allocation8 + $0x400] ss:$16 sps:$4 sm:$0xff]  }
  0xcd   :  { %v5562_v20 = vld [vmem:[#allocation8 + $0x424] ss:$16 sps:$4 sm:$0xff]   ;;  %v5560_v23 = vld [vmem:[#allocation8 + $0x420] ss:$16 sps:$4 sm:$0xff]  }
  0xce   :  { %1419 = vmatpush1.bf16.msra.mxu1 %v5510_v34  ;;  %v5568_v25 = vld [vmem:[#allocation8 + $0x444] ss:$16 sps:$4 sm:$0xff]   ;;  %v5566_v27 = vld [vmem:[#allocation8 + $0x440] ss:$16 sps:$4 sm:$0xff]   ;;  %v5583_v34 = vld [vmem:[#allocation8 + $0x8c] ss:$16 sps:$4 sm:$0xff]  }
  0xcf   :  { %1460 = vmatpush1.bf16.msra.mxu0 %v5511_v35  ;;  %1420 = vmatprep.subr.bf16.mxu1 %v5512_v39  ;;  %v5574_v29 = vld [vmem:[#allocation8 + $0x464] ss:$16 sps:$4 sm:$0xff]   ;;  %v5572_v31 = vld [vmem:[#allocation8 + $0x460] ss:$16 sps:$4 sm:$0xff]   ;;  %v5589_v39 = vld [vmem:[#allocation8 + $0xac] ss:$16 sps:$4 sm:$0xff]  }
  0xd0   :  { %1461 = vmatprep.subr.bf16.mxu0 %v5514_v40  ;;  %v5580_v33 = vld [vmem:[#allocation8 + $0x484] ss:$16 sps:$4 sm:$0xff]   ;;  %v5578_v35 = vld [vmem:[#allocation8 + $0x480] ss:$16 sps:$4 sm:$0xff]  }
  0xd1   :  { %v5586_v38 = vld [vmem:[#allocation8 + $0x4a4] ss:$16 sps:$4 sm:$0xff]   ;;  %v5584_v40 = vld [vmem:[#allocation8 + $0x4a0] ss:$16 sps:$4 sm:$0xff]  }
  0xd2   :  { %1421 = vmatpush1.bf16.msra.mxu1 %v5516_v41  ;;  %v5587_v41 = vld [vmem:[#allocation8 + $0xa8] ss:$16 sps:$4 sm:$0xff]   ;;  %v5592_v43 = vld [vmem:[#allocation8 + $0x4c4] ss:$16 sps:$4 sm:$0xff]   ;;  %v5602_v54 = vld [vmem:[#allocation8 + $0x500] ss:$16 sps:$4 sm:$0xff]  }
  0xd3   :  { %1462 = vmatpush1.bf16.msra.mxu0 %v5517_v44  ;;  %1422 = vmatprep.subr.bf16.mxu1 %v5518_v45  ;;  %v5595_v44 = vld [vmem:[#allocation8 + $0xcc] ss:$16 sps:$4 sm:$0xff]   ;;  %v5590_v45 = vld [vmem:[#allocation8 + $0x4c0] ss:$16 sps:$4 sm:$0xff]   ;;  %v5604_v52 = vld [vmem:[#allocation8 + $0x504] ss:$16 sps:$4 sm:$0xff]  }
  0xd4   :  { %1463 = vmatprep.subr.bf16.mxu0 %v5520_v46  ;;  %v5593_v46 = vld [vmem:[#allocation8 + $0xc8] ss:$16 sps:$4 sm:$0xff]   ;;  %v5608_v58 = vld [vmem:[#allocation8 + $0x520] ss:$16 sps:$4 sm:$0xff]   ;;  %v5628_v5 = vld [vmem:[#allocation8 + $0x584] ss:$16 sps:$4 sm:$0xff]  }
  0xd6   :  { %1423 = vmatpush1.bf16.msra.mxu1 %v5522_v47  ;;  %v5598_v47 = vld [vmem:[#allocation8 + $0x4e4] ss:$16 sps:$4 sm:$0xff]  }
  0xd7   :  { %1464 = vmatpush1.bf16.msra.mxu0 %v5523_v48  ;;  %1424 = vmatprep.subr.bf16.mxu1 %v5524_v50  ;;  %v5601_v48 = vld [vmem:[#allocation8 + $0xec] ss:$16 sps:$4 sm:$0xff]   ;;  %v5596_v50 = vld [vmem:[#allocation8 + $0x4e0] ss:$16 sps:$4 sm:$0xff]  }
  0xd8   :  { %1465 = vmatprep.subr.bf16.mxu0 %v5526_v51  ;;  %v5599_v51 = vld [vmem:[#allocation8 + $0xe8] ss:$16 sps:$4 sm:$0xff]  }
  0xda   :  { %1425 = vmatpush1.bf16.msra.mxu1 %v5528_v53  ;;  %v5607_v53 = vld [vmem:[#allocation8 + $0x10c] ss:$16 sps:$4 sm:$0xff]  }
  0xdb   :  { %1466 = vmatpush1.bf16.msra.mxu0 %v5529_v55  ;;  %1426 = vmatprep.subr.bf16.mxu1 %v5530_v56  ;;  %v5605_v55 = vld [vmem:[#allocation8 + $0x108] ss:$16 sps:$4 sm:$0xff]   ;;  %v5610_v56 = vld [vmem:[#allocation8 + $0x524] ss:$16 sps:$4 sm:$0xff]  }
  0xdc   :  { %1467 = vmatprep.subr.bf16.mxu0 %v5532_v57  ;;  %v5613_v57 = vld [vmem:[#allocation8 + $0x12c] ss:$16 sps:$4 sm:$0xff]  }
  0xde   :  { %1427 = vmatpush1.bf16.msra.mxu1 %v5534_v59  ;;  %v5611_v59 = vld [vmem:[#allocation8 + $0x128] ss:$16 sps:$4 sm:$0xff]  }
  0xdf   :  { %1468 = vmatpush1.bf16.msra.mxu0 %v5535_v61  ;;  %1428 = vmatprep.subr.bf16.mxu1 %v5536_v62  ;;  %v5619_v61 = vld [vmem:[#allocation8 + $0x14c] ss:$16 sps:$4 sm:$0xff]   ;;  %v5614_v62 = vld [vmem:[#allocation8 + $0x540] ss:$16 sps:$4 sm:$0xff]  }
  0xe0   :  { %1469 = vmatprep.subr.bf16.mxu0 %v5538_v63  ;;  %v5617_v63 = vld [vmem:[#allocation8 + $0x148] ss:$16 sps:$4 sm:$0xff]  }
  0xe2   :  { %1429 = vmatpush1.bf16.msra.mxu1 %v5540_v1  ;;  %v5622_v1 = vld [vmem:[#allocation8 + $0x564] ss:$16 sps:$4 sm:$0xff]  }
  0xe3   :  { %1470 = vmatpush1.bf16.msra.mxu0 %v5541_v2  ;;  %1430 = vmatprep.subr.bf16.mxu1 %v5542_v3  ;;  %v5625_v2 = vld [vmem:[#allocation8 + $0x16c] ss:$16 sps:$4 sm:$0xff]   ;;  %v5620_v3 = vld [vmem:[#allocation8 + $0x560] ss:$16 sps:$4 sm:$0xff]  }
  0xe4   :  { %1471 = vmatprep.subr.bf16.mxu0 %v5544_v4  ;;  %v5623_v4 = vld [vmem:[#allocation8 + $0x168] ss:$16 sps:$4 sm:$0xff]  }
  0xe6   :  { %1431 = vmatpush1.bf16.msra.mxu1 %v5546_v6  ;;  %v5631_v6 = vld [vmem:[#allocation8 + $0x18c] ss:$16 sps:$4 sm:$0xff]  }
  0xe7   :  { %1472 = vmatpush1.bf16.msra.mxu0 %v5547_v7  ;;  %1432 = vmatprep.subr.bf16.mxu1 %v5548_v8  ;;  %v5626_v7 = vld [vmem:[#allocation8 + $0x580] ss:$16 sps:$4 sm:$0xff]   ;;  %v5629_v8 = vld [vmem:[#allocation8 + $0x188] ss:$16 sps:$4 sm:$0xff]  }
  0xe8   :  { %1473 = vmatprep.subr.bf16.mxu0 %v5550_v9  ;;  %v5634_v9 = vld [vmem:[#allocation8 + $0x5a4] ss:$16 sps:$4 sm:$0xff]  }
  0xea   :  { %1433 = vmatpush1.bf16.msra.mxu1 %v5552_v11  ;;  %v5637_v11 = vld [vmem:[#allocation8 + $0x1ac] ss:$16 sps:$4 sm:$0xff]  }
  0xeb   :  { %1474 = vmatpush1.bf16.msra.mxu0 %v5553_v13  ;;  %1525 = vmatprep.subr.bf16.mxu1 %v5559_v15  ;;  %v5632_v13 = vld [vmem:[#allocation8 + $0x5a0] ss:$16 sps:$4 sm:$0xff]   ;;  %v5640_v15 = vld [vmem:[#allocation8 + $0x5c4] ss:$16 sps:$4 sm:$0xff]  }
  0xec   :  { %1484 = vmatprep.subr.bf16.mxu0 %v5556_v14  ;;  %v5635_v14 = vld [vmem:[#allocation8 + $0x1a8] ss:$16 sps:$4 sm:$0xff]  }
  0xed   :  { %1435 = vmatmul.mubr.bf16.vlgmr.msra.gmra.mrb[0].mxu1 %v6833_v12 }
  0xee   :  { %1476 = vmatmul.mubr.bf16.vlgmr.msra.gmra.mrb[0].mxu0 %v6839_v18  ;;  %1526 = vmatpush1.bf16.msra.mxu1 %v5557_v19  ;;  %v5641_v19 = vld [vmem:[#allocation8 + $0x1c8] ss:$16 sps:$4 sm:$0xff]  }
  0xef   :  { %1485 = vmatpush1.bf16.msra.mxu0 %v5554_v17  ;;  %1527 = vmatprep.subr.bf16.mxu1 %v5565_v21  ;;  %v5638_v17 = vld [vmem:[#allocation8 + $0x5c0] ss:$16 sps:$4 sm:$0xff]   ;;  %v5649_v21 = vld [vmem:[#allocation8 + $0x1ec] ss:$16 sps:$4 sm:$0xff]  }
  0xf0   :  { %1486 = vmatprep.subr.bf16.mxu0 %v5562_v20  ;;  %1516 = vmatprep.mubr.bf16.mxu0 %v6842_v22  ;;  %v5646_v20 = vld [vmem:[#allocation8 + $0x5e4] ss:$16 sps:$4 sm:$0xff]  }
  0xf1   :  { %1557 = vmatprep.mubr.bf16.mxu1 %v426_v60  ;;  %v5616_v60 = vld [vmem:[#allocation8 + $0x544] ss:$16 sps:$4 sm:$0xff]  }
  0xf2   :  { %1528 = vmatpush1.bf16.msra.mxu1 %v5563_v24  ;;  %v5647_v24 = vld [vmem:[#allocation8 + $0x1e8] ss:$16 sps:$4 sm:$0xff]  }
  0xf3   :  { %1487 = vmatpush1.bf16.msra.mxu0 %v5560_v23  ;;  %1529 = vmatprep.subr.bf16.mxu1 %v5571_v26  ;;  %v5644_v23 = vld [vmem:[#allocation8 + $0x5e0] ss:$16 sps:$4 sm:$0xff]   ;;  %v6849_v26 = vrot.slane %v6830_v10, %v6822_v49  ;;  %v5660_v10 = vld [vmem:[#allocation8 + $0x268] ss:$16 sps:$4 sm:$0xff]  }
  0xf4   :  { %1488 = vmatprep.subr.bf16.mxu0 %v5568_v25  ;;  %v5653_v25 = vld [vmem:[#allocation8 + $0x20c] ss:$16 sps:$4 sm:$0xff]  }
  0xf6   :  { %1530 = vmatpush1.bf16.msra.mxu1 %v5569_v28  ;;  %v5656_v28 = vld [vmem:[#allocation8 + $0x22c] ss:$16 sps:$4 sm:$0xff]  }
  0xf7   :  { %1489 = vmatpush1.bf16.msra.mxu0 %v5566_v27  ;;  %1531 = vmatprep.subr.bf16.mxu1 %v5577_v30  ;;  %v5651_v27 = vld [vmem:[#allocation8 + $0x208] ss:$16 sps:$4 sm:$0xff]   ;;  %v5659_v30 = vld [vmem:[#allocation8 + $0x24c] ss:$16 sps:$4 sm:$0xff]  }
  0xf8   :  { %1490 = vmatprep.subr.bf16.mxu0 %v5574_v29  ;;  %v5654_v29 = vld [vmem:[#allocation8 + $0x228] ss:$16 sps:$4 sm:$0xff]  }
  0xfa   :  { %1532 = vmatpush1.bf16.msra.mxu1 %v5575_v32  ;;  %v5662_v32 = vld [vmem:[#allocation8 + $0x26c] ss:$16 sps:$4 sm:$0xff]  }
  0xfb   :  { %1491 = vmatpush1.bf16.msra.mxu0 %v5572_v31  ;;  %1533 = vmatprep.subr.bf16.mxu1 %v5583_v34  ;;  %v5657_v31 = vld [vmem:[#allocation8 + $0x248] ss:$16 sps:$4 sm:$0xff]  }
  0xfc   :  { %1492 = vmatprep.subr.bf16.mxu0 %v5580_v33  ;;  %v5665_v33 = vld [vmem:[#allocation8 + $0x28c] ss:$16 sps:$4 sm:$0xff]   ;;  %v5663_v34 = vld [vmem:[#allocation8 + $0x288] ss:$16 sps:$4 sm:$0xff]  }
  0xfe   :  { %1534 = vmatpush1.bf16.msra.mxu1 %v5581_v37  ;;  %v5666_v37 = vld [vmem:[#allocation8 + $0x2a8] ss:$16 sps:$4 sm:$0xff]  }
  0xff   :  { %1493 = vmatpush1.bf16.msra.mxu0 %v5578_v35  ;;  %1535 = vmatprep.subr.bf16.mxu1 %v5589_v39  ;;  %v5668_v35 = vld [vmem:[#allocation8 + $0x2ac] ss:$16 sps:$4 sm:$0xff]   ;;  %v5747_v39 = vld [vmem:[#allocation10] ss:$8 sps:$4 sm:$0xff]  }
 0x100   :  { %1494 = vmatprep.subr.bf16.mxu0 %v5586_v38  ;;  %v5671_v38 = vld [vmem:[#allocation8 + $0x2cc] ss:$16 sps:$4 sm:$0xff]  }
 0x102   :  { %1536 = vmatpush1.bf16.msra.mxu1 %v5587_v41  ;;  %v5752_v41 = vld [vmem:[#allocation10 + $0x14] ss:$8 sps:$4 sm:$0xff]  }
 0x103   :  { %1495 = vmatpush1.bf16.msra.mxu0 %v5584_v40  ;;  %1537 = vmatprep.subr.bf16.mxu1 %v5595_v44  ;;  %v5749_v40 = vld [vmem:[#allocation10 + $0x4] ss:$8 sps:$4 sm:$0xff]   ;;  %v5750_v44 = vld [vmem:[#allocation10 + $0x10] ss:$8 sps:$4 sm:$0xff]  }
 0x104   :  { %1496 = vmatprep.subr.bf16.mxu0 %v5592_v43  ;;  %v5672_v43 = vld [vmem:[#allocation8 + $0x2e8] ss:$16 sps:$4 sm:$0xff]  }
 0x106   :  { %1538 = vmatpush1.bf16.msra.mxu1 %v5593_v46  ;;  %v5755_v46 = vld [vmem:[#allocation10 + $0x24] ss:$8 sps:$4 sm:$0xff]  }
 0x107   :  { %1497 = vmatpush1.bf16.msra.mxu0 %v5590_v45  ;;  %1539 = vmatprep.subr.bf16.mxu1 %v5601_v48  ;;  %v5677_v45 = vld [vmem:[#allocation8 + $0x30c] ss:$16 sps:$4 sm:$0xff]   ;;  %v5753_v48 = vld [vmem:[#allocation10 + $0x20] ss:$8 sps:$4 sm:$0xff]  }
 0x108   :  { %1498 = vmatprep.subr.bf16.mxu0 %v5598_v47  ;;  %v5675_v47 = vld [vmem:[#allocation8 + $0x308] ss:$16 sps:$4 sm:$0xff]  }
 0x10a   :  { %1540 = vmatpush1.bf16.msra.mxu1 %v5599_v51  ;;  %v5758_v51 = vld [vmem:[#allocation10 + $0x34] ss:$8 sps:$4 sm:$0xff]  }
 0x10b   :  { %1499 = vmatpush1.bf16.msra.mxu0 %v5596_v50  ;;  %1541 = vmatprep.subr.bf16.mxu1 %v5607_v53  ;;  %v5680_v50 = vld [vmem:[#allocation8 + $0x32c] ss:$16 sps:$4 sm:$0xff]   ;;  %v5756_v53 = vld [vmem:[#allocation10 + $0x30] ss:$8 sps:$4 sm:$0xff]  }
 0x10c   :  { %1500 = vmatprep.subr.bf16.mxu0 %v5604_v52  ;;  %v5678_v52 = vld [vmem:[#allocation8 + $0x328] ss:$16 sps:$4 sm:$0xff]  }
 0x10e   :  { %1542 = vmatpush1.bf16.msra.mxu1 %v5605_v55  ;;  %v5761_v55 = vld [vmem:[#allocation10 + $0x44] ss:$8 sps:$4 sm:$0xff]  }
 0x10f   :  { %1501 = vmatpush1.bf16.msra.mxu0 %v5602_v54  ;;  %1543 = vmatprep.subr.bf16.mxu1 %v5613_v57  ;;  %v5683_v54 = vld [vmem:[#allocation8 + $0x34c] ss:$16 sps:$4 sm:$0xff]   ;;  %v5759_v57 = vld [vmem:[#allocation10 + $0x40] ss:$8 sps:$4 sm:$0xff]  }
 0x110   :  { %1502 = vmatprep.subr.bf16.mxu0 %v5610_v56  ;;  %v5681_v56 = vld [vmem:[#allocation8 + $0x348] ss:$16 sps:$4 sm:$0xff]  }
 0x112   :  { %1544 = vmatpush1.bf16.msra.mxu1 %v5611_v59  ;;  %v5764_v59 = vld [vmem:[#allocation10 + $0x54] ss:$8 sps:$4 sm:$0xff]  }
 0x113   :  { %1503 = vmatpush1.bf16.msra.mxu0 %v5608_v58  ;;  %1545 = vmatprep.subr.bf16.mxu1 %v5619_v61  ;;  %v5686_v58 = vld [vmem:[#allocation8 + $0x36c] ss:$16 sps:$4 sm:$0xff]   ;;  %v5762_v61 = vld [vmem:[#allocation10 + $0x50] ss:$8 sps:$4 sm:$0xff]  }
 0x114   :  { %1504 = vmatprep.subr.bf16.mxu0 %v5616_v60  ;;  %v5684_v60 = vld [vmem:[#allocation8 + $0x368] ss:$16 sps:$4 sm:$0xff]  }
 0x116   :  { %1546 = vmatpush1.bf16.msra.mxu1 %v5617_v63  ;;  %v5767_v63 = vld [vmem:[#allocation10 + $0x64] ss:$8 sps:$4 sm:$0xff]  }
 0x117   :  { %1505 = vmatpush1.bf16.msra.mxu0 %v5614_v62  ;;  %1547 = vmatprep.subr.bf16.mxu1 %v5625_v2  ;;  %v5689_v62 = vld [vmem:[#allocation8 + $0x38c] ss:$16 sps:$4 sm:$0xff]   ;;  %v5765_v2 = vld [vmem:[#allocation10 + $0x60] ss:$8 sps:$4 sm:$0xff]  }
 0x118   :  { %1506 = vmatprep.subr.bf16.mxu0 %v5622_v1  ;;  %v5687_v1 = vld [vmem:[#allocation8 + $0x388] ss:$16 sps:$4 sm:$0xff]  }
 0x11a   :  { %1548 = vmatpush1.bf16.msra.mxu1 %v5623_v4  ;;  %v5770_v4 = vld [vmem:[#allocation10 + $0x74] ss:$8 sps:$4 sm:$0xff]  }
 0x11b   :  { %1507 = vmatpush1.bf16.msra.mxu0 %v5620_v3  ;;  %1549 = vmatprep.subr.bf16.mxu1 %v5631_v6  ;;  %v5692_v3 = vld [vmem:[#allocation8 + $0x3ac] ss:$16 sps:$4 sm:$0xff]   ;;  %v5768_v6 = vld [vmem:[#allocation10 + $0x70] ss:$8 sps:$4 sm:$0xff]  }
 0x11c   :  { %1508 = vmatprep.subr.bf16.mxu0 %v5628_v5  ;;  %v5690_v5 = vld [vmem:[#allocation8 + $0x3a8] ss:$16 sps:$4 sm:$0xff]  }
 0x11e   :  { %1550 = vmatpush1.bf16.msra.mxu1 %v5629_v8  ;;  %v5773_v8 = vld [vmem:[#allocation10 + $0x84] ss:$8 sps:$4 sm:$0xff]  }
 0x11f   :  { %1509 = vmatpush1.bf16.msra.mxu0 %v5626_v7  ;;  %1551 = vmatprep.subr.bf16.mxu1 %v5637_v11  ;;  %v5695_v7 = vld [vmem:[#allocation8 + $0x3cc] ss:$16 sps:$4 sm:$0xff]   ;;  %v5771_v11 = vld [vmem:[#allocation10 + $0x80] ss:$8 sps:$4 sm:$0xff]  }
 0x120   :  { %1510 = vmatprep.subr.bf16.mxu0 %v5634_v9  ;;  %v5693_v9 = vld [vmem:[#allocation8 + $0x3c8] ss:$16 sps:$4 sm:$0xff]  }
 0x122   :  { %1552 = vmatpush1.bf16.msra.mxu1 %v5635_v14  ;;  %v5776_v14 = vld [vmem:[#allocation10 + $0x94] ss:$8 sps:$4 sm:$0xff]  }
 0x123   :  { %1511 = vmatpush1.bf16.msra.mxu0 %v5632_v13  ;;  %1553 = vmatprep.subr.bf16.mxu1 %v5643_v16  ;;  %v5698_v13 = vld [vmem:[#allocation8 + $0x3ec] ss:$16 sps:$4 sm:$0xff]   ;;  %v5774_v16 = vld [vmem:[#allocation10 + $0x90] ss:$8 sps:$4 sm:$0xff]  }
 0x124   :  { %1512 = vmatprep.subr.bf16.mxu0 %v5640_v15  ;;  %v5696_v15 = vld [vmem:[#allocation8 + $0x3e8] ss:$16 sps:$4 sm:$0xff]  }
 0x126   :  { %1554 = vmatpush1.bf16.msra.mxu1 %v5641_v19  ;;  %v5779_v19 = vld [vmem:[#allocation10 + $0xa4] ss:$8 sps:$4 sm:$0xff]  }
 0x127   :  { %1513 = vmatpush1.bf16.msra.mxu0 %v5638_v17  ;;  %1555 = vmatprep.subr.bf16.mxu1 %v5649_v21  ;;  %v5701_v17 = vld [vmem:[#allocation8 + $0x40c] ss:$16 sps:$4 sm:$0xff]  }
 0x128   :  { %1514 = vmatprep.subr.bf16.mxu0 %v5646_v20  ;;  %v5699_v20 = vld [vmem:[#allocation8 + $0x408] ss:$16 sps:$4 sm:$0xff]   ;;  %v5704_v21 = vld [vmem:[#allocation8 + $0x42c] ss:$16 sps:$4 sm:$0xff]  }
 0x12a   :  { %1556 = vmatpush1.bf16.msra.mxu1 %v5647_v24  ;;  %v5782_v24 = vld [vmem:[#allocation10 + $0xb4] ss:$8 sps:$4 sm:$0xff]  }
 0x12b   :  { %1515 = vmatpush1.bf16.msra.mxu0 %v5644_v23  ;;  %1566 = vmatprep.subr.bf16.mxu1 %v5653_v25  ;;  %v5777_v23 = vld [vmem:[#allocation10 + $0xa0] ss:$8 sps:$4 sm:$0xff]  }
 0x12c   :  { %2052 = vmatprep.subr.bf16.mxu0 %v5749_v40  ;;  %v5702_v25 = vld [vmem:[#allocation8 + $0x428] ss:$16 sps:$4 sm:$0xff]   ;;  %v5722_v40 = vld [vmem:[#allocation8 + $0x4ec] ss:$16 sps:$4 sm:$0xff]  }
 0x12d   :  { %1558 = vmatmul.mubr.bf16.vlgmr.msra.gmra.mrb[4].mxu1 %v6833_v12  ;;  %v5669_v12 = vld [vmem:[#allocation8 + $0x2c8] ss:$16 sps:$4 sm:$0xff]  }
 0x12e   :  { %1517 = vmatmul.mubr.bf16.vlgmr.msra.gmra.mrb[0].mxu0 %v6849_v26  ;;  %1567 = vmatpush1.bf16.msra.mxu1 %v5651_v27  ;;  %v5707_v27 = vld [vmem:[#allocation8 + $0x44c] ss:$16 sps:$4 sm:$0xff]  }
 0x12f   :  { %1598 = vmatprep.mubr.bf16.mxu1 %v6826_v0  ;;  %1568 = vmatprep.subr.bf16.mxu1 %v5656_v28  ;;  %v5674_v0 = vld [vmem:[#allocation8 + $0x2ec] ss:$16 sps:$4 sm:$0xff]   ;;  %v5780_v28 = vld [vmem:[#allocation10 + $0xb0] ss:$8 sps:$4 sm:$0xff]  }
 0x130   :  { %2053 = vmatpush1.bf16.msra.mxu0 %v5747_v39  ;;  %v5789_v39 = vld [vmem:[#allocation10 + $0xe0] ss:$8 sps:$4 sm:$0xff]  }
 0x131   :  { %2054 = vmatprep.subr.bf16.mxu0 %v5752_v41  ;;  %v5794_v41 = vld [vmem:[#allocation10 + $0xf4] ss:$8 sps:$4 sm:$0xff]  }
 0x132   :  { %1569 = vmatpush1.bf16.msra.mxu1 %v5654_v29  ;;  %v5785_v29 = vld [vmem:[#allocation10 + $0xc4] ss:$8 sps:$4 sm:$0xff]  }
 0x133   :  { %1570 = vmatprep.subr.bf16.mxu1 %v5659_v30  ;;  %v5705_v30 = vld [vmem:[#allocation8 + $0x448] ss:$16 sps:$4 sm:$0xff]  }
 0x134   :  { %2055 = vmatpush1.bf16.msra.mxu0 %v5750_v44  ;;  %v5792_v44 = vld [vmem:[#allocation10 + $0xf0] ss:$8 sps:$4 sm:$0xff]  }
 0x135   :  { %2056 = vmatprep.subr.bf16.mxu0 %v5755_v46  ;;  %v5797_v46 = vld [vmem:[#allocation10 + $0x104] ss:$8 sps:$4 sm:$0xff]  }
 0x136   :  { %1571 = vmatpush1.bf16.msra.mxu1 %v5657_v31  ;;  %v5710_v31 = vld [vmem:[#allocation8 + $0x46c] ss:$16 sps:$4 sm:$0xff]  }
 0x137   :  { %1572 = vmatprep.subr.bf16.mxu1 %v5662_v32  ;;  %v5783_v32 = vld [vmem:[#allocation10 + $0xc0] ss:$8 sps:$4 sm:$0xff]  }
 0x138   :  { %2057 = vmatpush1.bf16.msra.mxu0 %v5753_v48  ;;  %v5728_v48 = vld [vmem:[#allocation8 + $0x52c] ss:$16 sps:$4 sm:$0xff]  }
 0x139   :  { %2058 = vmatprep.subr.bf16.mxu0 %v5758_v51  ;;  %v5731_v51 = vld [vmem:[#allocation8 + $0x54c] ss:$16 sps:$4 sm:$0xff]  }
 0x13a   :  { %1573 = vmatpush1.bf16.msra.mxu1 %v5660_v10  ;;  %v5788_v10 = vld [vmem:[#allocation10 + $0xd4] ss:$8 sps:$4 sm:$0xff]  }
 0x13b   :  { %1574 = vmatprep.subr.bf16.mxu1 %v5665_v33  ;;  %v5708_v33 = vld [vmem:[#allocation8 + $0x468] ss:$16 sps:$4 sm:$0xff]  }
 0x13c   :  { %2059 = vmatpush1.bf16.msra.mxu0 %v5756_v53  ;;  %v5734_v53 = vld [vmem:[#allocation8 + $0x56c] ss:$16 sps:$4 sm:$0xff]  }
 0x13d   :  { %2060 = vmatprep.subr.bf16.mxu0 %v5761_v55  ;;  %v5737_v55 = vld [vmem:[#allocation8 + $0x58c] ss:$16 sps:$4 sm:$0xff]  }
 0x13e   :  { %1575 = vmatpush1.bf16.msra.mxu1 %v5663_v34  ;;  %v5713_v34 = vld [vmem:[#allocation8 + $0x48c] ss:$16 sps:$4 sm:$0xff]  }
 0x13f   :  { %1576 = vmatprep.subr.bf16.mxu1 %v5668_v35  ;;  %v5711_v35 = vld [vmem:[#allocation8 + $0x488] ss:$16 sps:$4 sm:$0xff]  }
 0x140   :  { %2061 = vmatpush1.bf16.msra.mxu0 %v5759_v57  ;;  %v5740_v57 = vld [vmem:[#allocation8 + $0x5ac] ss:$16 sps:$4 sm:$0xff]  }
 0x141   :  { %2062 = vmatprep.subr.bf16.mxu0 %v5764_v59  ;;  %v5743_v59 = vld [vmem:[#allocation8 + $0x5cc] ss:$16 sps:$4 sm:$0xff]  }
 0x142   :  { %1577 = vmatpush1.bf16.msra.mxu1 %v5666_v37  ;;  %v5714_v37 = vld [vmem:[#allocation8 + $0x4a8] ss:$16 sps:$4 sm:$0xff]  }
 0x143   :  { %1578 = vmatprep.subr.bf16.mxu1 %v5671_v38  ;;  %v5719_v38 = vld [vmem:[#allocation8 + $0x4cc] ss:$16 sps:$4 sm:$0xff]  }
 0x144   :  { %2063 = vmatpush1.bf16.msra.mxu0 %v5762_v61  ;;  %v5746_v61 = vld [vmem:[#allocation8 + $0x5ec] ss:$16 sps:$4 sm:$0xff]  }
 0x145   :  { %2064 = vmatprep.subr.bf16.mxu0 %v5767_v63 }
 0x146   :  { %1579 = vmatpush1.bf16.msra.mxu1 %v5669_v12  ;;  %v5791_v12 = vld [vmem:[#allocation10 + $0xe4] ss:$8 sps:$4 sm:$0xff]  }
 0x147   :  { %1580 = vmatprep.subr.bf16.mxu1 %v5674_v0  ;;  %v5717_v0 = vld [vmem:[#allocation8 + $0x4c8] ss:$16 sps:$4 sm:$0xff]  }
 0x148   :  { %2065 = vmatpush1.bf16.msra.mxu0 %v5765_v2 }
 0x149   :  { %2066 = vmatprep.subr.bf16.mxu0 %v5770_v4  ;;  %v6858_v4 = vsub.s32 0, %v6819_v42 }
 0x14a   :  { %1581 = vmatpush1.bf16.msra.mxu1 %v5672_v43  ;;  %v5720_v43 = vld [vmem:[#allocation8 + $0x4e8] ss:$16 sps:$4 sm:$0xff]  }
 0x14b   :  { %1582 = vmatprep.subr.bf16.mxu1 %v5677_v45  ;;  %v5725_v45 = vld [vmem:[#allocation8 + $0x50c] ss:$16 sps:$4 sm:$0xff]  }
 0x14c   :  { %2067 = vmatpush1.bf16.msra.mxu0 %v5768_v6  ;;  %v6866_v6 = vsub.s32 1, %v6819_v42 }
 0x14d   :  { %2068 = vmatprep.subr.bf16.mxu0 %v5773_v8 }
 0x14e   :  { %1583 = vmatpush1.bf16.msra.mxu1 %v5675_v47  ;;  %v5723_v47 = vld [vmem:[#allocation8 + $0x508] ss:$16 sps:$4 sm:$0xff]  }
 0x14f   :  { %1584 = vmatprep.subr.bf16.mxu1 %v5680_v50  ;;  %v5726_v50 = vld [vmem:[#allocation8 + $0x528] ss:$16 sps:$4 sm:$0xff]  }
 0x150   :  { %2069 = vmatpush1.bf16.msra.mxu0 %v5771_v11 }
 0x151   :  { %2070 = vmatprep.subr.bf16.mxu0 %v5776_v14 }
 0x152   :  { %1585 = vmatpush1.bf16.msra.mxu1 %v5678_v52  ;;  %v5729_v52 = vld [vmem:[#allocation8 + $0x548] ss:$16 sps:$4 sm:$0xff]  }
 0x153   :  { %1586 = vmatprep.subr.bf16.mxu1 %v5683_v54  ;;  %v5732_v54 = vld [vmem:[#allocation8 + $0x568] ss:$16 sps:$4 sm:$0xff]  }
 0x154   :  { %2071 = vmatpush1.bf16.msra.mxu0 %v5774_v16 }
 0x155   :  { %2072 = vmatprep.subr.bf16.mxu0 %v5779_v19 }
 0x156   :  { %1587 = vmatpush1.bf16.msra.mxu1 %v5681_v56  ;;  %v5735_v56 = vld [vmem:[#allocation8 + $0x588] ss:$16 sps:$4 sm:$0xff]  }
 0x157   :  { %1588 = vmatprep.subr.bf16.mxu1 %v5686_v58  ;;  %v5738_v58 = vld [vmem:[#allocation8 + $0x5a8] ss:$16 sps:$4 sm:$0xff]  }
 0x158   :  { %2073 = vmatpush1.bf16.msra.mxu0 %v5777_v23  ;;  %v5795_v23 = vld [vmem:[#allocation10 + $0x100] ss:$8 sps:$4 sm:$0xff]  }
 0x159   :  { %2074 = vmatprep.subr.bf16.mxu0 %v5782_v24 }
 0x15a   :  { %1589 = vmatpush1.bf16.msra.mxu1 %v5684_v60  ;;  %v5741_v60 = vld [vmem:[#allocation8 + $0x5c8] ss:$16 sps:$4 sm:$0xff]  }
 0x15b   :  { %1590 = vmatprep.subr.bf16.mxu1 %v5689_v62  ;;  %v5744_v62 = vld [vmem:[#allocation8 + $0x5e8] ss:$16 sps:$4 sm:$0xff]  }
 0x15c   :  { %2075 = vmatpush1.bf16.msra.mxu0 %v5780_v28  ;;  %v5844_v28 = vld [vmem:[#allocation11] sm:$0xff]  }
 0x15d   :  { %2076 = vmatprep.subr.bf16.mxu0 %v5785_v29  ;;  %v5845_v29 = vld [vmem:[#allocation11 + $0x48] sm:$0xff]  }
 0x15e   :  { %1591 = vmatpush1.bf16.msra.mxu1 %v5687_v1 }
 0x15f   :  { %1592 = vmatprep.subr.bf16.mxu1 %v5692_v3 }
 0x160   :  { %2077 = vmatpush1.bf16.msra.mxu0 %v5783_v32  ;;  %v5846_v32 = vld [vmem:[#allocation11 + $0x8] sm:$0xff]  }
 0x161   :  { %2078 = vmatprep.subr.bf16.mxu0 %v5788_v10  ;;  %v5847_v10 = vld [vmem:[#allocation11 + $0x50] sm:$0xff]  }
 0x162   :  { %1593 = vmatpush1.bf16.msra.mxu1 %v5690_v5  ;;  %v6863_v5 = vld [vmem:[%s7062_s4] sm:$0xf] }
 0x163   :  { %1594 = vmatprep.subr.bf16.mxu1 %v5695_v7  ;;  %v371_v7 = vrot.slane %v6863_v5, %v6858_v4 }
 0x166   :  { %1595 = vmatpush1.bf16.msra.mxu1 %v5693_v9 }
 0x167   :  { %1596 = vmatprep.subr.bf16.mxu1 %v5698_v13 }
 0x16a   :  { %1597 = vmatpush1.bf16.msra.mxu1 %v5696_v15 }
 0x16b   :  { %1607 = vmatprep.subr.bf16.mxu1 %v5701_v17 }
 0x16d   :  { %1599 = vmatmul.mubr.bf16.vlgmr.msra.gmra.mrb[4].mxu1 %v6839_v18  ;;  %v5786_v18 = vld [vmem:[#allocation10 + $0xd0] ss:$8 sps:$4 sm:$0xff]  }
 0x16e   :  { %1608 = vmatpush1.bf16.msra.mxu1 %v5699_v20  ;;  %1639 = vmatprep.mubr.bf16.mxu1 %v6842_v22  ;;  %v5716_v22 = vld [vmem:[#allocation8 + $0x4ac] ss:$16 sps:$4 sm:$0xff]  }
 0x16f   :  { %1609 = vmatprep.subr.bf16.mxu1 %v5704_v21  ;;  %2079 = vmatpush1.bf16.msra.mxu0 %v5786_v18  ;;  %v5848_v18 = vld [vmem:[#allocation11 + $0x10] sm:$0xff]  }
 0x170   :  { %2080 = vmatprep.subr.bf16.mxu0 %v5791_v12  ;;  %v5851_v12 = vld [vmem:[#allocation11 + $0x60] sm:$0xff]  }
 0x172   :  { %1610 = vmatpush1.bf16.msra.mxu1 %v5702_v25  ;;  %v5800_v25 = vld [vmem:[#allocation10 + $0x114] ss:$8 sps:$4 sm:$0xff]  }
 0x173   :  { %1611 = vmatprep.subr.bf16.mxu1 %v5707_v27  ;;  %2081 = vmatpush1.bf16.msra.mxu0 %v5789_v39  ;;  %v5843_v27 = vld [vmem:[#allocation11 + $0x40] sm:$0xff]   ;;  %v5812_v39 = vld [vmem:[#allocation10 + $0x154] ss:$8 sps:$4 sm:$0xff]  }
 0x174   :  { %2082 = vmatprep.subr.bf16.mxu0 %v5794_v41  ;;  %v5853_v41 = vld [vmem:[#allocation11 + $0x68] sm:$0xff]  }
 0x176   :  { %1612 = vmatpush1.bf16.msra.mxu1 %v5705_v30  ;;  %v5798_v30 = vld [vmem:[#allocation10 + $0x110] ss:$8 sps:$4 sm:$0xff]  }
 0x177   :  { %1613 = vmatprep.subr.bf16.mxu1 %v5710_v31  ;;  %2083 = vmatpush1.bf16.msra.mxu0 %v5792_v44  ;;  %v5803_v31 = vld [vmem:[#allocation10 + $0x124] ss:$8 sps:$4 sm:$0xff]  }
 0x178   :  { %2093 = vmatprep.subr.bf16.mxu0 %v5797_v46  ;;  %v5815_v44 = vld [vmem:[#allocation10 + $0x164] ss:$8 sps:$4 sm:$0xff]   ;;  %v5813_v46 = vld [vmem:[#allocation10 + $0x160] ss:$8 sps:$4 sm:$0xff]  }
 0x17a   :  { %1614 = vmatpush1.bf16.msra.mxu1 %v5708_v33  ;;  %v5801_v33 = vld [vmem:[#allocation10 + $0x120] ss:$8 sps:$4 sm:$0xff]  }
 0x17b   :  { %1615 = vmatprep.subr.bf16.mxu1 %v5713_v34  ;;  %v5806_v34 = vld [vmem:[#allocation10 + $0x134] ss:$8 sps:$4 sm:$0xff]  }
 0x17e   :  { %1616 = vmatpush1.bf16.msra.mxu1 %v5711_v35  ;;  %v5849_v35 = vld [vmem:[#allocation11 + $0x58] sm:$0xff]  }
 0x17f   :  { %1617 = vmatprep.subr.bf16.mxu1 %v5716_v22  ;;  %v5804_v22 = vld [vmem:[#allocation10 + $0x130] ss:$8 sps:$4 sm:$0xff]  }
 0x182   :  { %1618 = vmatpush1.bf16.msra.mxu1 %v5714_v37  ;;  %v5809_v37 = vld [vmem:[#allocation10 + $0x144] ss:$8 sps:$4 sm:$0xff]  }
 0x183   :  { %1619 = vmatprep.subr.bf16.mxu1 %v5719_v38  ;;  %v5850_v38 = vld [vmem:[#allocation11 + $0x18] sm:$0xff]  }
 0x186   :  { %1620 = vmatpush1.bf16.msra.mxu1 %v5717_v0  ;;  %v5807_v0 = vld [vmem:[#allocation10 + $0x140] ss:$8 sps:$4 sm:$0xff]  }
 0x187   :  { %1621 = vmatprep.subr.bf16.mxu1 %v5722_v40  ;;  %v5852_v40 = vld [vmem:[#allocation11 + $0x20] sm:$0xff]  }
 0x18a   :  { %1622 = vmatpush1.bf16.msra.mxu1 %v5720_v43  ;;  %v5810_v43 = vld [vmem:[#allocation10 + $0x150] ss:$8 sps:$4 sm:$0xff]  }
 0x18b   :  { %1623 = vmatprep.subr.bf16.mxu1 %v5725_v45  ;;  %v5854_v45 = vld [vmem:[#allocation11 + $0x28] sm:$0xff]  }
 0x18e   :  { %1624 = vmatpush1.bf16.msra.mxu1 %v5723_v47  ;;  %v5818_v47 = vld [vmem:[#allocation10 + $0x174] ss:$8 sps:$4 sm:$0xff]  }
 0x18f   :  { %1625 = vmatprep.subr.bf16.mxu1 %v5728_v48  ;;  %v5816_v48 = vld [vmem:[#allocation10 + $0x170] ss:$8 sps:$4 sm:$0xff]  }
 0x192   :  { %1626 = vmatpush1.bf16.msra.mxu1 %v5726_v50  ;;  %v5821_v50 = vld [vmem:[#allocation10 + $0x184] ss:$8 sps:$4 sm:$0xff]  }
 0x193   :  { %1627 = vmatprep.subr.bf16.mxu1 %v5731_v51  ;;  %v5819_v51 = vld [vmem:[#allocation10 + $0x180] ss:$8 sps:$4 sm:$0xff]  }
 0x196   :  { %1628 = vmatpush1.bf16.msra.mxu1 %v5729_v52  ;;  %v5824_v52 = vld [vmem:[#allocation10 + $0x194] ss:$8 sps:$4 sm:$0xff]  }
 0x197   :  { %1629 = vmatprep.subr.bf16.mxu1 %v5734_v53  ;;  %v5822_v53 = vld [vmem:[#allocation10 + $0x190] ss:$8 sps:$4 sm:$0xff]  }
 0x19a   :  { %1630 = vmatpush1.bf16.msra.mxu1 %v5732_v54  ;;  %v5827_v54 = vld [vmem:[#allocation10 + $0x1a4] ss:$8 sps:$4 sm:$0xff]  }
 0x19b   :  { %1631 = vmatprep.subr.bf16.mxu1 %v5737_v55  ;;  %v5825_v55 = vld [vmem:[#allocation10 + $0x1a0] ss:$8 sps:$4 sm:$0xff]  }
 0x19e   :  { %1632 = vmatpush1.bf16.msra.mxu1 %v5735_v56  ;;  %v5830_v56 = vld [vmem:[#allocation10 + $0x1b4] ss:$8 sps:$4 sm:$0xff]  }
 0x19f   :  { %1633 = vmatprep.subr.bf16.mxu1 %v5740_v57  ;;  %v5828_v57 = vld [vmem:[#allocation10 + $0x1b0] ss:$8 sps:$4 sm:$0xff]  }
 0x1a2   :  { %1634 = vmatpush1.bf16.msra.mxu1 %v5738_v58  ;;  %v5833_v58 = vld [vmem:[#allocation10 + $0x1c4] ss:$8 sps:$4 sm:$0xff]  }
 0x1a3   :  { %1635 = vmatprep.subr.bf16.mxu1 %v5743_v59  ;;  %v5831_v59 = vld [vmem:[#allocation10 + $0x1c0] ss:$8 sps:$4 sm:$0xff]  }
 0x1a6   :  { %1636 = vmatpush1.bf16.msra.mxu1 %v5741_v60  ;;  %v5836_v60 = vld [vmem:[#allocation10 + $0x1d4] ss:$8 sps:$4 sm:$0xff]  }
 0x1a7   :  { %1637 = vmatprep.subr.bf16.mxu1 %v5746_v61  ;;  %v5834_v61 = vld [vmem:[#allocation10 + $0x1d0] ss:$8 sps:$4 sm:$0xff]  }
 0x1aa   :  { %1638 = vmatpush1.bf16.msra.mxu1 %v5744_v62  ;;  %v5839_v62 = vld [vmem:[#allocation10 + $0x1e4] ss:$8 sps:$4 sm:$0xff]  }
 0x1ab   :  { %5301 = vmatprep.subr.bf16.mxu1 %v5843_v27  ;;  %v5858_v27 = vld [vmem:[#allocation11 + $0x38] sm:$0xff]  }
 0x1ad   :  { %1640 = vmatmul.mubr.bf16.vlgmr.msra.gmra.mrb[4].mxu1 %v6849_v26  ;;  %v375_v26 = vrot.slane %v6863_v5, %v6866_v6 }
 0x1ae   :  { %5302 = vmatpush3.bf16.msra.mxu1 %v5844_v28 }
 0x1af   :  { %5303 = vmatprep.subr.bf16.mxu1 %v5845_v29 }
 0x1b2   :  { %5304 = vmatpush3.bf16.msra.mxu1 %v5846_v32 }
 0x1b3   :  { %5305 = vmatprep.subr.bf16.mxu1 %v5847_v10 }
 0x1b6   :  { %5306 = vmatpush3.bf16.msra.mxu1 %v5848_v18 }
 0x1b7   :  { %5307 = vmatprep.subr.bf16.mxu1 %v5849_v35 }
 0x1ba   :  { %5308 = vmatpush3.bf16.msra.mxu1 %v5850_v38 }
 0x1bb   :  { %5309 = vmatprep.subr.bf16.mxu1 %v5851_v12  ;;  %v4999_v12 = vld [vmem:[%s7066_s8] ss:$0 sm:$0xff]  ;;  %s6579_s8 = smov 126  }
 0x1be   :  { %5310 = vmatpush3.bf16.msra.mxu1 %v5852_v40 }
 0x1bf   :  { %5311 = vmatprep.subr.bf16.mxu1 %v5853_v41 }
 0x1c0   :  { %v1436_v63 = vpop.f32.mrb[0].mxu1 }
 0x1c1   :  { %v1438_v1 = vpop.f32.mrb[1].mxu1  ;;  %v1437_v8 = vadd.f32 %v1436_v63, %v371_v7  ;;  %v5837_v63 = vld [vmem:[#allocation10 + $0x1e0] ss:$8 sps:$4 sm:$0xff]   ;;  %v6876_v7 = vsub.s32 3, %v6819_v42 }
 0x1c2   :  { %v1440_v2 = vpop.f32.mrb[2].mxu1  ;;  %v1439_v9 = vadd.f32 %v1438_v1, %v375_v26  ;;  %5312 = vmatpush3.bf16.msra.mxu1 %v5854_v45  ;;  %v5842_v1 = vld [vmem:[#allocation10 + $0x1f4] ss:$8 sps:$4 sm:$0xff]  }
 0x1c3   :  { %v1441_v3 = vpop.f32.mrb[3].mxu1  ;;  %v5840_v2 = vld [vmem:[#allocation10 + $0x1f0] ss:$8 sps:$4 sm:$0xff]  }
 0x1c4   :  { %v6873_v3 = vsub.s32 2, %v6819_v42 }
 0x1c6   :  { %v379_v26 = vrot.slane %v6863_v5, %v6873_v3 }
 0x201   :  { %v1518_v11 = vpop.f32.mrb[0].mxu0 }
 0x202   :  { %v5382_v13 = vadd.f32 %v1518_v11, %v1437_v8  ;;  %v1520_v14 = vpop.f32.mrb[1].mxu0  ;;  %v383_v8 = vrot.slane %v6863_v5, %v6876_v7  ;;  %v1720_v5 = vld [vmem:[%s7064_s6] sm:$0x3]  ;;  %s6577_s6 = smov 127  }
 0x203   :  { %v5384_v15 = vadd.f32 %v1520_v14, %v1439_v9  ;;  %v1522_v16 = vpop.f32.mrb[2].mxu0  ;;  %v1725_v28 = vrot.slane %v1720_v5, %v6858_v4  ;;  %v1729_v29 = vrot.slane %v1720_v5, %v6866_v6 }
 0x204   :  { %v1648_v17 = vmax.f32 %v5382_v13, 0.0  ;;  %v1523_v19 = vpop.f32.mrb[3].mxu0 }
 0x205   :  { %v1649_v20 = vmax.f32 %v5384_v15, 0.0 }
 0x206   :  { %v1652_v24 = vpack.c.bf16 %v1648_v17, %v1648_v17 }
 0x207   :  { %v1653_v21 = vpack.c.bf16 %v1649_v20, %v1649_v20 }
 0x209   :  { %2084 = vmatprep.mubr.bf16.mxu0 %v1653_v21 }
 0x20a   :  { %2085 = vmatmul.mubr.bf16.vlgmr.msra.gmra.mrb[4].mxu0 %v1652_v24  ;;  %v5856_v24 = vld [vmem:[#allocation11 + $0x30] sm:$0xff]  }
 0x20b   :  { %2094 = vmatpush1.bf16.msra.mxu0 %v5795_v23  ;;  %v5855_v23 = vld [vmem:[#allocation11 + $0x70] sm:$0xff]  }
 0x20c   :  { %2095 = vmatprep.subr.bf16.mxu0 %v5800_v25  ;;  %5313 = vmatprep.subr.bf16.mxu1 %v5855_v23  ;;  %v5857_v25 = vld [vmem:[#allocation11 + $0x78] sm:$0xff]  }
 0x20d   :  { %5314 = vmatpush3.bf16.msra.mxu1 %v5856_v24  ;;  %v5866_v24 = vld [vmem:[#allocation7 + $0x38] sm:$0xff]  }
 0x20e   :  { %5315 = vmatprep.subr.bf16.mxu1 %v5857_v25 }
 0x20f   :  { %2096 = vmatpush1.bf16.msra.mxu0 %v5798_v30 }
 0x210   :  { %2097 = vmatprep.subr.bf16.mxu0 %v5803_v31 }
 0x211   :  { %5316 = vmatpush3.bf16.msra.mxu1 %v5858_v27 }
 0x213   :  { %2098 = vmatpush1.bf16.msra.mxu0 %v5801_v33 }
 0x214   :  { %2099 = vmatprep.subr.bf16.mxu0 %v5806_v34 }
 0x217   :  { %2100 = vmatpush1.bf16.msra.mxu0 %v5804_v22 }
 0x218   :  { %2101 = vmatprep.subr.bf16.mxu0 %v5809_v37 }
 0x21b   :  { %2102 = vmatpush1.bf16.msra.mxu0 %v5807_v0 }
 0x21c   :  { %2103 = vmatprep.subr.bf16.mxu0 %v5812_v39 }
 0x21f   :  { %2104 = vmatpush1.bf16.msra.mxu0 %v5810_v43  ;;  %v2510_v43 = vld [vmem:[#allocation5] sm:$0x1] }
 0x220   :  { %2105 = vmatprep.subr.bf16.mxu0 %v5815_v44 }
 0x223   :  { %2106 = vmatpush1.bf16.msra.mxu0 %v5813_v46  ;;  %v2511_v46 = vunpack.c.l.bf16 %v2510_v43  ;;  %v5873_v43 = vld [vmem:[#allocation13 + $0x20] ss:$8 sps:$4 sm:$0xff]  }
 0x224   :  { %2107 = vmatprep.subr.bf16.mxu0 %v5818_v47 }
 0x227   :  { %2108 = vmatpush1.bf16.msra.mxu0 %v5816_v48 }
 0x228   :  { %2109 = vmatprep.subr.bf16.mxu0 %v5821_v50  ;;  %v2315_v50 = vand.u32 127, %v368_v36  ;;  %v6907_v36 = vld [vmem:[#allocation7] sm:$0xff]  }
 0x22b   :  { %2110 = vmatpush1.bf16.msra.mxu0 %v5819_v51  ;;  %v6899_v51 = vand.u32 15, %v2315_v50  ;;  %v5884_v50 = vld [vmem:[#allocation13 + $0x54] ss:$8 sps:$4 sm:$0xff]  }
 0x22c   :  { %2111 = vmatprep.subr.bf16.mxu0 %v5824_v52 }
 0x22d   :  { %vm2348_vm0 = vcmp.lt.s32.totalorder %v6899_v51, 15  ;;  %vm2355_vm1 = vcmp.lt.s32.totalorder %v6899_v51, 14  ;;  %vm2362_vm2 = vcmp.lt.s32.totalorder %v6899_v51, 12  ;;  %vm2369_vm4 = vcmp.lt.s32.totalorder %v6899_v51, 8  ;;  %v5900_v51 = vld [vmem:[#allocation14 + $0x28] ss:$16 sps:$4 sm:$0xff]  }
 0x22f   :  { %2112 = vmatpush1.bf16.msra.mxu0 %v5822_v53 }
 0x230   :  { %2113 = vmatprep.subr.bf16.mxu0 %v5827_v54 }
 0x233   :  { %2114 = vmatpush1.bf16.msra.mxu0 %v5825_v55 }
 0x234   :  { %2115 = vmatprep.subr.bf16.mxu0 %v5830_v56 }
 0x237   :  { %2116 = vmatpush1.bf16.msra.mxu0 %v5828_v57  ;;  %v6581_v57 = vmov 0.0  }
 0x238   :  { %2117 = vmatprep.subr.bf16.mxu0 %v5833_v58  ;;  %5341 = vmatprep.subr.bf16.mxu1 %v6581_v57 }
 0x23b   :  { %2118 = vmatpush1.bf16.msra.mxu0 %v5831_v59 }
 0x23c   :  { %2119 = vmatprep.subr.bf16.mxu0 %v5836_v60  ;;  %v6914_v60 = vld [vmem:[#allocation7 + $0x8] sm:$0xff]  }
 0x23f   :  { %2120 = vmatpush1.bf16.msra.mxu0 %v5834_v61 }
 0x240   :  { %2121 = vmatprep.subr.bf16.mxu0 %v5839_v62 }
 0x243   :  { %2122 = vmatpush1.bf16.msra.mxu0 %v5837_v63 }
 0x244   :  { %2123 = vmatprep.subr.bf16.mxu0 %v5842_v1 }
 0x247   :  { %2124 = vmatpush1.bf16.msra.mxu0 %v5840_v2 }
 0x280   :  { %v1641_v9 = vpop.f32.mrb[4].mxu1 }
 0x281   :  { %v5385_v11 = vadd.f32 %v1641_v9, %v379_v26  ;;  %v1643_v13 = vpop.f32.mrb[5].mxu1  ;;  %v5861_v26 = vld [vmem:[#allocation7 + $0x10] sm:$0xff]   ;;  %v5863_v9 = vld [vmem:[#allocation7 + $0x20] sm:$0xff]  }
 0x282   :  { %v5386_v14 = vadd.f32 %v1643_v13, %v383_v8  ;;  %v1645_v15 = vpop.f32.mrb[6].mxu1  ;;  %v5862_v8 = vld [vmem:[#allocation7 + $0x18] sm:$0xff]  }
 0x283   :  { %v1650_v16 = vmax.f32 %v5385_v11, 0.0  ;;  %v1646_v17 = vpop.f32.mrb[7].mxu1  ;;  %v5864_v15 = vld [vmem:[#allocation7 + $0x28] sm:$0xff]  }
 0x284   :  { %v1651_v19 = vmax.f32 %v5386_v14, 0.0 }
 0x285   :  { %v1654_v21 = vpack.c.bf16 %v1650_v16, %v1650_v16 }
 0x286   :  { %v1655_v20 = vpack.c.bf16 %v1651_v19, %v1651_v19 }
 0x288   :  { %2125 = vmatprep.mubr.bf16.mxu0 %v1655_v20 }
 0x289   :  { %2126 = vmatmul.mubr.bf16.vlgmr.msra.gmra.mrb[4].mxu0 %v1654_v21  ;;  %v5865_v21 = vld [vmem:[#allocation7 + $0x30] sm:$0xff]  }
 0x35c   :  { %v2127_v30 = vpop.f32.mrb[4].mxu0 }
 0x35d   :  { %v5387_v31 = vadd.f32 %v2127_v30, %v1725_v28  ;;  %v2129_v32 = vpop.f32.mrb[5].mxu0 }
 0x35e   :  { %v5388_v10 = vadd.f32 %v2129_v32, %v1729_v29  ;;  %v2131_v33 = vpop.f32.mrb[6].mxu0 }
 0x35f   :  { %v2134_v34 = vmax.f32 %v5387_v31, 0.0  ;;  %v2132_v18 = vpop.f32.mrb[7].mxu0 }
 0x360   :  { %v2135_v35 = vmax.f32 %v5388_v10, 0.0 }
 0x361   :  { %v2136_v37 = vpack.c.bf16 %v2134_v34, %v2134_v34 }
 0x362   :  { %v2137_v22 = vpack.c.bf16 %v2135_v35, %v2135_v35 }
 0x364   :  { %2305 = vmatprep.mubr.bf16.mxu1 %v2137_v22 }
 0x365   :  { %2306 = vmatmul.mubr.bf16.vlgmr.msra.gmra.mrb[8].mxu1 %v2136_v37 }
 0x366   :  { %5342 = vmatpush3.bf16.msra.mxu1 %v6907_v36  ;;  %5357 = vmatprep.mubr.msk.bf16.mxu1 %vm6584_vm3, %v6581_v57 }
 0x367   :  { %5343 = vmatprep.subr.bf16.mxu1 %v6581_v57 }
 0x36a   :  { %5344 = vmatpush3.bf16.msra.mxu1 %v6914_v60 }
 0x36b   :  { %5345 = vmatprep.subr.bf16.mxu1 %v6581_v57 }
 0x36e   :  { %5346 = vmatpush3.bf16.msra.mxu1 %v5861_v26 }
 0x36f   :  { %5347 = vmatprep.subr.bf16.mxu1 %v6581_v57 }
 0x372   :  { %5348 = vmatpush3.bf16.msra.mxu1 %v5862_v8 }
 0x373   :  { %5349 = vmatprep.subr.bf16.mxu1 %v6581_v57 }
 0x376   :  { %5350 = vmatpush3.bf16.msra.mxu1 %v5863_v9 }
 0x377   :  { %5351 = vmatprep.subr.bf16.mxu1 %v6581_v57 }
 0x37a   :  { %5352 = vmatpush3.bf16.msra.mxu1 %v5864_v15 }
 0x37b   :  { %5353 = vmatprep.subr.bf16.mxu1 %v6581_v57 }
 0x37e   :  { %5354 = vmatpush3.bf16.msra.mxu1 %v5865_v21 }
 0x37f   :  { %5355 = vmatprep.subr.bf16.mxu1 %v6581_v57 }
 0x382   :  { %5356 = vmatpush3.bf16.msra.mxu1 %v5866_v24 }
 0x383   :  { %5361 = vmatprep.subr.bf16.mxu1 %v6581_v57 }
 0x438   :  { %v5317_v38 = vpop.f32.mrb[8].mxu1 }
 0x439   :  { %v5318_v0 = vpop.f32.mrb[9].mxu1 }
 0x43a   :  { %v5319_v39 = vadd.f32 %v5318_v0, %v5317_v38  ;;  %v5320_v40 = vpop.f32.mrb[10].mxu1  ;;  %v5869_v38 = vld [vmem:[#allocation13 + $0x4] ss:$8 sps:$4 sm:$0xff]   ;;  %v5872_v0 = vld [vmem:[#allocation13 + $0x14] ss:$8 sps:$4 sm:$0xff]  }
 0x43b   :  { %v5321_v41 = vpop.f32.mrb[11].mxu1  ;;  %v6586_v40 = vmov 0  }
 0x43c   :  { %v2308_v44 = vadd.f32 %v5319_v39, %v4999_v12  ;;  %v5867_v12 = vld [vmem:[#allocation13] ss:$8 sps:$4 sm:$0xff]   ;;  %v5870_v39 = vld [vmem:[#allocation13 + $0x10] ss:$8 sps:$4 sm:$0xff]   ;;  %v5875_v41 = vld [vmem:[#allocation13 + $0x24] ss:$8 sps:$4 sm:$0xff]  }
 0x43e   :  { %v6890_v45 = vmax.f32 %v2308_v44, 0.0  ;;  %v5878_v44 = vld [vmem:[#allocation13 + $0x34] ss:$8 sps:$4 sm:$0xff]  }
 0x440   :  { %2344 = vrot.lane.b32.xlu0 %v6890_v45, %s6577_s6  ;;  %v2512_v47 = vadd.f32 %v2511_v46, %v6890_v45  ;;  %v5881_v46 = vld [vmem:[#allocation13 + $0x44] ss:$8 sps:$4 sm:$0xff]  }
 0x442   :  { %v6895_v48 = vmul.f32 2.0, %v2512_v47  ;;  %v5879_v47 = vld [vmem:[#allocation13 + $0x40] ss:$8 sps:$4 sm:$0xff]  }
 0x444   :  { %2346 = vrot.lane.b32.xlu0 %v6890_v45, %s6578_s1 }
 0x448   :  { %2514 = vrot.lane.b32.xlu0 %v6895_v48, %s6577_s6 }
 0x4b2   :  { %v2345_v52 = vpop.permute.xlu0 %2344 }
 0x4b6   :  { %v2347_v53 = vpop.permute.xlu0 %2346 }
 0x4b7   :  { %v2349_v54 = vsel %vm2348_vm0, %v2345_v52, %v2347_v53  ;;  %v5882_v52 = vld [vmem:[#allocation13 + $0x50] ss:$8 sps:$4 sm:$0xff]   ;;  %v5887_v53 = vld [vmem:[#allocation13 + $0x64] ss:$8 sps:$4 sm:$0xff]  }
 0x4b8   :  { %v2350_v55 = vmax.f32 %v6890_v45, %v2349_v54  ;;  %v5885_v54 = vld [vmem:[#allocation13 + $0x60] ss:$8 sps:$4 sm:$0xff]  }
 0x4ba   :  { %2351 = vrot.lane.b32.xlu1 %v2350_v55, %s6579_s8  ;;  %v2515_v62 = vpop.permute.xlu0 %2514 }
 0x4be   :  { %2353 = vrot.lane.b32.xlu1 %v2350_v55, %s6580_s22 }
 0x4c2   :  { %2516 = vrot.lane.b32.xlu1 %v6895_v48, %s6578_s1 }
 0x52c   :  { %v2352_v56 = vpop.permute.xlu1 %2351 }
 0x530   :  { %v2354_v58 = vpop.permute.xlu1 %2353 }
 0x531   :  { %v2356_v59 = vsel %vm2355_vm1, %v2352_v56, %v2354_v58  ;;  %v5888_v56 = vld [vmem:[#allocation13 + $0x70] ss:$8 sps:$4 sm:$0xff]  }
 0x532   :  { %v2357_v61 = vmax.f32 %v2350_v55, %v2356_v59  ;;  %v5890_v55 = vld [vmem:[#allocation13 + $0x74] ss:$8 sps:$4 sm:$0xff]  }
 0x534   :  { %2360 = vrot.lane.b32.xlu1 %v2357_v61, %s6582_s5  ;;  %v2517_v63 = vpop.permute.xlu1 %2516  ;;  %2358 = vrot.lane.b32.xlu0 %v2357_v61, %s6583_s29 }
 0x535   :  { %v2518_v1 = vsel %vm2348_vm0, %v2515_v62, %v2517_v63  ;;  %v5893_v62 = vld [vmem:[#allocation14 + $0x4] ss:$16 sps:$4 sm:$0xff]   ;;  %v5894_v63 = vld [vmem:[#allocation14 + $0x8] ss:$16 sps:$4 sm:$0xff]  }
 0x536   :  { %v2519_v2 = vmax.f32 %v6895_v48, %v2518_v1  ;;  %v5896_v1 = vld [vmem:[#allocation14 + $0xc] ss:$16 sps:$4 sm:$0xff]   ;;  %3100 = vmatprep.subr.bf16.mxu0 %v5893_v62  ;;  %v5975_v62 = vld [vmem:[#allocation14 + $0x1c0] ss:$16 sps:$4 sm:$0xff]  }
 0x538   :  { %2522 = vrot.lane.b32.xlu1 %v2519_v2, %s6580_s22  ;;  %2520 = vrot.lane.b32.xlu0 %v2519_v2, %s6579_s8 }
 0x5a6   :  { %v2361_v11 = vpop.permute.xlu1 %2360  ;;  %v2359_v13 = vpop.permute.xlu0 %2358 }
 0x5a7   :  { %v2363_v14 = vsel %vm2362_vm2, %v2359_v13, %v2361_v11  ;;  %v5908_v11 = vld [vmem:[#allocation14 + $0x4c] ss:$16 sps:$4 sm:$0xff]   ;;  %v5906_v13 = vld [vmem:[#allocation14 + $0x48] ss:$16 sps:$4 sm:$0xff]  }
 0x5a8   :  { %v2364_v16 = vmax.f32 %v2357_v61, %v2363_v14  ;;  %v5891_v61 = vld [vmem:[#allocation14] ss:$16 sps:$4 sm:$0xff]   ;;  %v5911_v14 = vld [vmem:[#allocation14 + $0x64] ss:$16 sps:$4 sm:$0xff]  }
 0x5a9   :  { %3101 = vmatpush1.bf16.msra.mxu0 %v5891_v61  ;;  %v5980_v61 = vld [vmem:[#allocation14 + $0x1cc] ss:$16 sps:$4 sm:$0xff]  }
 0x5aa   :  { %v2523_v17 = vpop.permute.xlu1 %2522  ;;  %2367 = vrot.lane.b32.xlu1 %v2364_v16, %s6571_s0  ;;  %2365 = vrot.lane.b32.xlu0 %v2364_v16, %s6585_s21  ;;  %v2521_v19 = vpop.permute.xlu0 %2520 }
 0x5ab   :  { %v2524_v20 = vsel %vm2355_vm1, %v2521_v19, %v2523_v17  ;;  %v5912_v17 = vld [vmem:[#allocation14 + $0x68] ss:$16 sps:$4 sm:$0xff]   ;;  %v5917_v19 = vld [vmem:[#allocation14 + $0x84] ss:$16 sps:$4 sm:$0xff]  }
 0x5ac   :  { %v2525_v23 = vmax.f32 %v2519_v2, %v2524_v20  ;;  %v5899_v2 = vld [vmem:[#allocation14 + $0x24] ss:$16 sps:$4 sm:$0xff]   ;;  %v5920_v20 = vld [vmem:[#allocation14 + $0x8c] ss:$16 sps:$4 sm:$0xff]  }
 0x5ad   :  { %3102 = vmatprep.subr.bf16.mxu0 %v5899_v2  ;;  %v5986_v2 = vld [vmem:[#allocation14 + $0x1ec] ss:$16 sps:$4 sm:$0xff]  }
 0x5ae   :  { %2528 = vrot.lane.b32.xlu1 %v2525_v23, %s6582_s5  ;;  %2526 = vrot.lane.b32.xlu0 %v2525_v23, %s6583_s29 }
 0x61c   :  { %v2368_v25 = vpop.permute.xlu1 %2367  ;;  %v2366_v27 = vpop.permute.xlu0 %2365 }
 0x61d   :  { %v2370_v5 = vsel %vm2369_vm4, %v2366_v27, %v2368_v25  ;;  %v5926_v25 = vld [vmem:[#allocation14 + $0xac] ss:$16 sps:$4 sm:$0xff]   ;;  %v5921_v27 = vld [vmem:[#allocation14 + $0xa0] ss:$16 sps:$4 sm:$0xff]  }
 0x61e   :  { %v2371_v28 = vmax.f32 %v2364_v16, %v2370_v5  ;;  %v5909_v16 = vld [vmem:[#allocation14 + $0x60] ss:$16 sps:$4 sm:$0xff]   ;;  %v5924_v5 = vld [vmem:[#allocation14 + $0xa8] ss:$16 sps:$4 sm:$0xff]  }
 0x620   :  { %v2372_v29 = vsub.f32 %v6890_v45, %v2371_v28  ;;  %v2529_v30 = vpop.permute.xlu1 %2528  ;;  %v2527_v31 = vpop.permute.xlu0 %2526  ;;  %v5876_v45 = vld [vmem:[#allocation13 + $0x30] ss:$8 sps:$4 sm:$0xff]   ;;  %v5929_v28 = vld [vmem:[#allocation14 + $0xc4] ss:$16 sps:$4 sm:$0xff]  }
 0x621   :  { %v2530_v32 = vsel %vm2362_vm2, %v2527_v31, %v2529_v30  ;;  %v5927_v30 = vld [vmem:[#allocation14 + $0xc0] ss:$16 sps:$4 sm:$0xff]   ;;  %v5930_v31 = vld [vmem:[#allocation14 + $0xc8] ss:$16 sps:$4 sm:$0xff]  }
 0x622   :  { %v2373_v10 = vmul.f32 1.442695, %v2372_v29  ;;  %v6945_v33 = vmax.f32 %v2525_v23, %v2530_v32  ;;  %v5918_v23 = vld [vmem:[#allocation14 + $0x88] ss:$16 sps:$4 sm:$0xff]   ;;  %v5932_v29 = vld [vmem:[#allocation14 + $0xcc] ss:$16 sps:$4 sm:$0xff]  }
 0x623   :  { %v5935_v32 = vld [vmem:[#allocation14 + $0xe4] ss:$16 sps:$4 sm:$0xff]  }
 0x624   :  { %6275 = vpow2.f32 %v2373_v10  ;;  %2534 = vrot.lane.b32.xlu1 %v6945_v33, %s6571_s0  ;;  %2532 = vrot.lane.b32.xlu0 %v6945_v33, %s6585_s21  ;;  %v5938_v10 = vld [vmem:[#allocation14 + $0xec] ss:$16 sps:$4 sm:$0xff]  }
 0x62e   :  { %v6950_v34 = vpop.eup %6275 }
 0x62f   :  { %v2375_v18 = vpack.c.bf16 %v6950_v34, %v6950_v34 }
 0x631   :  { %v2376_v35 = vunpack.c.l.bf16 %v2375_v18 }
 0x633   :  { %v2377_v22 = vsub.f32 %v6950_v34, %v2376_v35  ;;  %v5941_v35 = vld [vmem:[#allocation14 + $0x104] ss:$16 sps:$4 sm:$0xff]  }
 0x635   :  { %v2378_v37 = vpack.c.bf16 %v2377_v22, %v2377_v22  ;;  %v5944_v22 = vld [vmem:[#allocation14 + $0x10c] ss:$16 sps:$4 sm:$0xff]  }
 0x637   :  { %5358 = vmatmul.mubr.bf16.vlgmr.msra.gmra.mrb[12].mxu1 %v2378_v37  ;;  %v5939_v37 = vld [vmem:[#allocation14 + $0x100] ss:$16 sps:$4 sm:$0xff]  }
 0x638   :  { %5362 = vmatpush3.bf16.msra.mxu1 %v6907_v36  ;;  %5377 = vmatprep.mubr.msk.bf16.mxu1 %vm6584_vm3, %v6581_v57 }
 0x639   :  { %5363 = vmatprep.subr.bf16.mxu1 %v6581_v57 }
 0x63c   :  { %5364 = vmatpush3.bf16.msra.mxu1 %v6914_v60  ;;  %v6587_v60 = vmov 1.0|1.0  }
 0x63d   :  { %5365 = vmatprep.subr.bf16.mxu1 %v6581_v57 }
 0x640   :  { %5366 = vmatpush3.bf16.msra.mxu1 %v5861_v26  ;;  %v5902_v26 = vld [vmem:[#allocation14 + $0x2c] ss:$16 sps:$4 sm:$0xff]  }
 0x641   :  { %5367 = vmatprep.subr.bf16.mxu1 %v6581_v57 }
 0x644   :  { %5368 = vmatpush3.bf16.msra.mxu1 %v5862_v8  ;;  %v5897_v8 = vld [vmem:[#allocation14 + $0x20] ss:$16 sps:$4 sm:$0xff]  }
 0x645   :  { %5369 = vmatprep.subr.bf16.mxu1 %v6581_v57  ;;  %3103 = vmatpush1.bf16.msra.mxu0 %v5897_v8  ;;  %v5984_v8 = vld [vmem:[#allocation14 + $0x1e8] ss:$16 sps:$4 sm:$0xff]  }
 0x648   :  { %5370 = vmatpush3.bf16.msra.mxu1 %v5863_v9  ;;  %v5905_v9 = vld [vmem:[#allocation14 + $0x44] ss:$16 sps:$4 sm:$0xff]  }
 0x649   :  { %5371 = vmatprep.subr.bf16.mxu1 %v6581_v57  ;;  %3104 = vmatprep.subr.bf16.mxu0 %v5905_v9  ;;  %v5992_v9 = vld [vmem:[#allocation16 + $0xc] ss:$24 sps:$4 sm:$0xff]  }
 0x64c   :  { %5372 = vmatpush3.bf16.msra.mxu1 %v5864_v15  ;;  %v5914_v15 = vld [vmem:[#allocation14 + $0x6c] ss:$16 sps:$4 sm:$0xff]  }
 0x64d   :  { %5373 = vmatprep.subr.bf16.mxu1 %v6581_v57 }
 0x650   :  { %5374 = vmatpush3.bf16.msra.mxu1 %v5865_v21  ;;  %v5915_v21 = vld [vmem:[#allocation14 + $0x80] ss:$16 sps:$4 sm:$0xff]  }
 0x651   :  { %5375 = vmatprep.subr.bf16.mxu1 %v6581_v57 }
 0x654   :  { %5376 = vmatpush3.bf16.msra.mxu1 %v5866_v24  ;;  %v5923_v24 = vld [vmem:[#allocation14 + $0xa4] ss:$16 sps:$4 sm:$0xff]  }
 0x655   :  { %2649 = vmatprep.subr.bf16.mxu1 %v5869_v38  ;;  %v5942_v38 = vld [vmem:[#allocation14 + $0x108] ss:$16 sps:$4 sm:$0xff]  }
 0x657   :  { %5378 = vmatmul.mubr.bf16.vlgmr.msra.gmra.mrb[12].mxu1 %v2375_v18  ;;  %v5936_v18 = vld [vmem:[#allocation14 + $0xe8] ss:$16 sps:$4 sm:$0xff]  }
 0x658   :  { %2650 = vmatpush1.bf16.msra.mxu1 %v5867_v12  ;;  %2681 = vmatprep.mubr.bf16.mxu1 %v6586_v40  ;;  %v5947_v12 = vld [vmem:[#allocation14 + $0x124] ss:$16 sps:$4 sm:$0xff]   ;;  %v5948_v40 = vld [vmem:[#allocation14 + $0x128] ss:$16 sps:$4 sm:$0xff]  }
 0x659   :  { %2651 = vmatprep.subr.bf16.mxu1 %v5872_v0  ;;  %v5950_v0 = vld [vmem:[#allocation14 + $0x12c] ss:$16 sps:$4 sm:$0xff]  }
 0x65c   :  { %2652 = vmatpush1.bf16.msra.mxu1 %v5870_v39  ;;  %v5945_v39 = vld [vmem:[#allocation14 + $0x120] ss:$16 sps:$4 sm:$0xff]  }
 0x65d   :  { %2653 = vmatprep.subr.bf16.mxu1 %v5875_v41  ;;  %v5953_v41 = vld [vmem:[#allocation14 + $0x144] ss:$16 sps:$4 sm:$0xff]  }
 0x660   :  { %2654 = vmatpush1.bf16.msra.mxu1 %v5873_v43  ;;  %v5956_v43 = vld [vmem:[#allocation14 + $0x14c] ss:$16 sps:$4 sm:$0xff]  }
 0x661   :  { %2655 = vmatprep.subr.bf16.mxu1 %v5878_v44  ;;  %v5951_v44 = vld [vmem:[#allocation14 + $0x140] ss:$16 sps:$4 sm:$0xff]  }
 0x664   :  { %2656 = vmatpush1.bf16.msra.mxu1 %v5876_v45  ;;  %v5954_v45 = vld [vmem:[#allocation14 + $0x148] ss:$16 sps:$4 sm:$0xff]  }
 0x665   :  { %2657 = vmatprep.subr.bf16.mxu1 %v5881_v46  ;;  %v5959_v46 = vld [vmem:[#allocation14 + $0x164] ss:$16 sps:$4 sm:$0xff]  }
 0x668   :  { %2658 = vmatpush1.bf16.msra.mxu1 %v5879_v47  ;;  %v5962_v47 = vld [vmem:[#allocation14 + $0x16c] ss:$16 sps:$4 sm:$0xff]  }
 0x669   :  { %2659 = vmatprep.subr.bf16.mxu1 %v5884_v50  ;;  %v5957_v50 = vld [vmem:[#allocation14 + $0x160] ss:$16 sps:$4 sm:$0xff]  }
 0x66c   :  { %2660 = vmatpush1.bf16.msra.mxu1 %v5882_v52  ;;  %v5960_v52 = vld [vmem:[#allocation14 + $0x168] ss:$16 sps:$4 sm:$0xff]  }
 0x66d   :  { %2661 = vmatprep.subr.bf16.mxu1 %v5887_v53  ;;  %v5965_v53 = vld [vmem:[#allocation14 + $0x184] ss:$16 sps:$4 sm:$0xff]  }
 0x670   :  { %2662 = vmatpush1.bf16.msra.mxu1 %v5885_v54  ;;  %v5968_v54 = vld [vmem:[#allocation14 + $0x18c] ss:$16 sps:$4 sm:$0xff]  }
 0x671   :  { %2663 = vmatprep.subr.bf16.mxu1 %v5890_v55  ;;  %v5963_v55 = vld [vmem:[#allocation14 + $0x180] ss:$16 sps:$4 sm:$0xff]  }
 0x674   :  { %2664 = vmatpush1.bf16.msra.mxu1 %v5888_v56  ;;  %v5966_v56 = vld [vmem:[#allocation14 + $0x188] ss:$16 sps:$4 sm:$0xff]  }
 0x675   :  { %3141 = vmatprep.subr.bf16.mxu1 %v5896_v1  ;;  %v5983_v1 = vld [vmem:[#allocation14 + $0x1e4] ss:$16 sps:$4 sm:$0xff]  }
 0x696   :  { %v2535_v36 = vpop.permute.xlu1 %2534  ;;  %v2533_v57 = vpop.permute.xlu0 %2532 }
 0x697   :  { %v2536_v58 = vsel %vm2369_vm4, %v2533_v57, %v2535_v36  ;;  %v5971_v36 = vld [vmem:[#allocation14 + $0x1a4] ss:$16 sps:$4 sm:$0xff]   ;;  %v5974_v57 = vld [vmem:[#allocation14 + $0x1ac] ss:$16 sps:$4 sm:$0xff]  }
 0x698   :  { %v2537_v59 = vmax.f32 %v6945_v33, %v2536_v58  ;;  %v5933_v33 = vld [vmem:[#allocation14 + $0xe0] ss:$16 sps:$4 sm:$0xff]  }
 0x699   :  { %v5969_v58 = vld [vmem:[#allocation14 + $0x1a0] ss:$16 sps:$4 sm:$0xff]  }
 0x69a   :  { %vm2538_vm5 = vcmp.eq.f32.partialorder %v6895_v48, %v2537_v59  ;;  %v5903_v48 = vld [vmem:[#allocation14 + $0x40] ss:$16 sps:$4 sm:$0xff]   ;;  %v5972_v59 = vld [vmem:[#allocation14 + $0x1a8] ss:$16 sps:$4 sm:$0xff]  }
 0x69b   :  { %vm5040_vm6 = vmpackc.low %vm2538_vm5, %vm2538_vm5  ;;  %3105 = vmatpush1.bf16.msra.mxu0 %v5903_v48 }
 0x69c   :  { %5041 = vmatmul.mubr.msk.bf16.vlgmr.msra.gmra.mrb[16].mxu1 %vm5040_vm6, %v6587_v60  ;;  %3106 = vmatprep.subr.bf16.mxu0 %v5911_v14  ;;  %v5977_v60 = vld [vmem:[#allocation14 + $0x1c4] ss:$16 sps:$4 sm:$0xff]  }
 0x69d   :  { %3142 = vmatpush1.bf16.msra.mxu1 %v5894_v63  ;;  %v5978_v63 = vld [vmem:[#allocation14 + $0x1c8] ss:$16 sps:$4 sm:$0xff]  }
 0x69e   :  { %3143 = vmatprep.subr.bf16.mxu1 %v5902_v26  ;;  %v5981_v26 = vld [vmem:[#allocation14 + $0x1e0] ss:$16 sps:$4 sm:$0xff]  }
 0x69f   :  { %3107 = vmatpush1.bf16.msra.mxu0 %v5909_v16 }
 0x6a0   :  { %3108 = vmatprep.subr.bf16.mxu0 %v5917_v19 }
 0x6a1   :  { %3144 = vmatpush1.bf16.msra.mxu1 %v5900_v51  ;;  %v5989_v51 = vld [vmem:[#allocation16 + $0x4] ss:$24 sps:$4 sm:$0xff]  }
 0x6a2   :  { %3145 = vmatprep.subr.bf16.mxu1 %v5908_v11 }
 0x6a3   :  { %3109 = vmatpush1.bf16.msra.mxu0 %v5915_v21 }
 0x6a4   :  { %3110 = vmatprep.subr.bf16.mxu0 %v5923_v24 }
 0x6a5   :  { %3146 = vmatpush1.bf16.msra.mxu1 %v5906_v13 }
 0x6a6   :  { %3147 = vmatprep.subr.bf16.mxu1 %v5914_v15 }
 0x6a7   :  { %3111 = vmatpush1.bf16.msra.mxu0 %v5921_v27 }
 0x6a8   :  { %3112 = vmatprep.subr.bf16.mxu0 %v5929_v28 }
 0x6a9   :  { %3148 = vmatpush1.bf16.msra.mxu1 %v5912_v17  ;;  %v2557_v17 = vld [vmem:[%s7068_s10] sm:$0x3] }
 0x6aa   :  { %3149 = vmatprep.subr.bf16.mxu1 %v5920_v20  ;;  %v2562_v19 = vrot.slane %v2557_v17, %v6858_v4  ;;  %v2566_v20 = vrot.slane %v2557_v17, %v6866_v6  ;;  %v6056_v17 = vld [vmem:[#allocation16 + $0x218] ss:$24 sps:$4 sm:$0xff]  }
 0x6ab   :  { %3113 = vmatpush1.bf16.msra.mxu0 %v5927_v30 }
 0x6ac   :  { %3114 = vmatprep.subr.bf16.mxu0 %v5935_v32 }
 0x6ad   :  { %3150 = vmatpush1.bf16.msra.mxu1 %v5918_v23 }
 0x6ae   :  { %3151 = vmatprep.subr.bf16.mxu1 %v5926_v25 }
 0x6af   :  { %3115 = vmatpush1.bf16.msra.mxu0 %v5933_v33  ;;  %v5998_v33 = vld [vmem:[#allocation16 + $0x3c] ss:$24 sps:$4 sm:$0xff]  }
 0x6b0   :  { %3116 = vmatprep.subr.bf16.mxu0 %v5941_v35  ;;  %v5996_v35 = vld [vmem:[#allocation16 + $0x38] ss:$24 sps:$4 sm:$0xff]  }
 0x6b1   :  { %3152 = vmatpush1.bf16.msra.mxu1 %v5924_v5 }
 0x6b2   :  { %3153 = vmatprep.subr.bf16.mxu1 %v5932_v29 }
 0x6b3   :  { %3117 = vmatpush1.bf16.msra.mxu0 %v5939_v37  ;;  %v6004_v37 = vld [vmem:[#allocation16 + $0x6c] ss:$24 sps:$4 sm:$0xff]  }
 0x6b4   :  { %3118 = vmatprep.subr.bf16.mxu0 %v5947_v12  ;;  %v6002_v12 = vld [vmem:[#allocation16 + $0x68] ss:$24 sps:$4 sm:$0xff]  }
 0x6b5   :  { %3154 = vmatpush1.bf16.msra.mxu1 %v5930_v31  ;;  %v5987_v31 = vld [vmem:[#allocation16] ss:$24 sps:$4 sm:$0xff]  }
 0x6b6   :  { %3155 = vmatprep.subr.bf16.mxu1 %v5938_v10  ;;  %v5995_v10 = vld [vmem:[#allocation16 + $0x34] ss:$24 sps:$4 sm:$0xff]  }
 0x6b7   :  { %3119 = vmatpush1.bf16.msra.mxu0 %v5945_v39  ;;  %v6010_v39 = vld [vmem:[#allocation16 + $0x9c] ss:$24 sps:$4 sm:$0xff]  }
 0x6b8   :  { %3120 = vmatprep.subr.bf16.mxu0 %v5953_v41  ;;  %v6008_v41 = vld [vmem:[#allocation16 + $0x98] ss:$24 sps:$4 sm:$0xff]  }
 0x6b9   :  { %3156 = vmatpush1.bf16.msra.mxu1 %v5936_v18  ;;  %v5993_v18 = vld [vmem:[#allocation16 + $0x30] ss:$24 sps:$4 sm:$0xff]  }
 0x6ba   :  { %3157 = vmatprep.subr.bf16.mxu1 %v5944_v22  ;;  %v6001_v22 = vld [vmem:[#allocation16 + $0x64] ss:$24 sps:$4 sm:$0xff]  }
 0x6bb   :  { %3121 = vmatpush1.bf16.msra.mxu0 %v5951_v44  ;;  %v6016_v44 = vld [vmem:[#allocation16 + $0xcc] ss:$24 sps:$4 sm:$0xff]  }
 0x6bc   :  { %3122 = vmatprep.subr.bf16.mxu0 %v5959_v46  ;;  %v6014_v46 = vld [vmem:[#allocation16 + $0xc8] ss:$24 sps:$4 sm:$0xff]  }
 0x6bd   :  { %3158 = vmatpush1.bf16.msra.mxu1 %v5942_v38  ;;  %v5999_v38 = vld [vmem:[#allocation16 + $0x60] ss:$24 sps:$4 sm:$0xff]  }
 0x6be   :  { %3159 = vmatprep.subr.bf16.mxu1 %v5950_v0  ;;  %v6007_v0 = vld [vmem:[#allocation16 + $0x94] ss:$24 sps:$4 sm:$0xff]  }
 0x6bf   :  { %3123 = vmatpush1.bf16.msra.mxu0 %v5957_v50  ;;  %v6022_v50 = vld [vmem:[#allocation16 + $0xfc] ss:$24 sps:$4 sm:$0xff]  }
 0x6c0   :  { %3124 = vmatprep.subr.bf16.mxu0 %v5965_v53  ;;  %v6020_v53 = vld [vmem:[#allocation16 + $0xf8] ss:$24 sps:$4 sm:$0xff]  }
 0x6c1   :  { %3160 = vmatpush1.bf16.msra.mxu1 %v5948_v40  ;;  %v6005_v40 = vld [vmem:[#allocation16 + $0x90] ss:$24 sps:$4 sm:$0xff]  }
 0x6c2   :  { %3161 = vmatprep.subr.bf16.mxu1 %v5956_v43  ;;  %v6013_v43 = vld [vmem:[#allocation16 + $0xc4] ss:$24 sps:$4 sm:$0xff]  }
 0x6c3   :  { %3125 = vmatpush1.bf16.msra.mxu0 %v5963_v55  ;;  %v6028_v55 = vld [vmem:[#allocation16 + $0x12c] ss:$24 sps:$4 sm:$0xff]  }
 0x6c4   :  { %3126 = vmatprep.subr.bf16.mxu0 %v5971_v36  ;;  %v6026_v36 = vld [vmem:[#allocation16 + $0x128] ss:$24 sps:$4 sm:$0xff]  }
 0x6c5   :  { %3162 = vmatpush1.bf16.msra.mxu1 %v5954_v45  ;;  %v6011_v45 = vld [vmem:[#allocation16 + $0xc0] ss:$24 sps:$4 sm:$0xff]  }
 0x6c6   :  { %3163 = vmatprep.subr.bf16.mxu1 %v5962_v47  ;;  %v6019_v47 = vld [vmem:[#allocation16 + $0xf4] ss:$24 sps:$4 sm:$0xff]  }
 0x6c7   :  { %3127 = vmatpush1.bf16.msra.mxu0 %v5969_v58  ;;  %v6034_v58 = vld [vmem:[#allocation16 + $0x15c] ss:$24 sps:$4 sm:$0xff]  }
 0x6c8   :  { %3128 = vmatprep.subr.bf16.mxu0 %v5977_v60  ;;  %v6032_v60 = vld [vmem:[#allocation16 + $0x158] ss:$24 sps:$4 sm:$0xff]  }
 0x6c9   :  { %3164 = vmatpush1.bf16.msra.mxu1 %v5960_v52  ;;  %v6017_v52 = vld [vmem:[#allocation16 + $0xf0] ss:$24 sps:$4 sm:$0xff]  }
 0x6ca   :  { %3165 = vmatprep.subr.bf16.mxu1 %v5968_v54  ;;  %v6025_v54 = vld [vmem:[#allocation16 + $0x124] ss:$24 sps:$4 sm:$0xff]  }
 0x6cb   :  { %3129 = vmatpush1.bf16.msra.mxu0 %v5975_v62  ;;  %v6040_v62 = vld [vmem:[#allocation16 + $0x18c] ss:$24 sps:$4 sm:$0xff]  }
 0x6cc   :  { %3130 = vmatprep.subr.bf16.mxu0 %v5983_v1  ;;  %v6038_v1 = vld [vmem:[#allocation16 + $0x188] ss:$24 sps:$4 sm:$0xff]  }
 0x6cd   :  { %3166 = vmatpush1.bf16.msra.mxu1 %v5966_v56  ;;  %v6023_v56 = vld [vmem:[#allocation16 + $0x120] ss:$24 sps:$4 sm:$0xff]  }
 0x6ce   :  { %3167 = vmatprep.subr.bf16.mxu1 %v5974_v57  ;;  %v6031_v57 = vld [vmem:[#allocation16 + $0x154] ss:$24 sps:$4 sm:$0xff]  }
 0x6cf   :  { %3131 = vmatpush1.bf16.msra.mxu0 %v5981_v26  ;;  %v6046_v26 = vld [vmem:[#allocation16 + $0x1bc] ss:$24 sps:$4 sm:$0xff]  }
 0x6d0   :  { %4374 = vmatprep.subr.bf16.mxu0 %v5989_v51  ;;  %v6044_v51 = vld [vmem:[#allocation16 + $0x1b8] ss:$24 sps:$4 sm:$0xff]  }
 0x6d1   :  { %3168 = vmatpush1.bf16.msra.mxu1 %v5972_v59  ;;  %v6029_v59 = vld [vmem:[#allocation16 + $0x150] ss:$24 sps:$4 sm:$0xff]  }
 0x6d2   :  { %3169 = vmatprep.subr.bf16.mxu1 %v5980_v61  ;;  %v6037_v61 = vld [vmem:[#allocation16 + $0x184] ss:$24 sps:$4 sm:$0xff]  }
 0x6d5   :  { %3170 = vmatpush1.bf16.msra.mxu1 %v5978_v63  ;;  %v6035_v63 = vld [vmem:[#allocation16 + $0x180] ss:$24 sps:$4 sm:$0xff]  }
 0x6d6   :  { %3171 = vmatprep.subr.bf16.mxu1 %v5986_v2  ;;  %v6043_v2 = vld [vmem:[#allocation16 + $0x1b4] ss:$24 sps:$4 sm:$0xff]  }
 0x6d9   :  { %3172 = vmatpush1.bf16.msra.mxu1 %v5984_v8  ;;  %v6041_v8 = vld [vmem:[#allocation16 + $0x1b0] ss:$24 sps:$4 sm:$0xff]  }
 0x6da   :  { %4456 = vmatprep.subr.bf16.mxu1 %v5992_v9  ;;  %v6049_v9 = vld [vmem:[#allocation16 + $0x1e4] ss:$24 sps:$4 sm:$0xff]  }
 0x72a   :  { %v2501_v11 = vpop.f32.mrb[12].mxu1 }
 0x72b   :  { %6277 = vrcp.f32 %v2501_v11  ;;  %v5379_v48 = vpop.f32.mrb[13].mxu1  ;;  %v6052_v11 = vld [vmem:[#allocation16 + $0x1ec] ss:$24 sps:$4 sm:$0xff]  }
 0x72c   :  { %v2504_v13 = vpop.f32.mrb[14].mxu1  ;;  %v6047_v48 = vld [vmem:[#allocation16 + $0x1e0] ss:$24 sps:$4 sm:$0xff]  }
 0x72d   :  { %v5380_v14 = vpop.f32.mrb[15].mxu1  ;;  %v6050_v13 = vld [vmem:[#allocation16 + $0x1e8] ss:$24 sps:$4 sm:$0xff]  }
 0x72e   :  { %v6055_v14 = vld [vmem:[#allocation16 + $0x214] ss:$24 sps:$4 sm:$0xff]  }
 0x735   :  { %v6278_v15 = vpop.eup %6277 }
 0x736   :  { %v2508_v16 = vmul.f32 %v6278_v15, %v6950_v34  ;;  %v5990_v34 = vld [vmem:[#allocation16 + $0x8] ss:$24 sps:$4 sm:$0xff]   ;;  %v6058_v15 = vld [vmem:[#allocation16 + $0x21c] ss:$24 sps:$4 sm:$0xff]  }
 0x738   :  { %2509 = vst [vmem:[#allocation18] sm:$0x3] %v2508_v16  ;;  %v6053_v16 = vld [vmem:[#allocation16 + $0x210] ss:$24 sps:$4 sm:$0xff]  }
 0x76f   :  { %v2683_v21 = vpop.f32.mrb[16].mxu1 }
 0x770   :  { %v2684_v23 = vadd.f32 %v2683_v21, %v2562_v19  ;;  %v2685_v24 = vpop.f32.mrb[17].mxu1  ;;  %v6061_v19 = vld [vmem:[#allocation16 + $0x244] ss:$24 sps:$4 sm:$0xff]   ;;  %v6059_v21 = vld [vmem:[#allocation16 + $0x240] ss:$24 sps:$4 sm:$0xff]  }
 0x771   :  { %v2686_v25 = vadd.f32 %v2685_v24, %v2566_v20  ;;  %v2687_v27 = vpop.f32.mrb[18].mxu1  ;;  %v6064_v20 = vld [vmem:[#allocation16 + $0x24c] ss:$24 sps:$4 sm:$0xff]  }
 0x772   :  { %v2690_v5 = vmax.f32 %v2684_v23, 0.0  ;;  %v2688_v28 = vpop.f32.mrb[19].mxu1  ;;  %v6062_v23 = vld [vmem:[#allocation16 + $0x248] ss:$24 sps:$4 sm:$0xff]   ;;  %v6067_v24 = vld [vmem:[#allocation16 + $0x274] ss:$24 sps:$4 sm:$0xff]  }
 0x773   :  { %v2691_v29 = vmax.f32 %v2686_v25, 0.0  ;;  %v6070_v25 = vld [vmem:[#allocation16 + $0x27c] ss:$24 sps:$4 sm:$0xff]   ;;  %v6065_v27 = vld [vmem:[#allocation16 + $0x270] ss:$24 sps:$4 sm:$0xff]  }
 0x774   :  { %v2692_v32 = vpack.c.bf16 %v2690_v5, %v2690_v5  ;;  %v6068_v5 = vld [vmem:[#allocation16 + $0x278] ss:$24 sps:$4 sm:$0xff]   ;;  %v6073_v28 = vld [vmem:[#allocation16 + $0x2a4] ss:$24 sps:$4 sm:$0xff]  }
 0x775   :  { %v2693_v30 = vpack.c.bf16 %v2691_v29, %v2691_v29  ;;  %v6076_v29 = vld [vmem:[#allocation16 + $0x2ac] ss:$24 sps:$4 sm:$0xff]  }
 0x777   :  { %3132 = vmatprep.mubr.bf16.mxu0 %v2693_v30  ;;  %3173 = vmatprep.mubr.bf16.mxu1 %v2693_v30  ;;  %v6071_v30 = vld [vmem:[#allocation16 + $0x2a0] ss:$24 sps:$4 sm:$0xff]  }
 0x778   :  { %3133 = vmatmul.mubr.bf16.vlgmr.msra.gmra.mrb[8].mxu0 %v2692_v32  ;;  %3174 = vmatmul.mubr.bf16.vlgmr.msra.gmra.mrb[20].mxu1 %v2692_v32  ;;  %v6082_v32 = vld [vmem:[#allocation16 + $0x2dc] ss:$24 sps:$4 sm:$0xff]  }
 0x779   :  { %4375 = vmatpush1.bf16.msra.mxu0 %v5987_v31  ;;  %4457 = vmatpush1.bf16.msra.mxu1 %v5990_v34  ;;  %v6074_v31 = vld [vmem:[#allocation16 + $0x2a8] ss:$24 sps:$4 sm:$0xff]   ;;  %v6079_v34 = vld [vmem:[#allocation16 + $0x2d4] ss:$24 sps:$4 sm:$0xff]  }
 0x77a   :  { %4376 = vmatprep.subr.bf16.mxu0 %v5995_v10  ;;  %4458 = vmatprep.subr.bf16.mxu1 %v5998_v33  ;;  %v6077_v10 = vld [vmem:[#allocation16 + $0x2d0] ss:$24 sps:$4 sm:$0xff]  }
 0x77b   :  { %v6080_v33 = vld [vmem:[#allocation16 + $0x2d8] ss:$24 sps:$4 sm:$0xff]  }
 0x77d   :  { %4377 = vmatpush1.bf16.msra.mxu0 %v5993_v18  ;;  %4459 = vmatpush1.bf16.msra.mxu1 %v5996_v35  ;;  %v6085_v18 = vld [vmem:[#allocation16 + $0x304] ss:$24 sps:$4 sm:$0xff]  }
 0x77e   :  { %4378 = vmatprep.subr.bf16.mxu0 %v6001_v22  ;;  %4460 = vmatprep.subr.bf16.mxu1 %v6004_v37  ;;  %v6088_v35 = vld [vmem:[#allocation16 + $0x30c] ss:$24 sps:$4 sm:$0xff]   ;;  %v6979_v22 = vld [vmem:[%s7070_s12] sm:$0xf] }
 0x77f   :  { %v2763_v37 = vrot.slane %v6979_v22, %v6858_v4 }
 0x781   :  { %4379 = vmatpush1.bf16.msra.mxu0 %v5999_v38  ;;  %4461 = vmatpush1.bf16.msra.mxu1 %v6002_v12  ;;  %v2767_v38 = vrot.slane %v6979_v22, %v6866_v6  ;;  %v2775_v12 = vrot.slane %v6979_v22, %v6876_v7 }
 0x782   :  { %4380 = vmatprep.subr.bf16.mxu0 %v6007_v0  ;;  %4462 = vmatprep.subr.bf16.mxu1 %v6010_v39 }
 0x785   :  { %4381 = vmatpush1.bf16.msra.mxu0 %v6005_v40  ;;  %4463 = vmatpush1.bf16.msra.mxu1 %v6008_v41 }
 0x786   :  { %4382 = vmatprep.subr.bf16.mxu0 %v6013_v43  ;;  %4464 = vmatprep.subr.bf16.mxu1 %v6016_v44 }
 0x789   :  { %4383 = vmatpush1.bf16.msra.mxu0 %v6011_v45  ;;  %4465 = vmatpush1.bf16.msra.mxu1 %v6014_v46 }
 0x78a   :  { %4384 = vmatprep.subr.bf16.mxu0 %v6019_v47  ;;  %4466 = vmatprep.subr.bf16.mxu1 %v6022_v50 }
 0x78d   :  { %4385 = vmatpush1.bf16.msra.mxu0 %v6017_v52  ;;  %4467 = vmatpush1.bf16.msra.mxu1 %v6020_v53 }
 0x78e   :  { %4386 = vmatprep.subr.bf16.mxu0 %v6025_v54  ;;  %4468 = vmatprep.subr.bf16.mxu1 %v6028_v55 }
 0x791   :  { %4387 = vmatpush1.bf16.msra.mxu0 %v6023_v56  ;;  %4469 = vmatpush1.bf16.msra.mxu1 %v6026_v36  ;;  %v6083_v36 = vld [vmem:[#allocation16 + $0x300] ss:$24 sps:$4 sm:$0xff]  }
 0x792   :  { %4388 = vmatprep.subr.bf16.mxu0 %v6031_v57  ;;  %4470 = vmatprep.subr.bf16.mxu1 %v6034_v58  ;;  %v6086_v57 = vld [vmem:[#allocation16 + $0x308] ss:$24 sps:$4 sm:$0xff]  }
 0x795   :  { %4389 = vmatpush1.bf16.msra.mxu0 %v6029_v59  ;;  %4471 = vmatpush1.bf16.msra.mxu1 %v6032_v60  ;;  %v6091_v59 = vld [vmem:[#allocation16 + $0x334] ss:$24 sps:$4 sm:$0xff]  }
 0x796   :  { %4390 = vmatprep.subr.bf16.mxu0 %v6037_v61  ;;  %4472 = vmatprep.subr.bf16.mxu1 %v6040_v62  ;;  %v6094_v60 = vld [vmem:[#allocation16 + $0x33c] ss:$24 sps:$4 sm:$0xff]   ;;  %v6089_v62 = vld [vmem:[#allocation16 + $0x330] ss:$24 sps:$4 sm:$0xff]  }
 0x799   :  { %4391 = vmatpush1.bf16.msra.mxu0 %v6035_v63  ;;  %4473 = vmatpush1.bf16.msra.mxu1 %v6038_v1  ;;  %v6092_v63 = vld [vmem:[#allocation16 + $0x338] ss:$24 sps:$4 sm:$0xff]   ;;  %v6097_v1 = vld [vmem:[#allocation16 + $0x364] ss:$24 sps:$4 sm:$0xff]  }
 0x79a   :  { %4392 = vmatprep.subr.bf16.mxu0 %v6043_v2  ;;  %4474 = vmatprep.subr.bf16.mxu1 %v6046_v26  ;;  %v6100_v2 = vld [vmem:[#allocation16 + $0x36c] ss:$24 sps:$4 sm:$0xff]   ;;  %v6095_v26 = vld [vmem:[#allocation16 + $0x360] ss:$24 sps:$4 sm:$0xff]  }
 0x79d   :  { %4393 = vmatpush1.bf16.msra.mxu0 %v6041_v8  ;;  %4475 = vmatpush1.bf16.msra.mxu1 %v6044_v51  ;;  %v6098_v8 = vld [vmem:[#allocation16 + $0x368] ss:$24 sps:$4 sm:$0xff]   ;;  %v6103_v51 = vld [vmem:[#allocation16 + $0x394] ss:$24 sps:$4 sm:$0xff]  }
 0x79e   :  { %4394 = vmatprep.subr.bf16.mxu0 %v6049_v9  ;;  %4476 = vmatprep.subr.bf16.mxu1 %v6052_v11  ;;  %v6106_v9 = vld [vmem:[#allocation16 + $0x39c] ss:$24 sps:$4 sm:$0xff]   ;;  %v6101_v11 = vld [vmem:[#allocation16 + $0x390] ss:$24 sps:$4 sm:$0xff]  }
 0x7a1   :  { %4395 = vmatpush1.bf16.msra.mxu0 %v6047_v48  ;;  %4477 = vmatpush1.bf16.msra.mxu1 %v6050_v13  ;;  %v6104_v48 = vld [vmem:[#allocation16 + $0x398] ss:$24 sps:$4 sm:$0xff]   ;;  %v6109_v13 = vld [vmem:[#allocation16 + $0x3c4] ss:$24 sps:$4 sm:$0xff]  }
 0x7a2   :  { %4396 = vmatprep.subr.bf16.mxu0 %v6055_v14  ;;  %4478 = vmatprep.subr.bf16.mxu1 %v6058_v15  ;;  %v6112_v14 = vld [vmem:[#allocation16 + $0x3cc] ss:$24 sps:$4 sm:$0xff]   ;;  %v6107_v15 = vld [vmem:[#allocation16 + $0x3c0] ss:$24 sps:$4 sm:$0xff]  }
 0x7a5   :  { %4397 = vmatpush1.bf16.msra.mxu0 %v6053_v16  ;;  %4479 = vmatpush1.bf16.msra.mxu1 %v6056_v17  ;;  %v6110_v16 = vld [vmem:[#allocation16 + $0x3c8] ss:$24 sps:$4 sm:$0xff]   ;;  %v6115_v17 = vld [vmem:[#allocation16 + $0x3f4] ss:$24 sps:$4 sm:$0xff]  }
 0x7a6   :  { %4398 = vmatprep.subr.bf16.mxu0 %v6061_v19  ;;  %4480 = vmatprep.subr.bf16.mxu1 %v6064_v20  ;;  %v6118_v19 = vld [vmem:[#allocation16 + $0x3fc] ss:$24 sps:$4 sm:$0xff]   ;;  %v6113_v20 = vld [vmem:[#allocation16 + $0x3f0] ss:$24 sps:$4 sm:$0xff]  }
 0x7a9   :  { %4399 = vmatpush1.bf16.msra.mxu0 %v6059_v21  ;;  %4481 = vmatpush1.bf16.msra.mxu1 %v6062_v23  ;;  %v6116_v21 = vld [vmem:[#allocation16 + $0x3f8] ss:$24 sps:$4 sm:$0xff]   ;;  %v6121_v23 = vld [vmem:[#allocation16 + $0x424] ss:$24 sps:$4 sm:$0xff]  }
 0x7aa   :  { %4400 = vmatprep.subr.bf16.mxu0 %v6067_v24  ;;  %4482 = vmatprep.subr.bf16.mxu1 %v6070_v25  ;;  %v6124_v24 = vld [vmem:[#allocation16 + $0x42c] ss:$24 sps:$4 sm:$0xff]   ;;  %v6119_v25 = vld [vmem:[#allocation16 + $0x420] ss:$24 sps:$4 sm:$0xff]  }
 0x7ad   :  { %4401 = vmatpush1.bf16.msra.mxu0 %v6065_v27  ;;  %4483 = vmatpush1.bf16.msra.mxu1 %v6068_v5  ;;  %v6122_v27 = vld [vmem:[#allocation16 + $0x428] ss:$24 sps:$4 sm:$0xff]   ;;  %v6127_v5 = vld [vmem:[#allocation16 + $0x454] ss:$24 sps:$4 sm:$0xff]  }
 0x7ae   :  { %4402 = vmatprep.subr.bf16.mxu0 %v6073_v28  ;;  %4484 = vmatprep.subr.bf16.mxu1 %v6076_v29  ;;  %v6130_v28 = vld [vmem:[#allocation16 + $0x45c] ss:$24 sps:$4 sm:$0xff]   ;;  %v6125_v29 = vld [vmem:[#allocation16 + $0x450] ss:$24 sps:$4 sm:$0xff]  }
 0x7b1   :  { %4403 = vmatpush1.bf16.msra.mxu0 %v6071_v30  ;;  %4485 = vmatpush1.bf16.msra.mxu1 %v6074_v31  ;;  %v6128_v30 = vld [vmem:[#allocation16 + $0x458] ss:$24 sps:$4 sm:$0xff]   ;;  %v6133_v31 = vld [vmem:[#allocation16 + $0x484] ss:$24 sps:$4 sm:$0xff]  }
 0x7b2   :  { %4404 = vmatprep.subr.bf16.mxu0 %v6079_v34  ;;  %4486 = vmatprep.subr.bf16.mxu1 %v6082_v32  ;;  %v6136_v34 = vld [vmem:[#allocation16 + $0x48c] ss:$24 sps:$4 sm:$0xff]   ;;  %v6131_v32 = vld [vmem:[#allocation16 + $0x480] ss:$24 sps:$4 sm:$0xff]  }
 0x7b5   :  { %4405 = vmatpush1.bf16.msra.mxu0 %v6077_v10  ;;  %4487 = vmatpush1.bf16.msra.mxu1 %v6080_v33  ;;  %v6134_v10 = vld [vmem:[#allocation16 + $0x488] ss:$24 sps:$4 sm:$0xff]   ;;  %v6139_v33 = vld [vmem:[#allocation16 + $0x4b4] ss:$24 sps:$4 sm:$0xff]  }
 0x7b6   :  { %4415 = vmatprep.subr.bf16.mxu0 %v6085_v18  ;;  %4497 = vmatprep.subr.bf16.mxu1 %v6088_v35  ;;  %v6142_v18 = vld [vmem:[#allocation16 + $0x4bc] ss:$24 sps:$4 sm:$0xff]   ;;  %v6137_v35 = vld [vmem:[#allocation16 + $0x4b0] ss:$24 sps:$4 sm:$0xff]  }
 0x84b   :  { %v3134_v0 = vpop.f32.mrb[8].mxu0  ;;  %v6987_v39 = vpop.f32.mrb[20].mxu1 }
 0x84c   :  { %v3135_v40 = vadd.f32 %v3134_v0, %v2763_v37  ;;  %v3136_v41 = vpop.f32.mrb[9].mxu0  ;;  %v3177_v43 = vpop.f32.mrb[21].mxu1  ;;  %v6140_v37 = vld [vmem:[#allocation16 + $0x4b8] ss:$24 sps:$4 sm:$0xff]  }
 0x84d   :  { %v3137_v44 = vadd.f32 %v3136_v41, %v2767_v38  ;;  %v3178_v45 = vadd.f32 %v3177_v43, %v2775_v12  ;;  %v3138_v46 = vpop.f32.mrb[10].mxu0  ;;  %v3179_v47 = vpop.f32.mrb[22].mxu1  ;;  %v6145_v38 = vld [vmem:[#allocation16 + $0x4e4] ss:$24 sps:$4 sm:$0xff]   ;;  %v6143_v0 = vld [vmem:[#allocation16 + $0x4e0] ss:$24 sps:$4 sm:$0xff]  }
 0x84e   :  { %v3182_v50 = vmax.f32 %v3135_v40, 0.0  ;;  %v3139_v52 = vpop.f32.mrb[11].mxu0  ;;  %v3180_v53 = vpop.f32.mrb[23].mxu1  ;;  %v6148_v12 = vld [vmem:[#allocation16 + $0x4ec] ss:$24 sps:$4 sm:$0xff]  }
 0x84f   :  { %v3183_v54 = vmax.f32 %v3137_v44, 0.0  ;;  %v3185_v55 = vmax.f32 %v3178_v45, 0.0  ;;  %v6146_v40 = vld [vmem:[#allocation16 + $0x4e8] ss:$24 sps:$4 sm:$0xff]   ;;  %v6151_v41 = vld [vmem:[#allocation16 + $0x514] ss:$24 sps:$4 sm:$0xff]  }
 0x850   :  { %v6991_v58 = vpack.c.bf16 %v3182_v50, %v3182_v50  ;;  %v6154_v43 = vld [vmem:[#allocation16 + $0x51c] ss:$24 sps:$4 sm:$0xff]   ;;  %v6149_v44 = vld [vmem:[#allocation16 + $0x510] ss:$24 sps:$4 sm:$0xff]   ;;  %v6160_v47 = vld [vmem:[#allocation16 + $0x54c] ss:$24 sps:$4 sm:$0xff]  }
 0x851   :  { %v6989_v56 = vpack.c.bf16 %v3183_v54, %v3183_v54  ;;  %v6995_v61 = vpack.c.bf16 %v3185_v55, %v3185_v55  ;;  %v6152_v45 = vld [vmem:[#allocation16 + $0x518] ss:$24 sps:$4 sm:$0xff]   ;;  %v6157_v46 = vld [vmem:[#allocation16 + $0x544] ss:$24 sps:$4 sm:$0xff]   ;;  %v6158_v52 = vld [vmem:[#allocation16 + $0x548] ss:$24 sps:$4 sm:$0xff]  }
 0x852   :  { %v6155_v50 = vld [vmem:[#allocation16 + $0x540] ss:$24 sps:$4 sm:$0xff]   ;;  %v6163_v53 = vld [vmem:[#allocation16 + $0x574] ss:$24 sps:$4 sm:$0xff]   ;;  %v6161_v55 = vld [vmem:[#allocation16 + $0x570] ss:$24 sps:$4 sm:$0xff]  }
 0x853   :  { %4406 = vmatprep.mubr.bf16.mxu0 %v6989_v56  ;;  %4488 = vmatprep.mubr.bf16.mxu1 %v6989_v56  ;;  %v6166_v54 = vld [vmem:[#allocation16 + $0x57c] ss:$24 sps:$4 sm:$0xff]  }
 0x854   :  { %4407 = vmatmul.mubr.bf16.vlgmr.msra.gmra.mrb[12].mxu0 %v6991_v58  ;;  %4489 = vmatmul.mubr.bf16.vlgmr.msra.gmra.mrb[24].mxu1 %v6991_v58 }
 0x855   :  { %4416 = vmatpush1.bf16.msra.mxu0 %v6083_v36  ;;  %4498 = vmatpush1.bf16.msra.mxu1 %v6086_v57  ;;  %v6164_v36 = vld [vmem:[#allocation16 + $0x578] ss:$24 sps:$4 sm:$0xff]   ;;  %v2771_v57 = vrot.slane %v6979_v22, %v6873_v3  ;;  %v6181_v22 = vld [vmem:[#allocation16 + $0x14] ss:$24 sps:$4 sm:$0xff]  }
 0x856   :  { %4447 = vmatprep.mubr.bf16.mxu0 %v6995_v61  ;;  %4529 = vmatprep.mubr.bf16.mxu1 %v6995_v61 }
 0x857   :  { %4417 = vmatprep.subr.bf16.mxu0 %v6091_v59  ;;  %4499 = vmatprep.subr.bf16.mxu1 %v6094_v60  ;;  %v6169_v59 = vld [vmem:[#allocation16 + $0x5a4] ss:$24 sps:$4 sm:$0xff]  }
 0x858   :  { %v6172_v60 = vld [vmem:[#allocation16 + $0x5ac] ss:$24 sps:$4 sm:$0xff]  }
 0x859   :  { %4418 = vmatpush1.bf16.msra.mxu0 %v6089_v62  ;;  %4500 = vmatpush1.bf16.msra.mxu1 %v6092_v63  ;;  %v6167_v62 = vld [vmem:[#allocation16 + $0x5a0] ss:$24 sps:$4 sm:$0xff]  }
 0x85a   :  { %4419 = vmatprep.subr.bf16.mxu0 %v6097_v1  ;;  %4501 = vmatprep.subr.bf16.mxu1 %v6100_v2  ;;  %v6170_v63 = vld [vmem:[#allocation16 + $0x5a8] ss:$24 sps:$4 sm:$0xff]   ;;  %v3176_v1 = vadd.f32 %v6987_v39, %v2771_v57  ;;  %v6175_v2 = vld [vmem:[#allocation16 + $0x5d4] ss:$24 sps:$4 sm:$0xff]   ;;  %v6250_v57 = vld [vmem:[#allocation16 + $0x464] ss:$24 sps:$4 sm:$0xff]  }
 0x85b   :  { %v6182_v39 = vld [vmem:[#allocation16 + $0x40] ss:$24 sps:$4 sm:$0xff]  }
 0x85d   :  { %4420 = vmatpush1.bf16.msra.mxu0 %v6095_v26  ;;  %4502 = vmatpush1.bf16.msra.mxu1 %v6098_v8  ;;  %v6178_v26 = vld [vmem:[#allocation16 + $0x5dc] ss:$24 sps:$4 sm:$0xff]   ;;  %v6173_v8 = vld [vmem:[#allocation16 + $0x5d0] ss:$24 sps:$4 sm:$0xff]  }
 0x85e   :  { %4421 = vmatprep.subr.bf16.mxu0 %v6103_v51  ;;  %4503 = vmatprep.subr.bf16.mxu1 %v6106_v9  ;;  %v6176_v51 = vld [vmem:[#allocation16 + $0x5d8] ss:$24 sps:$4 sm:$0xff]   ;;  %v3184_v9 = vmax.f32 %v3176_v1, 0.0 }
 0x85f   :  { %v6254_v1 = vld [vmem:[#allocation16 + $0x4c0] ss:$24 sps:$4 sm:$0xff]  }
 0x861   :  { %4422 = vmatpush1.bf16.msra.mxu0 %v6101_v11  ;;  %4504 = vmatpush1.bf16.msra.mxu1 %v6104_v48  ;;  %v6179_v11 = vld [vmem:[#allocation16 + $0x10] ss:$24 sps:$4 sm:$0xff]   ;;  %v7004_v48 = vpack.c.bf16 %v3184_v9, %v3184_v9  ;;  %v6265_v9 = vld [vmem:[#allocation16 + $0x554] ss:$24 sps:$4 sm:$0xff]  }
 0x862   :  { %4423 = vmatprep.subr.bf16.mxu0 %v6109_v13  ;;  %4505 = vmatprep.subr.bf16.mxu1 %v6112_v14  ;;  %v6184_v13 = vld [vmem:[#allocation16 + $0x44] ss:$24 sps:$4 sm:$0xff]   ;;  %v6187_v14 = vld [vmem:[#allocation16 + $0x74] ss:$24 sps:$4 sm:$0xff]  }
 0x865   :  { %4424 = vmatpush1.bf16.msra.mxu0 %v6107_v15  ;;  %4506 = vmatpush1.bf16.msra.mxu1 %v6110_v16  ;;  %v6185_v15 = vld [vmem:[#allocation16 + $0x70] ss:$24 sps:$4 sm:$0xff]   ;;  %v6190_v16 = vld [vmem:[#allocation16 + $0xa4] ss:$24 sps:$4 sm:$0xff]  }
 0x866   :  { %4425 = vmatprep.subr.bf16.mxu0 %v6115_v17  ;;  %4507 = vmatprep.subr.bf16.mxu1 %v6118_v19  ;;  %v6188_v17 = vld [vmem:[#allocation16 + $0xa0] ss:$24 sps:$4 sm:$0xff]   ;;  %v6193_v19 = vld [vmem:[#allocation16 + $0xd4] ss:$24 sps:$4 sm:$0xff]  }
 0x869   :  { %4426 = vmatpush1.bf16.msra.mxu0 %v6113_v20  ;;  %4508 = vmatpush1.bf16.msra.mxu1 %v6116_v21  ;;  %v6191_v20 = vld [vmem:[#allocation16 + $0xd0] ss:$24 sps:$4 sm:$0xff]   ;;  %v6196_v21 = vld [vmem:[#allocation16 + $0x104] ss:$24 sps:$4 sm:$0xff]  }
 0x86a   :  { %4427 = vmatprep.subr.bf16.mxu0 %v6121_v23  ;;  %4509 = vmatprep.subr.bf16.mxu1 %v6124_v24  ;;  %v6194_v23 = vld [vmem:[#allocation16 + $0x100] ss:$24 sps:$4 sm:$0xff]   ;;  %v6199_v24 = vld [vmem:[#allocation16 + $0x134] ss:$24 sps:$4 sm:$0xff]  }
 0x86d   :  { %4428 = vmatpush1.bf16.msra.mxu0 %v6119_v25  ;;  %4510 = vmatpush1.bf16.msra.mxu1 %v6122_v27  ;;  %v6202_v25 = vld [vmem:[#allocation16 + $0x164] ss:$24 sps:$4 sm:$0xff]   ;;  %v6200_v27 = vld [vmem:[#allocation16 + $0x160] ss:$24 sps:$4 sm:$0xff]  }
 0x86e   :  { %4429 = vmatprep.subr.bf16.mxu0 %v6127_v5  ;;  %4511 = vmatprep.subr.bf16.mxu1 %v6130_v28  ;;  %v6205_v5 = vld [vmem:[#allocation16 + $0x194] ss:$24 sps:$4 sm:$0xff]   ;;  %v6203_v28 = vld [vmem:[#allocation16 + $0x190] ss:$24 sps:$4 sm:$0xff]  }
 0x871   :  { %4430 = vmatpush1.bf16.msra.mxu0 %v6125_v29  ;;  %4512 = vmatpush1.bf16.msra.mxu1 %v6128_v30  ;;  %v6208_v29 = vld [vmem:[#allocation16 + $0x1c4] ss:$24 sps:$4 sm:$0xff]   ;;  %v6206_v30 = vld [vmem:[#allocation16 + $0x1c0] ss:$24 sps:$4 sm:$0xff]  }
 0x872   :  { %4431 = vmatprep.subr.bf16.mxu0 %v6133_v31  ;;  %4513 = vmatprep.subr.bf16.mxu1 %v6136_v34  ;;  %v6211_v31 = vld [vmem:[#allocation16 + $0x1f4] ss:$24 sps:$4 sm:$0xff]   ;;  %v6209_v34 = vld [vmem:[#allocation16 + $0x1f0] ss:$24 sps:$4 sm:$0xff]  }
 0x875   :  { %4432 = vmatpush1.bf16.msra.mxu0 %v6131_v32  ;;  %4514 = vmatpush1.bf16.msra.mxu1 %v6134_v10  ;;  %v6214_v32 = vld [vmem:[#allocation16 + $0x224] ss:$24 sps:$4 sm:$0xff]   ;;  %v6212_v10 = vld [vmem:[#allocation16 + $0x220] ss:$24 sps:$4 sm:$0xff]  }
 0x876   :  { %4433 = vmatprep.subr.bf16.mxu0 %v6139_v33  ;;  %4515 = vmatprep.subr.bf16.mxu1 %v6142_v18  ;;  %v6217_v33 = vld [vmem:[#allocation16 + $0x254] ss:$24 sps:$4 sm:$0xff]   ;;  %v6215_v18 = vld [vmem:[#allocation16 + $0x250] ss:$24 sps:$4 sm:$0xff]  }
 0x879   :  { %4434 = vmatpush1.bf16.msra.mxu0 %v6137_v35  ;;  %4516 = vmatpush1.bf16.msra.mxu1 %v6140_v37  ;;  %v6220_v35 = vld [vmem:[#allocation16 + $0x284] ss:$24 sps:$4 sm:$0xff]   ;;  %v6218_v37 = vld [vmem:[#allocation16 + $0x280] ss:$24 sps:$4 sm:$0xff]  }
 0x87a   :  { %4435 = vmatprep.subr.bf16.mxu0 %v6145_v38  ;;  %4517 = vmatprep.subr.bf16.mxu1 %v6148_v12  ;;  %v6223_v38 = vld [vmem:[#allocation16 + $0x2b4] ss:$24 sps:$4 sm:$0xff]   ;;  %v6221_v12 = vld [vmem:[#allocation16 + $0x2b0] ss:$24 sps:$4 sm:$0xff]  }
 0x87d   :  { %4436 = vmatpush1.bf16.msra.mxu0 %v6143_v0  ;;  %4518 = vmatpush1.bf16.msra.mxu1 %v6146_v40  ;;  %v6226_v0 = vld [vmem:[#allocation16 + $0x2e4] ss:$24 sps:$4 sm:$0xff]   ;;  %v6224_v40 = vld [vmem:[#allocation16 + $0x2e0] ss:$24 sps:$4 sm:$0xff]  }
 0x87e   :  { %4437 = vmatprep.subr.bf16.mxu0 %v6151_v41  ;;  %4519 = vmatprep.subr.bf16.mxu1 %v6154_v43  ;;  %v6229_v41 = vld [vmem:[#allocation16 + $0x314] ss:$24 sps:$4 sm:$0xff]   ;;  %v6227_v43 = vld [vmem:[#allocation16 + $0x310] ss:$24 sps:$4 sm:$0xff]  }
 0x881   :  { %4438 = vmatpush1.bf16.msra.mxu0 %v6149_v44  ;;  %4520 = vmatpush1.bf16.msra.mxu1 %v6152_v45  ;;  %v6232_v44 = vld [vmem:[#allocation16 + $0x344] ss:$24 sps:$4 sm:$0xff]   ;;  %v6230_v45 = vld [vmem:[#allocation16 + $0x340] ss:$24 sps:$4 sm:$0xff]  }
 0x882   :  { %4439 = vmatprep.subr.bf16.mxu0 %v6157_v46  ;;  %4521 = vmatprep.subr.bf16.mxu1 %v6160_v47  ;;  %v6235_v46 = vld [vmem:[#allocation16 + $0x374] ss:$24 sps:$4 sm:$0xff]   ;;  %v6233_v47 = vld [vmem:[#allocation16 + $0x370] ss:$24 sps:$4 sm:$0xff]  }
 0x885   :  { %4440 = vmatpush1.bf16.msra.mxu0 %v6155_v50  ;;  %4522 = vmatpush1.bf16.msra.mxu1 %v6158_v52  ;;  %v6238_v50 = vld [vmem:[#allocation16 + $0x3a4] ss:$24 sps:$4 sm:$0xff]   ;;  %v6236_v52 = vld [vmem:[#allocation16 + $0x3a0] ss:$24 sps:$4 sm:$0xff]  }
 0x886   :  { %4441 = vmatprep.subr.bf16.mxu0 %v6163_v53  ;;  %4523 = vmatprep.subr.bf16.mxu1 %v6166_v54  ;;  %v6241_v53 = vld [vmem:[#allocation16 + $0x3d4] ss:$24 sps:$4 sm:$0xff]   ;;  %v6239_v54 = vld [vmem:[#allocation16 + $0x3d0] ss:$24 sps:$4 sm:$0xff]  }
 0x889   :  { %4442 = vmatpush1.bf16.msra.mxu0 %v6161_v55  ;;  %4524 = vmatpush1.bf16.msra.mxu1 %v6164_v36  ;;  %v6244_v55 = vld [vmem:[#allocation16 + $0x404] ss:$24 sps:$4 sm:$0xff]   ;;  %v6247_v36 = vld [vmem:[#allocation16 + $0x434] ss:$24 sps:$4 sm:$0xff]  }
 0x88a   :  { %4443 = vmatprep.subr.bf16.mxu0 %v6169_v59  ;;  %4525 = vmatprep.subr.bf16.mxu1 %v6172_v60  ;;  %v6248_v59 = vld [vmem:[#allocation16 + $0x460] ss:$24 sps:$4 sm:$0xff]   ;;  %v6253_v60 = vld [vmem:[#allocation16 + $0x494] ss:$24 sps:$4 sm:$0xff]  }
 0x88d   :  { %4444 = vmatpush1.bf16.msra.mxu0 %v6167_v62  ;;  %4526 = vmatpush1.bf16.msra.mxu1 %v6170_v63  ;;  %v6251_v62 = vld [vmem:[#allocation16 + $0x490] ss:$24 sps:$4 sm:$0xff]   ;;  %v6256_v63 = vld [vmem:[#allocation16 + $0x4c4] ss:$24 sps:$4 sm:$0xff]  }
 0x88e   :  { %4445 = vmatprep.subr.bf16.mxu0 %v6175_v2  ;;  %4527 = vmatprep.subr.bf16.mxu1 %v6178_v26  ;;  %v6259_v2 = vld [vmem:[#allocation16 + $0x4f4] ss:$24 sps:$4 sm:$0xff]   ;;  %v6257_v26 = vld [vmem:[#allocation16 + $0x4f0] ss:$24 sps:$4 sm:$0xff]  }
 0x891   :  { %4446 = vmatpush1.bf16.msra.mxu0 %v6173_v8  ;;  %4528 = vmatpush1.bf16.msra.mxu1 %v6176_v51  ;;  %v6262_v8 = vld [vmem:[#allocation16 + $0x524] ss:$24 sps:$4 sm:$0xff]   ;;  %v6260_v51 = vld [vmem:[#allocation16 + $0x520] ss:$24 sps:$4 sm:$0xff]  }
 0x892   :  { %4538 = vmatprep.subr.bf16.mxu0 %v6181_v22  ;;  %v6263_v22 = vld [vmem:[#allocation16 + $0x550] ss:$24 sps:$4 sm:$0xff]  }
 0x894   :  { %4448 = vmatmul.mubr.bf16.vlgmr.msra.gmra.mrb[12].mxu0 %v7004_v48  ;;  %4530 = vmatmul.mubr.bf16.vlgmr.msra.gmra.mrb[24].mxu1 %v7004_v48 }
 0x895   :  { %4539 = vmatpush1.bf16.msra.mxu0 %v6179_v11  ;;  %4570 = vmatprep.mubr.bf16.mxu0 %v6989_v56  ;;  %v6197_v56 = vld [vmem:[#allocation16 + $0x130] ss:$24 sps:$4 sm:$0xff]   ;;  %v6268_v11 = vld [vmem:[#allocation16 + $0x584] ss:$24 sps:$4 sm:$0xff]  }
 0x896   :  { %4540 = vmatprep.subr.bf16.mxu0 %v6184_v13  ;;  %v6266_v13 = vld [vmem:[#allocation16 + $0x580] ss:$24 sps:$4 sm:$0xff]  }
 0x899   :  { %4541 = vmatpush1.bf16.msra.mxu0 %v6182_v39  ;;  %v6271_v39 = vld [vmem:[#allocation16 + $0x5b4] ss:$24 sps:$4 sm:$0xff]  }
 0x89a   :  { %4542 = vmatprep.subr.bf16.mxu0 %v6187_v14  ;;  %v6269_v14 = vld [vmem:[#allocation16 + $0x5b0] ss:$24 sps:$4 sm:$0xff]  }
 0x89d   :  { %4543 = vmatpush1.bf16.msra.mxu0 %v6185_v15  ;;  %v6274_v15 = vld [vmem:[#allocation16 + $0x5e4] ss:$24 sps:$4 sm:$0xff]  }
 0x89e   :  { %4544 = vmatprep.subr.bf16.mxu0 %v6190_v16  ;;  %v6272_v16 = vld [vmem:[#allocation16 + $0x5e0] ss:$24 sps:$4 sm:$0xff]  }
 0x8a1   :  { %4545 = vmatpush1.bf16.msra.mxu0 %v6188_v17  ;;  %v7015_v17 = vld [vmem:[%s7072_s14] sm:$0x3f]  ;;  %s6588_s14 = smov [#allocation18]  }
 0x8a2   :  { %4546 = vmatprep.subr.bf16.mxu0 %v6193_v19  ;;  %v3387_v19 = vrot.slane %v7015_v17, %v6858_v4  ;;  %s4726_s20 = sshll.u32 %s6588_s14, 4  ;;  %s4727_s20 = int_to_ptr.vmem [resolvable:$true] %s4726_s20 }
 0x8a3   :  { %s6501_s24 = scalar_lea.vmem %s4727_s20, 32  ;;  %p6506_p3 = scmp.lt.s32.totalorder %s4727_s20, %s4727_s20 }
 0x8a4   :  { %p6502_p2 = scmp.ne.s32.totalorder %s4727_s20, %s6501_s24  ;;  %p6507_p4 = scmp.lt.s32.totalorder %s6501_s24, %s6501_s24 }
 0x8a5   :  { %4547 = vmatpush1.bf16.msra.mxu0 %v6191_v20  ;;  %v3395_v20 = vrot.slane %v7015_v17, %v6873_v3 }
 0x8a6   :  { %4548 = vmatprep.subr.bf16.mxu0 %v6196_v21  ;;  %v3391_v21 = vrot.slane %v7015_v17, %v6866_v6  ;;  %p6508_p5 = por %p6507_p4, %p6506_p3 }
 0x8a8   :  { %p6509_p6 = pnand %p6508_p5, %p6502_p2 }
 0x8a9   :  { %4549 = vmatpush1.bf16.msra.mxu0 %v6194_v23  ;;  %v3399_v23 = vrot.slane %v7015_v17, %v6876_v7 }
 0x8aa   :  { %4550 = vmatprep.subr.bf16.mxu0 %v6199_v24 }
 0x8ad   :  { %4551 = vmatpush1.bf16.msra.mxu0 %v6197_v56 }
 0x8ae   :  { %4552 = vmatprep.subr.bf16.mxu0 %v6202_v25 }
 0x8b1   :  { %4553 = vmatpush1.bf16.msra.mxu0 %v6200_v27 }
 0x8b2   :  { %4554 = vmatprep.subr.bf16.mxu0 %v6205_v5 }
 0x8b5   :  { %4555 = vmatpush1.bf16.msra.mxu0 %v6203_v28 }
 0x8b6   :  { %4556 = vmatprep.subr.bf16.mxu0 %v6208_v29 }
 0x8b9   :  { %4557 = vmatpush1.bf16.msra.mxu0 %v6206_v30 }
 0x8ba   :  { %4558 = vmatprep.subr.bf16.mxu0 %v6211_v31 }
 0x8bd   :  { %4559 = vmatpush1.bf16.msra.mxu0 %v6209_v34 }
 0x8be   :  { %4560 = vmatprep.subr.bf16.mxu0 %v6214_v32 }
 0x8c1   :  { %4561 = vmatpush1.bf16.msra.mxu0 %v6212_v10 }
 0x8c2   :  { %4562 = vmatprep.subr.bf16.mxu0 %v6217_v33 }
 0x8c5   :  { %4563 = vmatpush1.bf16.msra.mxu0 %v6215_v18 }
 0x8c6   :  { %4564 = vmatprep.subr.bf16.mxu0 %v6220_v35 }
 0x8c9   :  { %4565 = vmatpush1.bf16.msra.mxu0 %v6218_v37 }
 0x8ca   :  { %4566 = vmatprep.subr.bf16.mxu0 %v6223_v38 }
 0x8cd   :  { %4567 = vmatpush1.bf16.msra.mxu0 %v6221_v12 }
 0x8ce   :  { %4568 = vmatprep.subr.bf16.mxu0 %v6226_v0 }
 0x8d1   :  { %4569 = vmatpush1.bf16.msra.mxu0 %v6224_v40 }
 0x8d2   :  { %4579 = vmatprep.subr.bf16.mxu0 %v6229_v41 }
 0x8d4   :  { %4571 = vmatmul.mubr.bf16.vlgmr.msra.gmra.mrb[16].mxu0 %v6991_v58  ;;  %v6242_v58 = vld [vmem:[#allocation16 + $0x400] ss:$24 sps:$4 sm:$0xff]  }
 0x8d5   :  { %4580 = vmatpush1.bf16.msra.mxu0 %v6227_v43  ;;  %4611 = vmatprep.mubr.bf16.mxu0 %v6995_v61  ;;  %v6245_v61 = vld [vmem:[#allocation16 + $0x430] ss:$24 sps:$4 sm:$0xff]  }
 0x8d6   :  { %4581 = vmatprep.subr.bf16.mxu0 %v6232_v44 }
 0x8d9   :  { %4582 = vmatpush1.bf16.msra.mxu0 %v6230_v45 }
 0x8da   :  { %4583 = vmatprep.subr.bf16.mxu0 %v6235_v46 }
 0x8dd   :  { %4584 = vmatpush1.bf16.msra.mxu0 %v6233_v47 }
 0x8de   :  { %4585 = vmatprep.subr.bf16.mxu0 %v6238_v50 }
 0x8e1   :  { %4586 = vmatpush1.bf16.msra.mxu0 %v6236_v52 }
 0x8e2   :  { %4587 = vmatprep.subr.bf16.mxu0 %v6241_v53 }
 0x8e5   :  { %4588 = vmatpush1.bf16.msra.mxu0 %v6239_v54 }
 0x8e6   :  { %4589 = vmatprep.subr.bf16.mxu0 %v6244_v55 }
 0x8e9   :  { %4590 = vmatpush1.bf16.msra.mxu0 %v6242_v58 }
 0x8ea   :  { %4591 = vmatprep.subr.bf16.mxu0 %v6247_v36 }
 0x8ed   :  { %4592 = vmatpush1.bf16.msra.mxu0 %v6245_v61 }
 0x8ee   :  { %4593 = vmatprep.subr.bf16.mxu0 %v6250_v57 }
 0x8f1   :  { %4594 = vmatpush1.bf16.msra.mxu0 %v6248_v59 }
 0x8f2   :  { %4595 = vmatprep.subr.bf16.mxu0 %v6253_v60 }
 0x8f5   :  { %4596 = vmatpush1.bf16.msra.mxu0 %v6251_v62 }
 0x8f6   :  { %4597 = vmatprep.subr.bf16.mxu0 %v6256_v63 }
 0x8f9   :  { %4598 = vmatpush1.bf16.msra.mxu0 %v6254_v1 }
 0x8fa   :  { %4599 = vmatprep.subr.bf16.mxu0 %v6259_v2 }
 0x8fd   :  { %4600 = vmatpush1.bf16.msra.mxu0 %v6257_v26 }
 0x8fe   :  { %4601 = vmatprep.subr.bf16.mxu0 %v6262_v8 }
 0x901   :  { %4602 = vmatpush1.bf16.msra.mxu0 %v6260_v51 }
 0x902   :  { %4603 = vmatprep.subr.bf16.mxu0 %v6265_v9 }
 0x905   :  { %4604 = vmatpush1.bf16.msra.mxu0 %v6263_v22 }
 0x906   :  { %4605 = vmatprep.subr.bf16.mxu0 %v6268_v11 }
 0x909   :  { %4606 = vmatpush1.bf16.msra.mxu0 %v6266_v13 }
 0x90a   :  { %4607 = vmatprep.subr.bf16.mxu0 %v6271_v39 }
 0x90d   :  { %4608 = vmatpush1.bf16.msra.mxu0 %v6269_v14 }
 0x90e   :  { %4609 = vmatprep.subr.bf16.mxu0 %v6274_v15 }
 0x911   :  { %4610 = vmatpush1.bf16.msra.mxu0 %v6272_v16 }
 0x914   :  { %4612 = vmatmul.mubr.bf16.vlgmr.msra.gmra.mrb[16].mxu0 %v7004_v48 }
 0x967   :  { %v4449_v24 = vpop.f32.mrb[12].mxu0  ;;  %v4531_v56 = vpop.f32.mrb[24].mxu1 }
 0x968   :  { %v5389_v48 = vadd.f32 %v4449_v24, %v3387_v19  ;;  %v5391_v25 = vadd.f32 %v4531_v56, %v3395_v20  ;;  %v4451_v27 = vpop.f32.mrb[13].mxu0  ;;  %v4533_v5 = vpop.f32.mrb[25].mxu1 }
 0x969   :  { %v5390_v28 = vadd.f32 %v4451_v27, %v3391_v21  ;;  %v5392_v29 = vadd.f32 %v4533_v5, %v3399_v23  ;;  %v4453_v30 = vpop.f32.mrb[14].mxu0  ;;  %v4535_v31 = vpop.f32.mrb[26].mxu1 }
 0x96a   :  { %v4620_v4 = vsub.f32 0.0, %v5389_v48  ;;  %v4622_v34 = vsub.f32 0.0, %v5391_v25  ;;  %v4454_v32 = vpop.f32.mrb[15].mxu0  ;;  %v4536_v3 = vpop.f32.mrb[27].mxu1 }
 0x96b   :  { %v4621_v10 = vsub.f32 0.0, %v5390_v28  ;;  %v4623_v33 = vsub.f32 0.0, %v5392_v29 }
 0x96c   :  { %v4626_v6 = vmul.f32 1.442695, %v4620_v4  ;;  %v4630_v18 = vmul.f32 1.442695, %v4622_v34 }
 0x96d   :  { %v4628_v35 = vmul.f32 1.442695, %v4621_v10  ;;  %v4632_v7 = vmul.f32 1.442695, %v4623_v33 }
 0x96e   :  { %6279 = vpow2.f32 %v4626_v6 }
 0x96f   :  { %6281 = vpow2.f32 %v4630_v18 }
 0x970   :  { %6283 = vpow2.f32 %v4628_v35 }
 0x971   :  { %6285 = vpow2.f32 %v4632_v7 }
 0x978   :  { %v6280_v37 = vpop.eup %6279 }
 0x979   :  { %v6282_v38 = vpop.eup %6281  ;;  %v4638_v12 = vadd.f32 1.0, %v6280_v37 }
 0x97a   :  { %v6284_v0 = vpop.eup %6283  ;;  %v4640_v40 = vadd.f32 1.0, %v6282_v38 }
 0x97b   :  { %v6286_v41 = vpop.eup %6285  ;;  %6287 = vrcp.f32 %v4638_v12  ;;  %v4639_v43 = vadd.f32 1.0, %v6284_v0 }
 0x97c   :  { %6289 = vrcp.f32 %v4640_v40  ;;  %v4641_v44 = vadd.f32 1.0, %v6286_v41 }
 0x97d   :  { %6291 = vrcp.f32 %v4639_v43 }
 0x97e   :  { %6293 = vrcp.f32 %v4641_v44 }
 0x985   :  { %v6288_v45 = vpop.eup %6287 }
 0x986   :  { %v6290_v46 = vpop.eup %6289 }
 0x987   :  { %v6292_v47 = vpop.eup %6291 }
 0x988   :  { %v6294_v50 = vpop.eup %6293  ;;  %v5298_v52 = vpack.c.bf16 %v6292_v47, %v6288_v45 }
 0x989   :  { %v5299_v53 = vpack.c.bf16 %v6294_v50, %v6290_v46 }
 0x98a   :  { %v4677_v54 = vrot.slane %v5298_v52, %v6822_v49 }
 0x98b   :  { %v4684_v55 = vrot.slane %v5299_v53, %v6822_v49 }
 0x98d   :  { %v4692_v58 = vcombine.low %v4677_v54, %v4684_v55 }
 0x98e   :  { %6512 = shalt.err (!%p6509_p6)
}
 0x98f   :  { %s6513_s26 = scalar_lea.hbm %s7074_s16, 32 }
 0x990   :  { %p6514_p7 = scmp.ne.s32.totalorder %s7074_s16, %s6513_s26  ;;  %p6517_p8 = scmp.lt.u32.totalorder %s6513_s26, %s7074_s16 }
 0x992   :  { %p6519_p9 = pnand %p6517_p8, %p6514_p7 }
 0x994   :  { %6522 = shalt.err (!%p6519_p9)
}
 0x995   :  { %4729 = dma.vmem_to_hbm [thread:$0]  %s4727_s20, 32, %s7074_s16, [#allocation19]   ;;  %v3402_v36 = vsub.s32 4, %v6819_v42  ;;  %v3406_v61 = vsub.s32 5, %v6819_v42  ;;  %v4699_v19 = vrot.slane %v4692_v58, %v6822_v49 }
 0x996   :  { %s6589_s16 = smov [#allocation17]  }
 0x997   :  { %v3403_v57 = vrot.slane %v7015_v17, %v3402_v36  ;;  %v3407_v59 = vrot.slane %v7015_v17, %v3406_v61  ;;  %s4716_s4 = sshll.u32 %s6589_s16, 4  ;;  %s4717_s4 = int_to_ptr.vmem [resolvable:$true] %s4716_s4 }
 0x998   :  { %s6523_s28 = scalar_lea.vmem %s4717_s4, 96  ;;  %p6528_p11 = scmp.lt.s32.totalorder %s4717_s4, %s4717_s4 }
 0x999   :  { %p6524_p10 = scmp.ne.s32.totalorder %s4717_s4, %s6523_s28  ;;  %p6529_p12 = scmp.lt.s32.totalorder %s6523_s28, %s6523_s28 }
 0x99b   :  { %p6530_p13 = por %p6529_p12, %p6528_p11 }
 0x99d   :  { %p6531_p0 = pnand %p6530_p13, %p6524_p10 }
 0x9e7   :  { %v4613_v60 = vpop.f32.mrb[16].mxu0 }
 0x9e8   :  { %v5393_v62 = vadd.f32 %v4613_v60, %v3403_v57  ;;  %v4615_v63 = vpop.f32.mrb[17].mxu0 }
 0x9e9   :  { %v5394_v1 = vadd.f32 %v4615_v63, %v3407_v59  ;;  %v4617_v2 = vpop.f32.mrb[18].mxu0 }
 0x9ea   :  { %v4624_v26 = vsub.f32 0.0, %v5393_v62  ;;  %v4618_v8 = vpop.f32.mrb[19].mxu0 }
 0x9eb   :  { %v4625_v51 = vsub.f32 0.0, %v5394_v1 }
 0x9ec   :  { %v4634_v9 = vmul.f32 1.442695, %v4624_v26 }
 0x9ed   :  { %v4636_v22 = vmul.f32 1.442695, %v4625_v51 }
 0x9ee   :  { %6295 = vpow2.f32 %v4634_v9 }
 0x9ef   :  { %6297 = vpow2.f32 %v4636_v22 }
 0x9f8   :  { %v6296_v11 = vpop.eup %6295 }
 0x9f9   :  { %v6298_v13 = vpop.eup %6297  ;;  %v4642_v39 = vadd.f32 1.0, %v6296_v11 }
 0x9fa   :  { %v4643_v42 = vadd.f32 1.0, %v6298_v13 }
 0x9fb   :  { %6299 = vrcp.f32 %v4642_v39 }
 0x9fc   :  { %6301 = vrcp.f32 %v4643_v42 }
 0xa05   :  { %v6300_v14 = vpop.eup %6299 }
 0xa06   :  { %v6302_v15 = vpop.eup %6301 }
 0xa07   :  { %v5300_v16 = vpack.c.bf16 %v6302_v15, %v6300_v14 }
 0xa09   :  { %v4691_v17 = vrot.slane %v5300_v16, %v6822_v49 }
 0xa0b   :  { %v4706_v20 = vrot.slane %v4691_v17, %v6822_v49 }
 0xa0d   :  { %v4707_v21 = vcombine.low %v4699_v19, %v4706_v20 }
 0xa0f   :  { %4709 = vst [vmem:[#allocation17] sm:$0x3f] %v4707_v21 }
 0xa10   :  { %6534 = shalt.err (!%p6531_p0)
}
 0xa11   :  { %s6535_s6 = scalar_lea.hbm %s7073_s15, 96 }
 0xa12   :  { %p6536_p1 = scmp.ne.s32.totalorder %s7073_s15, %s6535_s6  ;;  %p6539_p2 = scmp.lt.u32.totalorder %s6535_s6, %s7073_s15 }
 0xa14   :  { %p6541_p3 = pnand %p6539_p2, %p6536_p1 }
 0xa16   :  { %6544 = shalt.err (!%p6541_p3)
}
 0xa17   :  { %4719 = dma.vmem_to_hbm [thread:$0]  %s4717_s4, 96, %s7073_s15, [#allocation4]  }
 0xa18   :  { %6555 = dma.done.wait [#allocation4], 96  }
 0xa19   :  { %6556 = vsyncadd [#allocation4], 4294967200 }
 0xa1a   :  { %6557 = dma.done.wait [#allocation19], 32  }
 0xa1b   :  { %6558 = vsyncadd [#allocation19], 4294967264 }
 0xa1c   :  { %4736 = vsyncpa [#allocation3], 1 }
 0xa1d   :  { %4737 = vsyncpa [#allocation6], 1 }
 0xa1e   :  { %4738 = vsyncpa [#allocation9], 1 }
 0xa1f   :  { %4739 = vsyncpa [#allocation12], 1 }
 0xa20   :  { %4740 = vsyncpa [#allocation15], 1 }
 0xa21   :  { %4741 = vsyncpa [#allocation4], 1 }
 0xa22   :  { %4742 = vsyncpa [#allocation19], 1 }

</bundles_post_ra>
